<compile_context>
chip_gen: v6e
topology: v6e:2x2x1
jax: 0.10.0
libtpu: 0.0.40
codegen_flags: <defaults>
</compile_context>

<pallas_src>
import numpy as np
import jax
import jax.numpy as jnp
from jax import lax
from jax.experimental import pallas as pl
from jax.experimental.pallas import tpu as pltpu

SA = 4                    # Selector.spatial_attention
SA2 = SA * SA
LEAKY_SLOPE = 0.01
EPS = 1e-5
MM_DTYPE = jnp.float32    # set to jnp.bfloat16 on v6e/v7x for MXU peak (small precision loss)


def _mm(a, b):
    return jnp.dot(a.astype(MM_DTYPE), b.astype(MM_DTYPE),
                   preferred_element_type=jnp.float32)


# ----------------------------------------------------------------------------
# trace-time constant matrices (numpy)
# ----------------------------------------------------------------------------
def _interp_matrix(out_size, in_size):
    """1-D bilinear interpolation matrix, align_corners=True."""
    M = np.zeros((out_size, in_size), np.float32)
    if in_size == 1:
        M[:, 0] = 1.0
        return M
    scale = (in_size - 1) / (out_size - 1)
    for i in range(out_size):
        src = i * scale
        lo = int(np.floor(src))
        hi = min(lo + 1, in_size - 1)
        frac = src - lo
        M[i, lo] += 1.0 - frac
        M[i, hi] += frac
    return M


def _up_pad_matrix_T(H, W, h, w, pad_top, pad_left):
    """(h*w, H*W): bilinear x2 upsample (align_corners=True) fused with F.pad."""
    Uh = _interp_matrix(2 * h, h)
    Uw = _interp_matrix(2 * w, w)
    M = np.zeros((H * W, h * w), np.float32)
    for y in range(H):
        yy = y - pad_top
        if not (0 <= yy < 2 * h):
            continue
        for x in range(W):
            xx = x - pad_left
            if not (0 <= xx < 2 * w):
                continue
            M[y * W + x, :] = np.kron(Uh[yy], Uw[xx])
    return np.ascontiguousarray(M.T)


def _pool_matrix_T(H, W, sa):
    """(H*W, sa*sa): exact adaptive average pooling (transposed)."""
    P = np.zeros((sa * sa, H * W), np.float32)
    for oh in range(sa):
        h0, h1 = (oh * H) // sa, -((-(oh + 1) * H) // sa)
        for ow in range(sa):
            w0, w1 = (ow * W) // sa, -((-(ow + 1) * W) // sa)
            val = 1.0 / ((h1 - h0) * (w1 - w0))
            for hh in range(h0, h1):
                for ww in range(w0, w1):
                    P[oh * sa + ow, hh * W + ww] = val
    return np.ascontiguousarray(P.T)


def _nearest_up_matrix(H, W, sa):
    """(sa*sa, H*W): nearest-neighbour upsample of an (sa, sa) map to (H, W)."""
    N = np.zeros((sa * sa, H * W), np.float32)
    for y in range(H):
        sy = min((y * sa) // H, sa - 1)
        for x in range(W):
            sx = min((x * sa) // W, sa - 1)
            N[sy * sa + sx, y * W + x] = 1.0
    return N


def _tap_masks(H, W, B):
    """(9, B*H*W) 0/1 validity masks for the 3x3 taps (conv zero padding)."""
    HW = H * W
    taps = [(oy, ox) for oy in (-1, 0, 1) for ox in (-1, 0, 1)]
    ys, xs = np.divmod(np.arange(HW), W)
    m = np.zeros((9, B * HW), np.float32)
    for t, (oy, ox) in enumerate(taps):
        valid = ((ys + oy >= 0) & (ys + oy < H) &
                 (xs + ox >= 0) & (xs + ox < W)).astype(np.float32)
        m[t] = np.tile(valid, B)
    return m


def _seg_bcast_matrix(H, W, B):
    """(B, B*H*W): broadcast a per-sample scalar to that sample's lanes."""
    return np.kron(np.eye(B, dtype=np.float32), np.ones((1, H * W), np.float32))


# ----------------------------------------------------------------------------
# fused kernel: upsample+pad+concat, BN/IN+LeakyReLU, two 3x3 convs,
#               selector, attention apply -- whole batch in one invocation
# ----------------------------------------------------------------------------
def _make_skup_kernel(B, H, W, C1, C2, Cout, hidden):
    HW = H * W
    BHW = B * HW
    Cin = C1 + C2
    taps = [(oy, ox) for oy in (-1, 0, 1) for ox in (-1, 0, 1)]

    def kernel(x1_ref, x2_ref, up_ref, segT_ref, masks_ref,
               w1_ref, w2_ref, b1_ref, b2_ref,
               poolT_ref, nup_ref, wfcT_ref, wa1T_ref, ba1_ref,
               wa2T_ref, ba2_ref, out_ref):
        # ---- bilinear x2 upsample (+pad) of x1 as one matmul; concat with skip x2
        x1u = _mm(x1_ref[...], up_ref[...])                     # (C1, BHW)
        x = jnp.concatenate([x2_ref[...], x1u], axis=0)         # (Cin, BHW), x2 first

        # ---- normalization statistics, computed in-kernel (no HBM round trip)
        xsq = x * x
        in_sum_parts, in_sq_parts = [], []
        for b in range(B):
            sl = slice(b * HW, (b + 1) * HW)                    # 256-lane aligned
            in_sum_parts.append(jnp.sum(x[:, sl], axis=1, keepdims=True))
            in_sq_parts.append(jnp.sum(xsq[:, sl], axis=1, keepdims=True))
        in_sum = jnp.concatenate(in_sum_parts, axis=1)          # (Cin, B)
        in_sq = jnp.concatenate(in_sq_parts, axis=1)            # (Cin, B)

        # BatchNorm (batch stats over B*H*W, biased var, gamma=1 / beta=0)
        bn_sum = jnp.sum(in_sum, axis=1, keepdims=True)         # (Cin, 1)
        bn_sq = jnp.sum(in_sq, axis=1, keepdims=True)
        bn_mean = bn_sum * (1.0 / BHW)
        bn_var = jnp.maximum(bn_sq * (1.0 / BHW) - bn_mean * bn_mean, 0.0)
        bn_scale = lax.rsqrt(bn_var + EPS)                      # (Cin, 1)

        # InstanceNorm (per-sample stats, biased var, no affine)
        in_mean = in_sum * (1.0 / HW)                           # (Cin, B)
        in_var = jnp.maximum(in_sq * (1.0 / HW) - in_mean * in_mean, 0.0)
        in_scale = lax.rsqrt(in_var + EPS)                      # (Cin, B)
        segT = segT_ref[...]                                    # (B, BHW)
        in_scale_map = jnp.dot(in_scale, segT, preferred_element_type=jnp.float32)
        in_shift_map = jnp.dot(-in_mean * in_scale, segT, preferred_element_type=jnp.float32)

        f = (x - bn_mean) * bn_scale                            # BN branch -> conv1
        f = jnp.where(f >= 0.0, f, LEAKY_SLOPE * f)
        s = x * in_scale_map + in_shift_map                     # IN branch -> conv2
        s = jnp.where(s >= 0.0, s, LEAKY_SLOPE * s)

        # ---- two 3x3 convs as 9-tap accumulation (no materialized im2col concat)
        masks = masks_ref[...]                                  # (9, BHW) 0/1
        acc1 = jnp.zeros((Cout, BHW), jnp.float32)
        acc2 = jnp.zeros((Cout, BHW), jnp.float32)
        for t, (oy, ox) in enumerate(taps):
            d = oy * W + ox
            if d == 0:
                tf, ts = f, s
            else:
                m = masks[t:t + 1, :]
                shift = (-d) % BHW
                tf = pltpu.roll(f, shift, axis=1) * m
                ts = pltpu.roll(s, shift, axis=1) * m
            acc1 = acc1 + _mm(w1_ref[t], tf)                    # (Cout, Cin)@(Cin, BHW)
            acc2 = acc2 + _mm(w2_ref[t], ts)
        out1 = acc1 + b1_ref[...]
        out2 = acc2 + b2_ref[...]
        o_sum = out1 + out2

        # ---- Selector per sample (B is tiny & static): adaptive 4x4 avg-pool ->
        #      Linear(no bias)+ReLU -> two Linear heads -> pairwise softmax ->
        #      nearest upsample of the attention maps -> weighted sum
        poolT = poolT_ref[...]                                  # (HW, 16)
        nup = nup_ref[...]                                      # (16, HW)
        for b in range(B):
            sl = slice(b * HW, (b + 1) * HW)
            pooled = jnp.dot(o_sum[:, sl], poolT,
                             preferred_element_type=jnp.float32)   # (Cout, 16)
            # hvec = relu(flatten(pooled, order (c, sh, sw)) @ fc_w.T) without a
            # cross-tile reshape: accumulate per-channel row x weight-row-block.
            hvec = jnp.zeros((1, hidden), jnp.float32)
            for c in range(Cout):
                hvec = hvec + _mm(pooled[c:c + 1, :],
                                  wfcT_ref[c * SA2:(c + 1) * SA2, :])
            hvec = jnp.maximum(hvec, 0.0)                       # (1, hidden)
            a1 = _mm(hvec, wa1T_ref[...]) + ba1_ref[...]        # (1, Cout*16)
            a2 = _mm(hvec, wa2T_ref[...]) + ba2_ref[...]
            mx = jnp.maximum(a1, a2)
            e1 = jnp.exp(a1 - mx)
            e2 = jnp.exp(a2 - mx)
            inv = 1.0 / (e1 + e2)
            at1 = e1 * inv
            at2 = e2 * inv
            # nearest upsample, one channel row at a time (no reshape)
            rows1 = [jnp.dot(at1[:, c * SA2:(c + 1) * SA2], nup,
                             preferred_element_type=jnp.float32) for c in range(Cout)]
            rows2 = [jnp.dot(at2[:, c * SA2:(c + 1) * SA2], nup,
                             preferred_element_type=jnp.float32) for c in range(Cout)]
            att1f = jnp.concatenate(rows1, axis=0)              # (Cout, HW)
            att2f = jnp.concatenate(rows2, axis=0)
            out_ref[:, sl] = out1[:, sl] * att1f + out2[:, sl] * att2f

    return kernel


# ----------------------------------------------------------------------------
# parameters & forward wrapper
# ----------------------------------------------------------------------------
def init_params(key, in_channels, out_channels, reduction):
    C = out_channels
    sel_in = C * SA2
    hidden = sel_in // reduction
    keys = jax.random.split(key, 9)
    conv1_w = jax.random.normal(keys[0], (C, in_channels, 3, 3), jnp.float32) * 0.1
    conv1_b = jax.random.normal(keys[1], (C,), jnp.float32) * 0.05
    conv2_w = jax.random.normal(keys[2], (C, in_channels, 3, 3), jnp.float32) * 0.1
    conv2_b = jax.random.normal(keys[3], (C,), jnp.float32) * 0.05
    fc_w = jax.random.normal(keys[4], (hidden, sel_in), jnp.float32) * 0.1
    att1_w = jax.random.normal(keys[5], (sel_in, hidden), jnp.float32) * 0.1
    att1_b = jax.random.normal(keys[6], (sel_in,), jnp.float32) * 0.05
    att2_w = jax.random.normal(keys[7], (sel_in, hidden), jnp.float32) * 0.1
    att2_b = jax.random.normal(keys[8], (sel_in,), jnp.float32) * 0.05

    # conv weights in per-tap layout (9, Cout, Cin); tap t = ky*3 + kx
    w1 = jnp.transpose(conv1_w, (2, 3, 0, 1)).reshape(9, C, in_channels)
    w2 = jnp.transpose(conv2_w, (2, 3, 0, 1)).reshape(9, C, in_channels)
    return dict(
        w1=w1, w2=w2,
        b1=conv1_b.reshape(C, 1), b2=conv2_b.reshape(C, 1),
        wfcT=jnp.transpose(fc_w),              # (sel_in, hidden)
        wa1T=jnp.transpose(att1_w),            # (hidden, sel_in)
        wa2T=jnp.transpose(att2_w),
        ba1=att1_b.reshape(1, sel_in),
        ba2=att2_b.reshape(1, sel_in),
    )


def sk_up_forward(params, x1, x2):
    """x1 (low-res), x2 (skip) in NCHW; returns NCHW (B, out_channels, H, W)."""
    B, C1, h, w = x1.shape
    _, C2, H, W = x2.shape
    Cout = params['b1'].shape[0]
    hidden = params['wfcT'].shape[1]
    HW, hw = H * W, h * w
    BHW = B * HW

    # pad offsets (torch's floor-division semantics; negative == crop)
    diffY, diffX = H - 2 * h, W - 2 * w
    pad_top, pad_left = diffY // 2, diffX // 2

    # trace-time constants
    upT = _up_pad_matrix_T(H, W, h, w, pad_top, pad_left)              # (hw, HW)
    up_bd = jnp.asarray(np.kron(np.eye(B, dtype=np.float32), upT))     # (B*hw, BHW)
    poolT = jnp.asarray(_pool_matrix_T(H, W, SA))                      # (HW, 16)
    nup = jnp.asarray(_nearest_up_matrix(H, W, SA))                    # (16, HW)
    segT = jnp.asarray(_seg_bcast_matrix(H, W, B))                     # (B, BHW)
    masks = jnp.asarray(_tap_masks(H, W, B))                           # (9, BHW)

    # lane-dense (channel, batch*spatial) layouts; transposes are layout plumbing
    x1l = jnp.transpose(x1, (1, 0, 2, 3)).reshape(C1, B * hw)
    x2l = jnp.transpose(x2, (1, 0, 2, 3)).reshape(C2, BHW)

    kernel = _make_skup_kernel(B, H, W, C1, C2, Cout, hidden)
    out = pl.pallas_call(
        kernel,
        out_shape=jax.ShapeDtypeStruct((Cout, BHW), jnp.float32),
    )(x1l, x2l, up_bd, segT, masks,
      params['w1'], params['w2'], params['b1'], params['b2'],
      poolT, nup, params['wfcT'], params['wa1T'], params['ba1'],
      params['wa2T'], params['ba2'])

    return jnp.transpose(out.reshape(Cout, B, H, W), (1, 0, 2, 3))


if __name__ == "__main__":
    key = jax.random.PRNGKey(0)
    k1, k2, kp = jax.random.split(key, 3)

    # SKUp hyperparams for the synthetic check:
    #   kernel_size=3, padding=1, bias=True, reduction=4,
    #   in_channels=8 (= C(x2) + C(x1)), out_channels=4, bilinear=True
    B = 2
    C_half = 4
    H, W = 16, 16
    in_channels = 2 * C_half
    out_channels = 4
    reduction = 4

    x1 = jax.random.normal(k1, (B, C_half, H // 2, W // 2), jnp.float32)  # low-res feature
    x2 = jax.random.normal(k2, (B, C_half, H, W), jnp.float32)            # skip connection

    params = init_params(kp, in_channels, out_channels, reduction)

    fwd = jax.jit(sk_up_forward)
    out = jax.block_until_ready(fwd(params, x1, x2))
    assert out.shape == (B, out_channels, H, W), out.shape
    assert bool(jnp.all(jnp.isfinite(out)))
    print("KERNEL_OK")
</pallas_src>

<mosaic_0001>
module attributes {stable_mosaic.version = 11 : i64} {
  func.func @kernel(%arg0: memref<4x128xf32, #tpu.memory_space<vmem>>, %arg1: memref<4x512xf32, #tpu.memory_space<vmem>>, %arg2: memref<128x512xf32, #tpu.memory_space<vmem>>, %arg3: memref<2x512xf32, #tpu.memory_space<vmem>>, %arg4: memref<9x512xf32, #tpu.memory_space<vmem>>, %arg5: memref<9x4x8xf32, #tpu.memory_space<vmem>>, %arg6: memref<9x4x8xf32, #tpu.memory_space<vmem>>, %arg7: memref<4x1xf32, #tpu.memory_space<vmem>>, %arg8: memref<4x1xf32, #tpu.memory_space<vmem>>, %arg9: memref<256x16xf32, #tpu.memory_space<vmem>>, %arg10: memref<16x256xf32, #tpu.memory_space<vmem>>, %arg11: memref<64x16xf32, #tpu.memory_space<vmem>>, %arg12: memref<16x64xf32, #tpu.memory_space<vmem>>, %arg13: memref<1x64xf32, #tpu.memory_space<vmem>>, %arg14: memref<16x64xf32, #tpu.memory_space<vmem>>, %arg15: memref<1x64xf32, #tpu.memory_space<vmem>>, %arg16: memref<4x512xf32, #tpu.memory_space<vmem>>) attributes {dimension_semantics = [], scalar_prefetch = 0 : i64, scratch_operands = 0 : i64, tpu.core_type = #tpu.core_type<tc>} {
    %c0 = arith.constant 0 : index
    %c0_0 = arith.constant 0 : index
    %0 = vector.load %arg0[%c0, %c0_0] : memref<4x128xf32, #tpu.memory_space<vmem>>, vector<4x128xf32>
    %c0_1 = arith.constant 0 : index
    %c0_2 = arith.constant 0 : index
    %1 = vector.load %arg2[%c0_1, %c0_2] : memref<128x512xf32, #tpu.memory_space<vmem>>, vector<128x512xf32>
    %cst = arith.constant dense<0.000000e+00> : vector<4x512xf32>
    %2 = tpu.matmul %0, %1, %cst {dimension_numbers = #tpu.dot_dimension_numbers<[1], [0], [0], [1], [0, 0, 1, 1], [], []>} : vector<4x128xf32>, vector<128x512xf32>, vector<4x512xf32> -> vector<4x512xf32>
    %c0_3 = arith.constant 0 : index
    %c0_4 = arith.constant 0 : index
    %3 = vector.load %arg1[%c0_3, %c0_4] : memref<4x512xf32, #tpu.memory_space<vmem>>, vector<4x512xf32>
    %4 = tpu.concatenate %3, %2 in 0 : vector<4x512xf32>, vector<4x512xf32> -> vector<8x512xf32>
    %5 = arith.mulf %4, %4 : vector<8x512xf32>
    %6 = vector.extract_strided_slice %4 {offsets = [0, 0], sizes = [8, 256], strides = [1, 1]} : vector<8x512xf32> to vector<8x256xf32>
    %cst_5 = arith.constant dense<0.000000e+00> : vector<8xf32>
    %7 = vector.multi_reduction <add>, %6, %cst_5 [1] : vector<8x256xf32> to vector<8xf32>
    %8 = vector.shape_cast %7 : vector<8xf32> to vector<8x1xf32>
    %9 = vector.extract_strided_slice %5 {offsets = [0, 0], sizes = [8, 256], strides = [1, 1]} : vector<8x512xf32> to vector<8x256xf32>
    %cst_6 = arith.constant dense<0.000000e+00> : vector<8xf32>
    %10 = vector.multi_reduction <add>, %9, %cst_6 [1] : vector<8x256xf32> to vector<8xf32>
    %11 = vector.shape_cast %10 : vector<8xf32> to vector<8x1xf32>
    %12 = vector.extract_strided_slice %4 {offsets = [0, 256], sizes = [8, 256], strides = [1, 1]} : vector<8x512xf32> to vector<8x256xf32>
    %cst_7 = arith.constant dense<0.000000e+00> : vector<8xf32>
    %13 = vector.multi_reduction <add>, %12, %cst_7 [1] : vector<8x256xf32> to vector<8xf32>
    %14 = vector.shape_cast %13 : vector<8xf32> to vector<8x1xf32>
    %15 = vector.extract_strided_slice %5 {offsets = [0, 256], sizes = [8, 256], strides = [1, 1]} : vector<8x512xf32> to vector<8x256xf32>
    %cst_8 = arith.constant dense<0.000000e+00> : vector<8xf32>
    %16 = vector.multi_reduction <add>, %15, %cst_8 [1] : vector<8x256xf32> to vector<8xf32>
    %17 = vector.shape_cast %16 : vector<8xf32> to vector<8x1xf32>
    %18 = tpu.concatenate %8, %14 in 1 : vector<8x1xf32>, vector<8x1xf32> -> vector<8x2xf32>
    %19 = tpu.concatenate %11, %17 in 1 : vector<8x1xf32>, vector<8x1xf32> -> vector<8x2xf32>
    %cst_9 = arith.constant dense<0.000000e+00> : vector<8xf32>
    %20 = vector.multi_reduction <add>, %18, %cst_9 [1] : vector<8x2xf32> to vector<8xf32>
    %21 = vector.shape_cast %20 : vector<8xf32> to vector<8x1xf32>
    %cst_10 = arith.constant dense<0.000000e+00> : vector<8xf32>
    %22 = vector.multi_reduction <add>, %19, %cst_10 [1] : vector<8x2xf32> to vector<8xf32>
    %23 = vector.shape_cast %22 : vector<8xf32> to vector<8x1xf32>
    %cst_11 = arith.constant 0.001953125 : f32
    %24 = vector.broadcast %cst_11 : f32 to vector<8x1xf32>
    %25 = arith.mulf %21, %24 : vector<8x1xf32>
    %cst_12 = arith.constant 0.001953125 : f32
    %26 = vector.broadcast %cst_12 : f32 to vector<8x1xf32>
    %27 = arith.mulf %23, %26 : vector<8x1xf32>
    %28 = arith.mulf %25, %25 : vector<8x1xf32>
    %29 = arith.subf %27, %28 : vector<8x1xf32>
    %cst_13 = arith.constant 0.000000e+00 : f32
    %30 = vector.broadcast %cst_13 : f32 to vector<8x1xf32>
    %31 = arith.maximumf %29, %30 : vector<8x1xf32>
    %cst_14 = arith.constant 9.99999974E-6 : f32
    %32 = vector.broadcast %cst_14 : f32 to vector<8x1xf32>
    %33 = arith.addf %31, %32 : vector<8x1xf32>
    %34 = math.rsqrt %33 : vector<8x1xf32>
    %cst_15 = arith.constant 3.906250e-03 : f32
    %35 = vector.broadcast %cst_15 : f32 to vector<8x2xf32>
    %36 = arith.mulf %18, %35 : vector<8x2xf32>
    %cst_16 = arith.constant 3.906250e-03 : f32
    %37 = vector.broadcast %cst_16 : f32 to vector<8x2xf32>
    %38 = arith.mulf %19, %37 : vector<8x2xf32>
    %39 = arith.mulf %36, %36 : vector<8x2xf32>
    %40 = arith.subf %38, %39 : vector<8x2xf32>
    %cst_17 = arith.constant 0.000000e+00 : f32
    %41 = vector.broadcast %cst_17 : f32 to vector<8x2xf32>
    %42 = arith.maximumf %40, %41 : vector<8x2xf32>
    %cst_18 = arith.constant 9.99999974E-6 : f32
    %43 = vector.broadcast %cst_18 : f32 to vector<8x2xf32>
    %44 = arith.addf %42, %43 : vector<8x2xf32>
    %45 = math.rsqrt %44 : vector<8x2xf32>
    %c0_19 = arith.constant 0 : index
    %c0_20 = arith.constant 0 : index
    %46 = vector.load %arg3[%c0_19, %c0_20] : memref<2x512xf32, #tpu.memory_space<vmem>>, vector<2x512xf32>
    %cst_21 = arith.constant dense<0.000000e+00> : vector<8x512xf32>
    %47 = tpu.matmul %45, %46, %cst_21 {dimension_numbers = #tpu.dot_dimension_numbers<[1], [0], [0], [1], [0, 0, 1, 1], [], []>} : vector<8x2xf32>, vector<2x512xf32>, vector<8x512xf32> -> vector<8x512xf32>
    %cst_22 = arith.constant 0.000000e+00 : f32
    %48 = vector.broadcast %cst_22 : f32 to vector<8x2xf32>
    %49 = arith.subf %48, %36 : vector<8x2xf32>
    %50 = arith.mulf %49, %45 : vector<8x2xf32>
    %cst_23 = arith.constant dense<0.000000e+00> : vector<8x512xf32>
    %51 = tpu.matmul %50, %46, %cst_23 {dimension_numbers = #tpu.dot_dimension_numbers<[1], [0], [0], [1], [0, 0, 1, 1], [], []>} : vector<8x2xf32>, vector<2x512xf32>, vector<8x512xf32> -> vector<8x512xf32>
    %52 = vector.broadcast %25 : vector<8x1xf32> to vector<8x512xf32>
    %53 = arith.subf %4, %52 : vector<8x512xf32>
    %54 = vector.broadcast %34 : vector<8x1xf32> to vector<8x512xf32>
    %55 = arith.mulf %53, %54 : vector<8x512xf32>
    %cst_24 = arith.constant 0.000000e+00 : f32
    %56 = vector.broadcast %cst_24 : f32 to vector<8x512xf32>
    %57 = arith.cmpf oge, %55, %56 : vector<8x512xf32>
    %cst_25 = arith.constant 0.00999999977 : f32
    %58 = vector.broadcast %cst_25 : f32 to vector<8x512xf32>
    %59 = arith.mulf %58, %55 : vector<8x512xf32>
    %60 = arith.select %57, %55, %59 : vector<8x512xi1>, vector<8x512xf32>
    %61 = arith.mulf %4, %47 : vector<8x512xf32>
    %62 = arith.addf %61, %51 : vector<8x512xf32>
    %cst_26 = arith.constant 0.000000e+00 : f32
    %63 = vector.broadcast %cst_26 : f32 to vector<8x512xf32>
    %64 = arith.cmpf oge, %62, %63 : vector<8x512xf32>
    %cst_27 = arith.constant 0.00999999977 : f32
    %65 = vector.broadcast %cst_27 : f32 to vector<8x512xf32>
    %66 = arith.mulf %65, %62 : vector<8x512xf32>
    %67 = arith.select %64, %62, %66 : vector<8x512xi1>, vector<8x512xf32>
    %c0_28 = arith.constant 0 : index
    %c0_29 = arith.constant 0 : index
    %68 = vector.load %arg4[%c0_28, %c0_29] : memref<9x512xf32, #tpu.memory_space<vmem>>, vector<9x512xf32>
    %cst_30 = arith.constant 0.000000e+00 : f32
    %69 = vector.broadcast %cst_30 : f32 to vector<4x512xf32>
    %cst_31 = arith.constant 0.000000e+00 : f32
    %70 = vector.broadcast %cst_31 : f32 to vector<4x512xf32>
    %71 = vector.extract_strided_slice %68 {offsets = [0, 0], sizes = [1, 512], strides = [1, 1]} : vector<9x512xf32> to vector<1x512xf32>
    %c17_i32 = arith.constant 17 : i32
    %72 = tpu.dynamic_rotate %60 by %c17_i32 dim 1 : vector<8x512xf32>, i32 -> vector<8x512xf32>
    %73 = vector.broadcast %71 : vector<1x512xf32> to vector<8x512xf32>
    %74 = arith.mulf %72, %73 : vector<8x512xf32>
    %c17_i32_32 = arith.constant 17 : i32
    %75 = tpu.dynamic_rotate %67 by %c17_i32_32 dim 1 : vector<8x512xf32>, i32 -> vector<8x512xf32>
    %76 = vector.broadcast %71 : vector<1x512xf32> to vector<8x512xf32>
    %77 = arith.mulf %75, %76 : vector<8x512xf32>
    %c0_33 = arith.constant 0 : index
    %c0_34 = arith.constant 0 : index
    %c0_35 = arith.constant 0 : index
    %78 = vector.load %arg5[%c0_33, %c0_34, %c0_35] : memref<9x4x8xf32, #tpu.memory_space<vmem>>, vector<1x4x8xf32>
    %79 = vector.shape_cast %78 : vector<1x4x8xf32> to vector<4x8xf32>
    %cst_36 = arith.constant dense<0.000000e+00> : vector<4x512xf32>
    %80 = tpu.matmul %79, %74, %cst_36 {dimension_numbers = #tpu.dot_dimension_numbers<[1], [0], [0], [1], [0, 0, 1, 1], [], []>} : vector<4x8xf32>, vector<8x512xf32>, vector<4x512xf32> -> vector<4x512xf32>
    %81 = arith.addf %69, %80 : vector<4x512xf32>
    %c0_37 = arith.constant 0 : index
    %c0_38 = arith.constant 0 : index
    %c0_39 = arith.constant 0 : index
    %82 = vector.load %arg6[%c0_37, %c0_38, %c0_39] : memref<9x4x8xf32, #tpu.memory_space<vmem>>, vector<1x4x8xf32>
    %83 = vector.shape_cast %82 : vector<1x4x8xf32> to vector<4x8xf32>
    %cst_40 = arith.constant dense<0.000000e+00> : vector<4x512xf32>
    %84 = tpu.matmul %83, %77, %cst_40 {dimension_numbers = #tpu.dot_dimension_numbers<[1], [0], [0], [1], [0, 0, 1, 1], [], []>} : vector<4x8xf32>, vector<8x512xf32>, vector<4x512xf32> -> vector<4x512xf32>
    %85 = arith.addf %70, %84 : vector<4x512xf32>
    %86 = vector.extract_strided_slice %68 {offsets = [1, 0], sizes = [1, 512], strides = [1, 1]} : vector<9x512xf32> to vector<1x512xf32>
    %c16_i32 = arith.constant 16 : i32
    %87 = tpu.dynamic_rotate %60 by %c16_i32 dim 1 : vector<8x512xf32>, i32 -> vector<8x512xf32>
    %88 = vector.broadcast %86 : vector<1x512xf32> to vector<8x512xf32>
    %89 = arith.mulf %87, %88 : vector<8x512xf32>
    %c16_i32_41 = arith.constant 16 : i32
    %90 = tpu.dynamic_rotate %67 by %c16_i32_41 dim 1 : vector<8x512xf32>, i32 -> vector<8x512xf32>
    %91 = vector.broadcast %86 : vector<1x512xf32> to vector<8x512xf32>
    %92 = arith.mulf %90, %91 : vector<8x512xf32>
    %c1 = arith.constant 1 : index
    %c0_42 = arith.constant 0 : index
    %c0_43 = arith.constant 0 : index
    %93 = vector.load %arg5[%c1, %c0_42, %c0_43] : memref<9x4x8xf32, #tpu.memory_space<vmem>>, vector<1x4x8xf32>
    %94 = vector.shape_cast %93 : vector<1x4x8xf32> to vector<4x8xf32>
    %cst_44 = arith.constant dense<0.000000e+00> : vector<4x512xf32>
    %95 = tpu.matmul %94, %89, %cst_44 {dimension_numbers = #tpu.dot_dimension_numbers<[1], [0], [0], [1], [0, 0, 1, 1], [], []>} : vector<4x8xf32>, vector<8x512xf32>, vector<4x512xf32> -> vector<4x512xf32>
    %96 = arith.addf %81, %95 : vector<4x512xf32>
    %c1_45 = arith.constant 1 : index
    %c0_46 = arith.constant 0 : index
    %c0_47 = arith.constant 0 : index
    %97 = vector.load %arg6[%c1_45, %c0_46, %c0_47] : memref<9x4x8xf32, #tpu.memory_space<vmem>>, vector<1x4x8xf32>
    %98 = vector.shape_cast %97 : vector<1x4x8xf32> to vector<4x8xf32>
    %cst_48 = arith.constant dense<0.000000e+00> : vector<4x512xf32>
    %99 = tpu.matmul %98, %92, %cst_48 {dimension_numbers = #tpu.dot_dimension_numbers<[1], [0], [0], [1], [0, 0, 1, 1], [], []>} : vector<4x8xf32>, vector<8x512xf32>, vector<4x512xf32> -> vector<4x512xf32>
    %100 = arith.addf %85, %99 : vector<4x512xf32>
    %101 = vector.extract_strided_slice %68 {offsets = [2, 0], sizes = [1, 512], strides = [1, 1]} : vector<9x512xf32> to vector<1x512xf32>
    %c15_i32 = arith.constant 15 : i32
    %102 = tpu.dynamic_rotate %60 by %c15_i32 dim 1 : vector<8x512xf32>, i32 -> vector<8x512xf32>
    %103 = vector.broadcast %101 : vector<1x512xf32> to vector<8x512xf32>
    %104 = arith.mulf %102, %103 : vector<8x512xf32>
    %c15_i32_49 = arith.constant 15 : i32
    %105 = tpu.dynamic_rotate %67 by %c15_i32_49 dim 1 : vector<8x512xf32>, i32 -> vector<8x512xf32>
    %106 = vector.broadcast %101 : vector<1x512xf32> to vector<8x512xf32>
    %107 = arith.mulf %105, %106 : vector<8x512xf32>
    %c2 = arith.constant 2 : index
    %c0_50 = arith.constant 0 : index
    %c0_51 = arith.constant 0 : index
    %108 = vector.load %arg5[%c2, %c0_50, %c0_51] : memref<9x4x8xf32, #tpu.memory_space<vmem>>, vector<1x4x8xf32>
    %109 = vector.shape_cast %108 : vector<1x4x8xf32> to vector<4x8xf32>
    %cst_52 = arith.constant dense<0.000000e+00> : vector<4x512xf32>
    %110 = tpu.matmul %109, %104, %cst_52 {dimension_numbers = #tpu.dot_dimension_numbers<[1], [0], [0], [1], [0, 0, 1, 1], [], []>} : vector<4x8xf32>, vector<8x512xf32>, vector<4x512xf32> -> vector<4x512xf32>
    %111 = arith.addf %96, %110 : vector<4x512xf32>
    %c2_53 = arith.constant 2 : index
    %c0_54 = arith.constant 0 : index
    %c0_55 = arith.constant 0 : index
    %112 = vector.load %arg6[%c2_53, %c0_54, %c0_55] : memref<9x4x8xf32, #tpu.memory_space<vmem>>, vector<1x4x8xf32>
    %113 = vector.shape_cast %112 : vector<1x4x8xf32> to vector<4x8xf32>
    %cst_56 = arith.constant dense<0.000000e+00> : vector<4x512xf32>
    %114 = tpu.matmul %113, %107, %cst_56 {dimension_numbers = #tpu.dot_dimension_numbers<[1], [0], [0], [1], [0, 0, 1, 1], [], []>} : vector<4x8xf32>, vector<8x512xf32>, vector<4x512xf32> -> vector<4x512xf32>
    %115 = arith.addf %100, %114 : vector<4x512xf32>
    %116 = vector.extract_strided_slice %68 {offsets = [3, 0], sizes = [1, 512], strides = [1, 1]} : vector<9x512xf32> to vector<1x512xf32>
    %c1_i32 = arith.constant 1 : i32
    %117 = tpu.dynamic_rotate %60 by %c1_i32 dim 1 : vector<8x512xf32>, i32 -> vector<8x512xf32>
    %118 = vector.broadcast %116 : vector<1x512xf32> to vector<8x512xf32>
    %119 = arith.mulf %117, %118 : vector<8x512xf32>
    %c1_i32_57 = arith.constant 1 : i32
    %120 = tpu.dynamic_rotate %67 by %c1_i32_57 dim 1 : vector<8x512xf32>, i32 -> vector<8x512xf32>
    %121 = vector.broadcast %116 : vector<1x512xf32> to vector<8x512xf32>
    %122 = arith.mulf %120, %121 : vector<8x512xf32>
    %c3 = arith.constant 3 : index
    %c0_58 = arith.constant 0 : index
    %c0_59 = arith.constant 0 : index
    %123 = vector.load %arg5[%c3, %c0_58, %c0_59] : memref<9x4x8xf32, #tpu.memory_space<vmem>>, vector<1x4x8xf32>
    %124 = vector.shape_cast %123 : vector<1x4x8xf32> to vector<4x8xf32>
    %cst_60 = arith.constant dense<0.000000e+00> : vector<4x512xf32>
    %125 = tpu.matmul %124, %119, %cst_60 {dimension_numbers = #tpu.dot_dimension_numbers<[1], [0], [0], [1], [0, 0, 1, 1], [], []>} : vector<4x8xf32>, vector<8x512xf32>, vector<4x512xf32> -> vector<4x512xf32>
    %126 = arith.addf %111, %125 : vector<4x512xf32>
    %c3_61 = arith.constant 3 : index
    %c0_62 = arith.constant 0 : index
    %c0_63 = arith.constant 0 : index
    %127 = vector.load %arg6[%c3_61, %c0_62, %c0_63] : memref<9x4x8xf32, #tpu.memory_space<vmem>>, vector<1x4x8xf32>
    %128 = vector.shape_cast %127 : vector<1x4x8xf32> to vector<4x8xf32>
    %cst_64 = arith.constant dense<0.000000e+00> : vector<4x512xf32>
    %129 = tpu.matmul %128, %122, %cst_64 {dimension_numbers = #tpu.dot_dimension_numbers<[1], [0], [0], [1], [0, 0, 1, 1], [], []>} : vector<4x8xf32>, vector<8x512xf32>, vector<4x512xf32> -> vector<4x512xf32>
    %130 = arith.addf %115, %129 : vector<4x512xf32>
    %c4 = arith.constant 4 : index
    %c0_65 = arith.constant 0 : index
    %c0_66 = arith.constant 0 : index
    %131 = vector.load %arg5[%c4, %c0_65, %c0_66] : memref<9x4x8xf32, #tpu.memory_space<vmem>>, vector<1x4x8xf32>
    %132 = vector.shape_cast %131 : vector<1x4x8xf32> to vector<4x8xf32>
    %cst_67 = arith.constant dense<0.000000e+00> : vector<4x512xf32>
    %133 = tpu.matmul %132, %60, %cst_67 {dimension_numbers = #tpu.dot_dimension_numbers<[1], [0], [0], [1], [0, 0, 1, 1], [], []>} : vector<4x8xf32>, vector<8x512xf32>, vector<4x512xf32> -> vector<4x512xf32>
    %134 = arith.addf %126, %133 : vector<4x512xf32>
    %c4_68 = arith.constant 4 : index
    %c0_69 = arith.constant 0 : index
    %c0_70 = arith.constant 0 : index
    %135 = vector.load %arg6[%c4_68, %c0_69, %c0_70] : memref<9x4x8xf32, #tpu.memory_space<vmem>>, vector<1x4x8xf32>
    %136 = vector.shape_cast %135 : vector<1x4x8xf32> to vector<4x8xf32>
    %cst_71 = arith.constant dense<0.000000e+00> : vector<4x512xf32>
    %137 = tpu.matmul %136, %67, %cst_71 {dimension_numbers = #tpu.dot_dimension_numbers<[1], [0], [0], [1], [0, 0, 1, 1], [], []>} : vector<4x8xf32>, vector<8x512xf32>, vector<4x512xf32> -> vector<4x512xf32>
    %138 = arith.addf %130, %137 : vector<4x512xf32>
    %139 = vector.extract_strided_slice %68 {offsets = [5, 0], sizes = [1, 512], strides = [1, 1]} : vector<9x512xf32> to vector<1x512xf32>
    %c511_i32 = arith.constant 511 : i32
    %140 = tpu.dynamic_rotate %60 by %c511_i32 dim 1 : vector<8x512xf32>, i32 -> vector<8x512xf32>
    %141 = vector.broadcast %139 : vector<1x512xf32> to vector<8x512xf32>
    %142 = arith.mulf %140, %141 : vector<8x512xf32>
    %c511_i32_72 = arith.constant 511 : i32
    %143 = tpu.dynamic_rotate %67 by %c511_i32_72 dim 1 : vector<8x512xf32>, i32 -> vector<8x512xf32>
    %144 = vector.broadcast %139 : vector<1x512xf32> to vector<8x512xf32>
    %145 = arith.mulf %143, %144 : vector<8x512xf32>
    %c5 = arith.constant 5 : index
    %c0_73 = arith.constant 0 : index
    %c0_74 = arith.constant 0 : index
    %146 = vector.load %arg5[%c5, %c0_73, %c0_74] : memref<9x4x8xf32, #tpu.memory_space<vmem>>, vector<1x4x8xf32>
    %147 = vector.shape_cast %146 : vector<1x4x8xf32> to vector<4x8xf32>
    %cst_75 = arith.constant dense<0.000000e+00> : vector<4x512xf32>
    %148 = tpu.matmul %147, %142, %cst_75 {dimension_numbers = #tpu.dot_dimension_numbers<[1], [0], [0], [1], [0, 0, 1, 1], [], []>} : vector<4x8xf32>, vector<8x512xf32>, vector<4x512xf32> -> vector<4x512xf32>
    %149 = arith.addf %134, %148 : vector<4x512xf32>
    %c5_76 = arith.constant 5 : index
    %c0_77 = arith.constant 0 : index
    %c0_78 = arith.constant 0 : index
    %150 = vector.load %arg6[%c5_76, %c0_77, %c0_78] : memref<9x4x8xf32, #tpu.memory_space<vmem>>, vector<1x4x8xf32>
    %151 = vector.shape_cast %150 : vector<1x4x8xf32> to vector<4x8xf32>
    %cst_79 = arith.constant dense<0.000000e+00> : vector<4x512xf32>
    %152 = tpu.matmul %151, %145, %cst_79 {dimension_numbers = #tpu.dot_dimension_numbers<[1], [0], [0], [1], [0, 0, 1, 1], [], []>} : vector<4x8xf32>, vector<8x512xf32>, vector<4x512xf32> -> vector<4x512xf32>
    %153 = arith.addf %138, %152 : vector<4x512xf32>
    %154 = vector.extract_strided_slice %68 {offsets = [6, 0], sizes = [1, 512], strides = [1, 1]} : vector<9x512xf32> to vector<1x512xf32>
    %c497_i32 = arith.constant 497 : i32
    %155 = tpu.dynamic_rotate %60 by %c497_i32 dim 1 : vector<8x512xf32>, i32 -> vector<8x512xf32>
    %156 = vector.broadcast %154 : vector<1x512xf32> to vector<8x512xf32>
    %157 = arith.mulf %155, %156 : vector<8x512xf32>
    %c497_i32_80 = arith.constant 497 : i32
    %158 = tpu.dynamic_rotate %67 by %c497_i32_80 dim 1 : vector<8x512xf32>, i32 -> vector<8x512xf32>
    %159 = vector.broadcast %154 : vector<1x512xf32> to vector<8x512xf32>
    %160 = arith.mulf %158, %159 : vector<8x512xf32>
    %c6 = arith.constant 6 : index
    %c0_81 = arith.constant 0 : index
    %c0_82 = arith.constant 0 : index
    %161 = vector.load %arg5[%c6, %c0_81, %c0_82] : memref<9x4x8xf32, #tpu.memory_space<vmem>>, vector<1x4x8xf32>
    %162 = vector.shape_cast %161 : vector<1x4x8xf32> to vector<4x8xf32>
    %cst_83 = arith.constant dense<0.000000e+00> : vector<4x512xf32>
    %163 = tpu.matmul %162, %157, %cst_83 {dimension_numbers = #tpu.dot_dimension_numbers<[1], [0], [0], [1], [0, 0, 1, 1], [], []>} : vector<4x8xf32>, vector<8x512xf32>, vector<4x512xf32> -> vector<4x512xf32>
    %164 = arith.addf %149, %163 : vector<4x512xf32>
    %c6_84 = arith.constant 6 : index
    %c0_85 = arith.constant 0 : index
    %c0_86 = arith.constant 0 : index
    %165 = vector.load %arg6[%c6_84, %c0_85, %c0_86] : memref<9x4x8xf32, #tpu.memory_space<vmem>>, vector<1x4x8xf32>
    %166 = vector.shape_cast %165 : vector<1x4x8xf32> to vector<4x8xf32>
    %cst_87 = arith.constant dense<0.000000e+00> : vector<4x512xf32>
    %167 = tpu.matmul %166, %160, %cst_87 {dimension_numbers = #tpu.dot_dimension_numbers<[1], [0], [0], [1], [0, 0, 1, 1], [], []>} : vector<4x8xf32>, vector<8x512xf32>, vector<4x512xf32> -> vector<4x512xf32>
    %168 = arith.addf %153, %167 : vector<4x512xf32>
    %169 = vector.extract_strided_slice %68 {offsets = [7, 0], sizes = [1, 512], strides = [1, 1]} : vector<9x512xf32> to vector<1x512xf32>
    %c496_i32 = arith.constant 496 : i32
    %170 = tpu.dynamic_rotate %60 by %c496_i32 dim 1 : vector<8x512xf32>, i32 -> vector<8x512xf32>
    %171 = vector.broadcast %169 : vector<1x512xf32> to vector<8x512xf32>
    %172 = arith.mulf %170, %171 : vector<8x512xf32>
    %c496_i32_88 = arith.constant 496 : i32
    %173 = tpu.dynamic_rotate %67 by %c496_i32_88 dim 1 : vector<8x512xf32>, i32 -> vector<8x512xf32>
    %174 = vector.broadcast %169 : vector<1x512xf32> to vector<8x512xf32>
    %175 = arith.mulf %173, %174 : vector<8x512xf32>
    %c7 = arith.constant 7 : index
    %c0_89 = arith.constant 0 : index
    %c0_90 = arith.constant 0 : index
    %176 = vector.load %arg5[%c7, %c0_89, %c0_90] : memref<9x4x8xf32, #tpu.memory_space<vmem>>, vector<1x4x8xf32>
    %177 = vector.shape_cast %176 : vector<1x4x8xf32> to vector<4x8xf32>
    %cst_91 = arith.constant dense<0.000000e+00> : vector<4x512xf32>
    %178 = tpu.matmul %177, %172, %cst_91 {dimension_numbers = #tpu.dot_dimension_numbers<[1], [0], [0], [1], [0, 0, 1, 1], [], []>} : vector<4x8xf32>, vector<8x512xf32>, vector<4x512xf32> -> vector<4x512xf32>
    %179 = arith.addf %164, %178 : vector<4x512xf32>
    %c7_92 = arith.constant 7 : index
    %c0_93 = arith.constant 0 : index
    %c0_94 = arith.constant 0 : index
    %180 = vector.load %arg6[%c7_92, %c0_93, %c0_94] : memref<9x4x8xf32, #tpu.memory_space<vmem>>, vector<1x4x8xf32>
    %181 = vector.shape_cast %180 : vector<1x4x8xf32> to vector<4x8xf32>
    %cst_95 = arith.constant dense<0.000000e+00> : vector<4x512xf32>
    %182 = tpu.matmul %181, %175, %cst_95 {dimension_numbers = #tpu.dot_dimension_numbers<[1], [0], [0], [1], [0, 0, 1, 1], [], []>} : vector<4x8xf32>, vector<8x512xf32>, vector<4x512xf32> -> vector<4x512xf32>
    %183 = arith.addf %168, %182 : vector<4x512xf32>
    %184 = vector.extract_strided_slice %68 {offsets = [8, 0], sizes = [1, 512], strides = [1, 1]} : vector<9x512xf32> to vector<1x512xf32>
    %c495_i32 = arith.constant 495 : i32
    %185 = tpu.dynamic_rotate %60 by %c495_i32 dim 1 : vector<8x512xf32>, i32 -> vector<8x512xf32>
    %186 = vector.broadcast %184 : vector<1x512xf32> to vector<8x512xf32>
    %187 = arith.mulf %185, %186 : vector<8x512xf32>
    %c495_i32_96 = arith.constant 495 : i32
    %188 = tpu.dynamic_rotate %67 by %c495_i32_96 dim 1 : vector<8x512xf32>, i32 -> vector<8x512xf32>
    %189 = vector.broadcast %184 : vector<1x512xf32> to vector<8x512xf32>
    %190 = arith.mulf %188, %189 : vector<8x512xf32>
    %c8 = arith.constant 8 : index
    %c0_97 = arith.constant 0 : index
    %c0_98 = arith.constant 0 : index
    %191 = vector.load %arg5[%c8, %c0_97, %c0_98] : memref<9x4x8xf32, #tpu.memory_space<vmem>>, vector<1x4x8xf32>
    %192 = vector.shape_cast %191 : vector<1x4x8xf32> to vector<4x8xf32>
    %cst_99 = arith.constant dense<0.000000e+00> : vector<4x512xf32>
    %193 = tpu.matmul %192, %187, %cst_99 {dimension_numbers = #tpu.dot_dimension_numbers<[1], [0], [0], [1], [0, 0, 1, 1], [], []>} : vector<4x8xf32>, vector<8x512xf32>, vector<4x512xf32> -> vector<4x512xf32>
    %194 = arith.addf %179, %193 : vector<4x512xf32>
    %c8_100 = arith.constant 8 : index
    %c0_101 = arith.constant 0 : index
    %c0_102 = arith.constant 0 : index
    %195 = vector.load %arg6[%c8_100, %c0_101, %c0_102] : memref<9x4x8xf32, #tpu.memory_space<vmem>>, vector<1x4x8xf32>
    %196 = vector.shape_cast %195 : vector<1x4x8xf32> to vector<4x8xf32>
    %cst_103 = arith.constant dense<0.000000e+00> : vector<4x512xf32>
    %197 = tpu.matmul %196, %190, %cst_103 {dimension_numbers = #tpu.dot_dimension_numbers<[1], [0], [0], [1], [0, 0, 1, 1], [], []>} : vector<4x8xf32>, vector<8x512xf32>, vector<4x512xf32> -> vector<4x512xf32>
    %198 = arith.addf %183, %197 : vector<4x512xf32>
    %c0_104 = arith.constant 0 : index
    %c0_105 = arith.constant 0 : index
    %199 = vector.load %arg7[%c0_104, %c0_105] : memref<4x1xf32, #tpu.memory_space<vmem>>, vector<4x1xf32>
    %200 = vector.broadcast %199 : vector<4x1xf32> to vector<4x512xf32>
    %201 = arith.addf %194, %200 : vector<4x512xf32>
    %c0_106 = arith.constant 0 : index
    %c0_107 = arith.constant 0 : index
    %202 = vector.load %arg8[%c0_106, %c0_107] : memref<4x1xf32, #tpu.memory_space<vmem>>, vector<4x1xf32>
    %203 = vector.broadcast %202 : vector<4x1xf32> to vector<4x512xf32>
    %204 = arith.addf %198, %203 : vector<4x512xf32>
    %205 = arith.addf %201, %204 : vector<4x512xf32>
    %c0_108 = arith.constant 0 : index
    %c0_109 = arith.constant 0 : index
    %206 = vector.load %arg9[%c0_108, %c0_109] : memref<256x16xf32, #tpu.memory_space<vmem>>, vector<256x16xf32>
    %c0_110 = arith.constant 0 : index
    %c0_111 = arith.constant 0 : index
    %207 = vector.load %arg10[%c0_110, %c0_111] : memref<16x256xf32, #tpu.memory_space<vmem>>, vector<16x256xf32>
    %208 = vector.extract_strided_slice %205 {offsets = [0, 0], sizes = [4, 256], strides = [1, 1]} : vector<4x512xf32> to vector<4x256xf32>
    %cst_112 = arith.constant dense<0.000000e+00> : vector<4x16xf32>
    %209 = tpu.matmul %208, %206, %cst_112 {dimension_numbers = #tpu.dot_dimension_numbers<[1], [0], [0], [1], [0, 0, 1, 1], [], []>} : vector<4x256xf32>, vector<256x16xf32>, vector<4x16xf32> -> vector<4x16xf32>
    %cst_113 = arith.constant 0.000000e+00 : f32
    %210 = vector.broadcast %cst_113 : f32 to vector<1x16xf32>
    %211 = vector.extract_strided_slice %209 {offsets = [0, 0], sizes = [1, 16], strides = [1, 1]} : vector<4x16xf32> to vector<1x16xf32>
    %c0_114 = arith.constant 0 : index
    %c0_115 = arith.constant 0 : index
    %212 = vector.load %arg11[%c0_114, %c0_115] : memref<64x16xf32, #tpu.memory_space<vmem>>, vector<16x16xf32>
    %cst_116 = arith.constant dense<0.000000e+00> : vector<1x16xf32>
    %213 = tpu.matmul %211, %212, %cst_116 {dimension_numbers = #tpu.dot_dimension_numbers<[1], [0], [0], [1], [0, 0, 1, 1], [], []>} : vector<1x16xf32>, vector<16x16xf32>, vector<1x16xf32> -> vector<1x16xf32>
    %214 = arith.addf %210, %213 : vector<1x16xf32>
    %215 = vector.extract_strided_slice %209 {offsets = [1, 0], sizes = [1, 16], strides = [1, 1]} : vector<4x16xf32> to vector<1x16xf32>
    %c16 = arith.constant 16 : index
    %c0_117 = arith.constant 0 : index
    %216 = vector.load %arg11[%c16, %c0_117] : memref<64x16xf32, #tpu.memory_space<vmem>>, vector<16x16xf32>
    %cst_118 = arith.constant dense<0.000000e+00> : vector<1x16xf32>
    %217 = tpu.matmul %215, %216, %cst_118 {dimension_numbers = #tpu.dot_dimension_numbers<[1], [0], [0], [1], [0, 0, 1, 1], [], []>} : vector<1x16xf32>, vector<16x16xf32>, vector<1x16xf32> -> vector<1x16xf32>
    %218 = arith.addf %214, %217 : vector<1x16xf32>
    %219 = vector.extract_strided_slice %209 {offsets = [2, 0], sizes = [1, 16], strides = [1, 1]} : vector<4x16xf32> to vector<1x16xf32>
    %c32 = arith.constant 32 : index
    %c0_119 = arith.constant 0 : index
    %220 = vector.load %arg11[%c32, %c0_119] : memref<64x16xf32, #tpu.memory_space<vmem>>, vector<16x16xf32>
    %cst_120 = arith.constant dense<0.000000e+00> : vector<1x16xf32>
    %221 = tpu.matmul %219, %220, %cst_120 {dimension_numbers = #tpu.dot_dimension_numbers<[1], [0], [0], [1], [0, 0, 1, 1], [], []>} : vector<1x16xf32>, vector<16x16xf32>, vector<1x16xf32> -> vector<1x16xf32>
    %222 = arith.addf %218, %221 : vector<1x16xf32>
    %223 = vector.extract_strided_slice %209 {offsets = [3, 0], sizes = [1, 16], strides = [1, 1]} : vector<4x16xf32> to vector<1x16xf32>
    %c48 = arith.constant 48 : index
    %c0_121 = arith.constant 0 : index
    %224 = vector.load %arg11[%c48, %c0_121] : memref<64x16xf32, #tpu.memory_space<vmem>>, vector<16x16xf32>
    %cst_122 = arith.constant dense<0.000000e+00> : vector<1x16xf32>
    %225 = tpu.matmul %223, %224, %cst_122 {dimension_numbers = #tpu.dot_dimension_numbers<[1], [0], [0], [1], [0, 0, 1, 1], [], []>} : vector<1x16xf32>, vector<16x16xf32>, vector<1x16xf32> -> vector<1x16xf32>
    %226 = arith.addf %222, %225 : vector<1x16xf32>
    %cst_123 = arith.constant 0.000000e+00 : f32
    %227 = vector.broadcast %cst_123 : f32 to vector<1x16xf32>
    %228 = arith.maximumf %226, %227 : vector<1x16xf32>
    %c0_124 = arith.constant 0 : index
    %c0_125 = arith.constant 0 : index
    %229 = vector.load %arg12[%c0_124, %c0_125] : memref<16x64xf32, #tpu.memory_space<vmem>>, vector<16x64xf32>
    %cst_126 = arith.constant dense<0.000000e+00> : vector<1x64xf32>
    %230 = tpu.matmul %228, %229, %cst_126 {dimension_numbers = #tpu.dot_dimension_numbers<[1], [0], [0], [1], [0, 0, 1, 1], [], []>} : vector<1x16xf32>, vector<16x64xf32>, vector<1x64xf32> -> vector<1x64xf32>
    %c0_127 = arith.constant 0 : index
    %c0_128 = arith.constant 0 : index
    %231 = vector.load %arg13[%c0_127, %c0_128] : memref<1x64xf32, #tpu.memory_space<vmem>>, vector<1x64xf32>
    %232 = arith.addf %230, %231 : vector<1x64xf32>
    %c0_129 = arith.constant 0 : index
    %c0_130 = arith.constant 0 : index
    %233 = vector.load %arg14[%c0_129, %c0_130] : memref<16x64xf32, #tpu.memory_space<vmem>>, vector<16x64xf32>
    %cst_131 = arith.constant dense<0.000000e+00> : vector<1x64xf32>
    %234 = tpu.matmul %228, %233, %cst_131 {dimension_numbers = #tpu.dot_dimension_numbers<[1], [0], [0], [1], [0, 0, 1, 1], [], []>} : vector<1x16xf32>, vector<16x64xf32>, vector<1x64xf32> -> vector<1x64xf32>
    %c0_132 = arith.constant 0 : index
    %c0_133 = arith.constant 0 : index
    %235 = vector.load %arg15[%c0_132, %c0_133] : memref<1x64xf32, #tpu.memory_space<vmem>>, vector<1x64xf32>
    %236 = arith.addf %234, %235 : vector<1x64xf32>
    %237 = arith.maximumf %232, %236 : vector<1x64xf32>
    %238 = arith.subf %232, %237 : vector<1x64xf32>
    %239 = math.exp %238 : vector<1x64xf32>
    %240 = arith.subf %236, %237 : vector<1x64xf32>
    %241 = math.exp %240 : vector<1x64xf32>
    %242 = arith.addf %239, %241 : vector<1x64xf32>
    %cst_134 = arith.constant 1.000000e+00 : f32
    %243 = vector.broadcast %cst_134 : f32 to vector<1x64xf32>
    %244 = arith.divf %243, %242 : vector<1x64xf32>
    %245 = arith.mulf %239, %244 : vector<1x64xf32>
    %246 = arith.mulf %241, %244 : vector<1x64xf32>
    %247 = vector.extract_strided_slice %245 {offsets = [0, 0], sizes = [1, 16], strides = [1, 1]} : vector<1x64xf32> to vector<1x16xf32>
    %cst_135 = arith.constant dense<0.000000e+00> : vector<1x256xf32>
    %248 = tpu.matmul %247, %207, %cst_135 {dimension_numbers = #tpu.dot_dimension_numbers<[1], [0], [0], [1], [0, 0, 1, 1], [], []>} : vector<1x16xf32>, vector<16x256xf32>, vector<1x256xf32> -> vector<1x256xf32>
    %249 = vector.extract_strided_slice %245 {offsets = [0, 16], sizes = [1, 16], strides = [1, 1]} : vector<1x64xf32> to vector<1x16xf32>
    %cst_136 = arith.constant dense<0.000000e+00> : vector<1x256xf32>
    %250 = tpu.matmul %249, %207, %cst_136 {dimension_numbers = #tpu.dot_dimension_numbers<[1], [0], [0], [1], [0, 0, 1, 1], [], []>} : vector<1x16xf32>, vector<16x256xf32>, vector<1x256xf32> -> vector<1x256xf32>
    %251 = vector.extract_strided_slice %245 {offsets = [0, 32], sizes = [1, 16], strides = [1, 1]} : vector<1x64xf32> to vector<1x16xf32>
    %cst_137 = arith.constant dense<0.000000e+00> : vector<1x256xf32>
    %252 = tpu.matmul %251, %207, %cst_137 {dimension_numbers = #tpu.dot_dimension_numbers<[1], [0], [0], [1], [0, 0, 1, 1], [], []>} : vector<1x16xf32>, vector<16x256xf32>, vector<1x256xf32> -> vector<1x256xf32>
    %253 = vector.extract_strided_slice %245 {offsets = [0, 48], sizes = [1, 16], strides = [1, 1]} : vector<1x64xf32> to vector<1x16xf32>
    %cst_138 = arith.constant dense<0.000000e+00> : vector<1x256xf32>
    %254 = tpu.matmul %253, %207, %cst_138 {dimension_numbers = #tpu.dot_dimension_numbers<[1], [0], [0], [1], [0, 0, 1, 1], [], []>} : vector<1x16xf32>, vector<16x256xf32>, vector<1x256xf32> -> vector<1x256xf32>
    %255 = vector.extract_strided_slice %246 {offsets = [0, 0], sizes = [1, 16], strides = [1, 1]} : vector<1x64xf32> to vector<1x16xf32>
    %cst_139 = arith.constant dense<0.000000e+00> : vector<1x256xf32>
    %256 = tpu.matmul %255, %207, %cst_139 {dimension_numbers = #tpu.dot_dimension_numbers<[1], [0], [0], [1], [0, 0, 1, 1], [], []>} : vector<1x16xf32>, vector<16x256xf32>, vector<1x256xf32> -> vector<1x256xf32>
    %257 = vector.extract_strided_slice %246 {offsets = [0, 16], sizes = [1, 16], strides = [1, 1]} : vector<1x64xf32> to vector<1x16xf32>
    %cst_140 = arith.constant dense<0.000000e+00> : vector<1x256xf32>
    %258 = tpu.matmul %257, %207, %cst_140 {dimension_numbers = #tpu.dot_dimension_numbers<[1], [0], [0], [1], [0, 0, 1, 1], [], []>} : vector<1x16xf32>, vector<16x256xf32>, vector<1x256xf32> -> vector<1x256xf32>
    %259 = vector.extract_strided_slice %246 {offsets = [0, 32], sizes = [1, 16], strides = [1, 1]} : vector<1x64xf32> to vector<1x16xf32>
    %cst_141 = arith.constant dense<0.000000e+00> : vector<1x256xf32>
    %260 = tpu.matmul %259, %207, %cst_141 {dimension_numbers = #tpu.dot_dimension_numbers<[1], [0], [0], [1], [0, 0, 1, 1], [], []>} : vector<1x16xf32>, vector<16x256xf32>, vector<1x256xf32> -> vector<1x256xf32>
    %261 = vector.extract_strided_slice %246 {offsets = [0, 48], sizes = [1, 16], strides = [1, 1]} : vector<1x64xf32> to vector<1x16xf32>
    %cst_142 = arith.constant dense<0.000000e+00> : vector<1x256xf32>
    %262 = tpu.matmul %261, %207, %cst_142 {dimension_numbers = #tpu.dot_dimension_numbers<[1], [0], [0], [1], [0, 0, 1, 1], [], []>} : vector<1x16xf32>, vector<16x256xf32>, vector<1x256xf32> -> vector<1x256xf32>
    %263 = tpu.concatenate %248, %250, %252, %254 in 0 : vector<1x256xf32>, vector<1x256xf32>, vector<1x256xf32>, vector<1x256xf32> -> vector<4x256xf32>
    %264 = tpu.concatenate %256, %258, %260, %262 in 0 : vector<1x256xf32>, vector<1x256xf32>, vector<1x256xf32>, vector<1x256xf32> -> vector<4x256xf32>
    %265 = vector.extract_strided_slice %201 {offsets = [0, 0], sizes = [4, 256], strides = [1, 1]} : vector<4x512xf32> to vector<4x256xf32>
    %266 = arith.mulf %265, %263 : vector<4x256xf32>
    %267 = vector.extract_strided_slice %204 {offsets = [0, 0], sizes = [4, 256], strides = [1, 1]} : vector<4x512xf32> to vector<4x256xf32>
    %268 = arith.mulf %267, %264 : vector<4x256xf32>
    %269 = arith.addf %266, %268 : vector<4x256xf32>
    %c0_143 = arith.constant 0 : index
    %c0_144 = arith.constant 0 : index
    %270 = vector.load %arg16[%c0_143, %c0_144] : memref<4x512xf32, #tpu.memory_space<vmem>>, vector<4x256xf32>
    tpu.vector_store %arg16[%c0_143, %c0_144], %269 {strides = array<i32>} : memref<4x512xf32, #tpu.memory_space<vmem>>, vector<4x256xf32>,
    %271 = vector.extract_strided_slice %205 {offsets = [0, 256], sizes = [4, 256], strides = [1, 1]} : vector<4x512xf32> to vector<4x256xf32>
    %cst_145 = arith.constant dense<0.000000e+00> : vector<4x16xf32>
    %272 = tpu.matmul %271, %206, %cst_145 {dimension_numbers = #tpu.dot_dimension_numbers<[1], [0], [0], [1], [0, 0, 1, 1], [], []>} : vector<4x256xf32>, vector<256x16xf32>, vector<4x16xf32> -> vector<4x16xf32>
    %cst_146 = arith.constant 0.000000e+00 : f32
    %273 = vector.broadcast %cst_146 : f32 to vector<1x16xf32>
    %274 = vector.extract_strided_slice %272 {offsets = [0, 0], sizes = [1, 16], strides = [1, 1]} : vector<4x16xf32> to vector<1x16xf32>
    %c0_147 = arith.constant 0 : index
    %c0_148 = arith.constant 0 : index
    %275 = vector.load %arg11[%c0_147, %c0_148] : memref<64x16xf32, #tpu.memory_space<vmem>>, vector<16x16xf32>
    %cst_149 = arith.constant dense<0.000000e+00> : vector<1x16xf32>
    %276 = tpu.matmul %274, %275, %cst_149 {dimension_numbers = #tpu.dot_dimension_numbers<[1], [0], [0], [1], [0, 0, 1, 1], [], []>} : vector<1x16xf32>, vector<16x16xf32>, vector<1x16xf32> -> vector<1x16xf32>
    %277 = arith.addf %273, %276 : vector<1x16xf32>
    %278 = vector.extract_strided_slice %272 {offsets = [1, 0], sizes = [1, 16], strides = [1, 1]} : vector<4x16xf32> to vector<1x16xf32>
    %c16_150 = arith.constant 16 : index
    %c0_151 = arith.constant 0 : index
    %279 = vector.load %arg11[%c16_150, %c0_151] : memref<64x16xf32, #tpu.memory_space<vmem>>, vector<16x16xf32>
    %cst_152 = arith.constant dense<0.000000e+00> : vector<1x16xf32>
    %280 = tpu.matmul %278, %279, %cst_152 {dimension_numbers = #tpu.dot_dimension_numbers<[1], [0], [0], [1], [0, 0, 1, 1], [], []>} : vector<1x16xf32>, vector<16x16xf32>, vector<1x16xf32> -> vector<1x16xf32>
    %281 = arith.addf %277, %280 : vector<1x16xf32>
    %282 = vector.extract_strided_slice %272 {offsets = [2, 0], sizes = [1, 16], strides = [1, 1]} : vector<4x16xf32> to vector<1x16xf32>
    %c32_153 = arith.constant 32 : index
    %c0_154 = arith.constant 0 : index
    %283 = vector.load %arg11[%c32_153, %c0_154] : memref<64x16xf32, #tpu.memory_space<vmem>>, vector<16x16xf32>
    %cst_155 = arith.constant dense<0.000000e+00> : vector<1x16xf32>
    %284 = tpu.matmul %282, %283, %cst_155 {dimension_numbers = #tpu.dot_dimension_numbers<[1], [0], [0], [1], [0, 0, 1, 1], [], []>} : vector<1x16xf32>, vector<16x16xf32>, vector<1x16xf32> -> vector<1x16xf32>
    %285 = arith.addf %281, %284 : vector<1x16xf32>
    %286 = vector.extract_strided_slice %272 {offsets = [3, 0], sizes = [1, 16], strides = [1, 1]} : vector<4x16xf32> to vector<1x16xf32>
    %c48_156 = arith.constant 48 : index
    %c0_157 = arith.constant 0 : index
    %287 = vector.load %arg11[%c48_156, %c0_157] : memref<64x16xf32, #tpu.memory_space<vmem>>, vector<16x16xf32>
    %cst_158 = arith.constant dense<0.000000e+00> : vector<1x16xf32>
    %288 = tpu.matmul %286, %287, %cst_158 {dimension_numbers = #tpu.dot_dimension_numbers<[1], [0], [0], [1], [0, 0, 1, 1], [], []>} : vector<1x16xf32>, vector<16x16xf32>, vector<1x16xf32> -> vector<1x16xf32>
    %289 = arith.addf %285, %288 : vector<1x16xf32>
    %cst_159 = arith.constant 0.000000e+00 : f32
    %290 = vector.broadcast %cst_159 : f32 to vector<1x16xf32>
    %291 = arith.maximumf %289, %290 : vector<1x16xf32>
    %c0_160 = arith.constant 0 : index
    %c0_161 = arith.constant 0 : index
    %292 = vector.load %arg12[%c0_160, %c0_161] : memref<16x64xf32, #tpu.memory_space<vmem>>, vector<16x64xf32>
    %cst_162 = arith.constant dense<0.000000e+00> : vector<1x64xf32>
    %293 = tpu.matmul %291, %292, %cst_162 {dimension_numbers = #tpu.dot_dimension_numbers<[1], [0], [0], [1], [0, 0, 1, 1], [], []>} : vector<1x16xf32>, vector<16x64xf32>, vector<1x64xf32> -> vector<1x64xf32>
    %c0_163 = arith.constant 0 : index
    %c0_164 = arith.constant 0 : index
    %294 = vector.load %arg13[%c0_163, %c0_164] : memref<1x64xf32, #tpu.memory_space<vmem>>, vector<1x64xf32>
    %295 = arith.addf %293, %294 : vector<1x64xf32>
    %c0_165 = arith.constant 0 : index
    %c0_166 = arith.constant 0 : index
    %296 = vector.load %arg14[%c0_165, %c0_166] : memref<16x64xf32, #tpu.memory_space<vmem>>, vector<16x64xf32>
    %cst_167 = arith.constant dense<0.000000e+00> : vector<1x64xf32>
    %297 = tpu.matmul %291, %296, %cst_167 {dimension_numbers = #tpu.dot_dimension_numbers<[1], [0], [0], [1], [0, 0, 1, 1], [], []>} : vector<1x16xf32>, vector<16x64xf32>, vector<1x64xf32> -> vector<1x64xf32>
    %c0_168 = arith.constant 0 : index
    %c0_169 = arith.constant 0 : index
    %298 = vector.load %arg15[%c0_168, %c0_169] : memref<1x64xf32, #tpu.memory_space<vmem>>, vector<1x64xf32>
    %299 = arith.addf %297, %298 : vector<1x64xf32>
    %300 = arith.maximumf %295, %299 : vector<1x64xf32>
    %301 = arith.subf %295, %300 : vector<1x64xf32>
    %302 = math.exp %301 : vector<1x64xf32>
    %303 = arith.subf %299, %300 : vector<1x64xf32>
    %304 = math.exp %303 : vector<1x64xf32>
    %305 = arith.addf %302, %304 : vector<1x64xf32>
    %cst_170 = arith.constant 1.000000e+00 : f32
    %306 = vector.broadcast %cst_170 : f32 to vector<1x64xf32>
    %307 = arith.divf %306, %305 : vector<1x64xf32>
    %308 = arith.mulf %302, %307 : vector<1x64xf32>
    %309 = arith.mulf %304, %307 : vector<1x64xf32>
    %310 = vector.extract_strided_slice %308 {offsets = [0, 0], sizes = [1, 16], strides = [1, 1]} : vector<1x64xf32> to vector<1x16xf32>
    %cst_171 = arith.constant dense<0.000000e+00> : vector<1x256xf32>
    %311 = tpu.matmul %310, %207, %cst_171 {dimension_numbers = #tpu.dot_dimension_numbers<[1], [0], [0], [1], [0, 0, 1, 1], [], []>} : vector<1x16xf32>, vector<16x256xf32>, vector<1x256xf32> -> vector<1x256xf32>
    %312 = vector.extract_strided_slice %308 {offsets = [0, 16], sizes = [1, 16], strides = [1, 1]} : vector<1x64xf32> to vector<1x16xf32>
    %cst_172 = arith.constant dense<0.000000e+00> : vector<1x256xf32>
    %313 = tpu.matmul %312, %207, %cst_172 {dimension_numbers = #tpu.dot_dimension_numbers<[1], [0], [0], [1], [0, 0, 1, 1], [], []>} : vector<1x16xf32>, vector<16x256xf32>, vector<1x256xf32> -> vector<1x256xf32>
    %314 = vector.extract_strided_slice %308 {offsets = [0, 32], sizes = [1, 16], strides = [1, 1]} : vector<1x64xf32> to vector<1x16xf32>
    %cst_173 = arith.constant dense<0.000000e+00> : vector<1x256xf32>
    %315 = tpu.matmul %314, %207, %cst_173 {dimension_numbers = #tpu.dot_dimension_numbers<[1], [0], [0], [1], [0, 0, 1, 1], [], []>} : vector<1x16xf32>, vector<16x256xf32>, vector<1x256xf32> -> vector<1x256xf32>
    %316 = vector.extract_strided_slice %308 {offsets = [0, 48], sizes = [1, 16], strides = [1, 1]} : vector<1x64xf32> to vector<1x16xf32>
    %cst_174 = arith.constant dense<0.000000e+00> : vector<1x256xf32>
    %317 = tpu.matmul %316, %207, %cst_174 {dimension_numbers = #tpu.dot_dimension_numbers<[1], [0], [0], [1], [0, 0, 1, 1], [], []>} : vector<1x16xf32>, vector<16x256xf32>, vector<1x256xf32> -> vector<1x256xf32>
    %318 = vector.extract_strided_slice %309 {offsets = [0, 0], sizes = [1, 16], strides = [1, 1]} : vector<1x64xf32> to vector<1x16xf32>
    %cst_175 = arith.constant dense<0.000000e+00> : vector<1x256xf32>
    %319 = tpu.matmul %318, %207, %cst_175 {dimension_numbers = #tpu.dot_dimension_numbers<[1], [0], [0], [1], [0, 0, 1, 1], [], []>} : vector<1x16xf32>, vector<16x256xf32>, vector<1x256xf32> -> vector<1x256xf32>
    %320 = vector.extract_strided_slice %309 {offsets = [0, 16], sizes = [1, 16], strides = [1, 1]} : vector<1x64xf32> to vector<1x16xf32>
    %cst_176 = arith.constant dense<0.000000e+00> : vector<1x256xf32>
    %321 = tpu.matmul %320, %207, %cst_176 {dimension_numbers = #tpu.dot_dimension_numbers<[1], [0], [0], [1], [0, 0, 1, 1], [], []>} : vector<1x16xf32>, vector<16x256xf32>, vector<1x256xf32> -> vector<1x256xf32>
    %322 = vector.extract_strided_slice %309 {offsets = [0, 32], sizes = [1, 16], strides = [1, 1]} : vector<1x64xf32> to vector<1x16xf32>
    %cst_177 = arith.constant dense<0.000000e+00> : vector<1x256xf32>
    %323 = tpu.matmul %322, %207, %cst_177 {dimension_numbers = #tpu.dot_dimension_numbers<[1], [0], [0], [1], [0, 0, 1, 1], [], []>} : vector<1x16xf32>, vector<16x256xf32>, vector<1x256xf32> -> vector<1x256xf32>
    %324 = vector.extract_strided_slice %309 {offsets = [0, 48], sizes = [1, 16], strides = [1, 1]} : vector<1x64xf32> to vector<1x16xf32>
    %cst_178 = arith.constant dense<0.000000e+00> : vector<1x256xf32>
    %325 = tpu.matmul %324, %207, %cst_178 {dimension_numbers = #tpu.dot_dimension_numbers<[1], [0], [0], [1], [0, 0, 1, 1], [], []>} : vector<1x16xf32>, vector<16x256xf32>, vector<1x256xf32> -> vector<1x256xf32>
    %326 = tpu.concatenate %311, %313, %315, %317 in 0 : vector<1x256xf32>, vector<1x256xf32>, vector<1x256xf32>, vector<1x256xf32> -> vector<4x256xf32>
    %327 = tpu.concatenate %319, %321, %323, %325 in 0 : vector<1x256xf32>, vector<1x256xf32>, vector<1x256xf32>, vector<1x256xf32> -> vector<4x256xf32>
    %328 = vector.extract_strided_slice %201 {offsets = [0, 256], sizes = [4, 256], strides = [1, 1]} : vector<4x512xf32> to vector<4x256xf32>
    %329 = arith.mulf %328, %326 : vector<4x256xf32>
    %330 = vector.extract_strided_slice %204 {offsets = [0, 256], sizes = [4, 256], strides = [1, 1]} : vector<4x512xf32> to vector<4x256xf32>
    %331 = arith.mulf %330, %327 : vector<4x256xf32>
    %332 = arith.addf %329, %331 : vector<4x256xf32>
    %c0_179 = arith.constant 0 : index
    %c256 = arith.constant 256 : index
    %333 = vector.load %arg16[%c0_179, %c256] : memref<4x512xf32, #tpu.memory_space<vmem>>, vector<4x256xf32>
    tpu.vector_store %arg16[%c0_179, %c256], %332 {strides = array<i32>} : memref<4x512xf32, #tpu.memory_space<vmem>>, vector<4x256xf32>,
    return
  }
}

</mosaic_0001>

<bundles_post_ra>
// kernel: sk_up_forward.1
= control target key start
LH: loop header
LB: loop body
LE: loop exit
PB: predicated region body
PF: predicated region fallthrough
CT: control target
= control target key end

     0   :  { %s8455_s0 = inlined_call_operand.vmem [shape: f32[4,128], index: 0, kind: input, shape index: {}]   ;;  %s8456_s1 = inlined_call_operand.vmem [shape: f32[4,512], index: 1, kind: input, shape index: {}]   ;;  %s8457_s2 = inlined_call_operand.vmem [shape: f32[128,512], index: 2, kind: input, shape index: {}]   ;;  %s8458_s3 = inlined_call_operand.hbm [shape: f32[2,512], index: 3, kind: input, shape index: {}]   ;;  %s8459_s4 = inlined_call_operand.vmem [shape: f32[9,512], index: 4, kind: input, shape index: {}]   ;;  %s8460_s5 = inlined_call_operand.vmem [shape: f32[9,4,8], index: 5, kind: input, shape index: {}]   ;;  %s8461_s6 = inlined_call_operand.vmem [shape: f32[9,4,8], index: 6, kind: input, shape index: {}]   ;;  %s8462_s7 = inlined_call_operand.vmem [shape: f32[4,1], index: 7, kind: input, shape index: {}]   ;;  %s8463_s8 = inlined_call_operand.vmem [shape: f32[4,1], index: 8, kind: input, shape index: {}]   ;;  %s8464_s9 = inlined_call_operand.vmem [shape: f32[256,16], index: 9, kind: input, shape index: {}]   ;;  %s8465_s10 = inlined_call_operand.hbm [shape: f32[16,256], index: 10, kind: input, shape index: {}]   ;;  %s8466_s11 = inlined_call_operand.vmem [shape: f32[64,16], index: 11, kind: input, shape index: {}]   ;;  %s8467_s12 = inlined_call_operand.hbm [shape: f32[16,64], index: 12, kind: input, shape index: {}]   ;;  %s8468_s13 = inlined_call_operand.vmem [shape: f32[1,64], index: 13, kind: input, shape index: {}]   ;;  %s8469_s14 = inlined_call_operand.hbm [shape: f32[16,64], index: 14, kind: input, shape index: {}]   ;;  %s8470_s15 = inlined_call_operand.vmem [shape: f32[1,64], index: 15, kind: input, shape index: {}]   ;;  %s8471_s16 = inlined_call_operand.vmem [shape: f32[4,512], index: 16, kind: output, shape index: {}]  }
   0x1   :  { %8509 = sst [smem:[#allocation32_spill]] %s8455_s0 }
   0x2   :  { %21 = vsyncpa [#allocation3], 0 }
   0x3   :  { %22 = vsyncpa [#allocation5], 0 }
   0x4   :  { %23 = vsyncpa [#allocation8], 0  ;;  %s6707_s21 = smov [#allocation4]  }
   0x5   :  { %s57_s22 = sshll.u32 %s6707_s21, 4  ;;  %s58_s22 = int_to_ptr.vmem [resolvable:$true] %s57_s22 }
   0x6   :  { %s6629_s23 = scalar_lea.vmem %s58_s22, 512  ;;  %p6634_p1 = scmp.lt.s32.totalorder %s58_s22, %s58_s22 }
   0x7   :  { %p6630_p0 = scmp.ne.s32.totalorder %s58_s22, %s6629_s23  ;;  %p6635_p2 = scmp.lt.s32.totalorder %s6629_s23, %s6629_s23 }
   0x9   :  { %p6636_p3 = por %p6635_p2, %p6634_p1 }
   0xb   :  { %p6637_p4 = pnand %p6636_p3, %p6630_p0 }
   0xd   :  { %6640 = shalt.err (!%p6637_p4)
}
   0xe   :  { %s6708_s24 = smov 256   ;;  %s6709_s25 = smov 16  }
   0xf   :  { %63 = dma.hbm_to_vmem [thread:$0]  %s8465_s10, 512, %s58_s22, [#allocation5], %s6708_s24, %s6708_s24, %s6709_s25  }
  0x10   :  { %s6710_s28 = smov [#allocation2]   ;;  %s6711_s30 = smov [#allocation6]  }
  0x11   :  { %s36_s29 = sshll.u32 %s6710_s28, 4  ;;  %s71_s0 = sshll.u32 %s6711_s30, 4  ;;  %s37_s29 = int_to_ptr.vmem [resolvable:$true] %s36_s29  ;;  %s72_s0 = int_to_ptr.vmem [resolvable:$true] %s71_s0 }
  0x12   :  { %s6649_s17 = scalar_lea.vmem %s37_s29, 128  ;;  %p6654_p6 = scmp.lt.s32.totalorder %s37_s29, %s37_s29 }
  0x13   :  { %p6650_p5 = scmp.ne.s32.totalorder %s37_s29, %s6649_s17  ;;  %p6655_p7 = scmp.lt.s32.totalorder %s6649_s17, %s6649_s17 }
  0x15   :  { %p6656_p8 = por %p6655_p7, %p6654_p6 }
  0x17   :  { %p6657_p9 = pnand %p6656_p8, %p6650_p5 }
  0x19   :  { %6660 = shalt.err (!%p6657_p9)
}
  0x1a   :  { %39 = dma.hbm_to_vmem [thread:$0]  %s8458_s3, 128, %s37_s29, [#allocation3]  }
  0x1b   :  { %s6669_s20 = scalar_lea.vmem %s72_s0, 256  ;;  %p6674_p11 = scmp.lt.s32.totalorder %s72_s0, %s72_s0 }
  0x1c   :  { %p6670_p10 = scmp.ne.s32.totalorder %s72_s0, %s6669_s20  ;;  %p6675_p12 = scmp.lt.s32.totalorder %s6669_s20, %s6669_s20 }
  0x1e   :  { %p6676_p13 = por %p6675_p12, %p6674_p11 }
  0x20   :  { %p6677_p0 = pnand %p6676_p13, %p6670_p10 }
  0x22   :  { %6680 = shalt.err (!%p6677_p0)
}
  0x23   :  { %s6712_s10 = smov 128   ;;  %s6713_s21 = smov 8  }
  0x24   :  { %77 = dma.hbm_to_vmem [thread:$0]  %s8467_s12, 256, %s72_s0, [#allocation5], %s6712_s10, %s6712_s10, %s6713_s21  }
  0x25   :  { %s6714_s24 = smov [#allocation7]  }
  0x26   :  { %s85_s26 = sshll.u32 %s6714_s24, 4  ;;  %s86_s26 = int_to_ptr.vmem [resolvable:$true] %s85_s26 }
  0x27   :  { %s6689_s27 = scalar_lea.vmem %s86_s26, 256  ;;  %p6694_p2 = scmp.lt.s32.totalorder %s86_s26, %s86_s26 }
  0x28   :  { %p6690_p1 = scmp.ne.s32.totalorder %s86_s26, %s6689_s27  ;;  %p6695_p3 = scmp.lt.s32.totalorder %s6689_s27, %s6689_s27 }
  0x2a   :  { %p6696_p4 = por %p6695_p3, %p6694_p2 }
  0x2c   :  { %p6697_p5 = pnand %p6696_p4, %p6690_p1 }
  0x2e   :  { %6700 = shalt.err (!%p6697_p5)
}
  0x2f   :  { %91 = dma.hbm_to_vmem [thread:$0]  %s8469_s14, 256, %s86_s26, [#allocation8], %s6712_s10, %s6712_s10, %s6713_s21  }
  0x30   :  { %6701 = dma.done.wait [#allocation3], 128  }
  0x31   :  { %6702 = vsyncadd [#allocation3], 4294967168 }
  0x32   :  { %6703 = dma.done.wait [#allocation5], 768  }
  0x33   :  { %6704 = vsyncadd [#allocation5], 4294966528 }
  0x34   :  { %6705 = dma.done.wait [#allocation8], 256  }
  0x35   :  { %6706 = vsyncadd [#allocation8], 4294967040  ;;  %v8478_v0 = vmov 0.0   ;;  %v168_v1 = vld [vmem:[%s8457_s2 + $0x1e8] sm:$0xff]  ;;  %v167_v2 = vld [vmem:[%s8457_s2 + $0x1e0] sm:$0xff]  ;;  %s8510_s30 = sld [smem:[#allocation32_spill]] }
  0x36   :  { %235 = vmatprep.mubr.f32.mxu0 %v8478_v0  ;;  %306 = vmatprep.mubr.f32.mxu1 %v8478_v0  ;;  %v164_v3 = vld [vmem:[%s8457_s2 + $0x1c8] sm:$0xff]  ;;  %v170_v4 = vld [vmem:[%s8457_s2 + $0x1f8] sm:$0xff]  ;;  %v163_v5 = vld [vmem:[%s8457_s2 + $0x1c0] sm:$0xff]  ;;  %vm333_vm0 = vcmask 1043456   ;;  %vm400_vm1 = vcmask 1041408   ;;  %vm354_vm2 = vcmask 7168  }
  0x37   :  { %171 = vmatprep.subr.mxu0 %v168_v1  ;;  %v169_v6 = vld [vmem:[%s8457_s2 + $0x1f0] sm:$0xff]  ;;  %242 = vmatprep.subr.mxu1 %v170_v4  ;;  %v160_v7 = vld [vmem:[%s8457_s2 + $0x1a8] sm:$0xff]  ;;  %v166_v8 = vld [vmem:[%s8457_s2 + $0x1d8] sm:$0xff]  ;;  %vm357_vm3 = vcmask 15360   ;;  %s6720_s10 = smov 1   ;;  %s6721_s21 = smov 127  }
  0x38   :  { %172 = vmatpush1.msra.mxu0 %v167_v2  ;;  %243 = vmatpush1.msra.mxu1 %v169_v6  ;;  %v159_v9 = vld [vmem:[%s8457_s2 + $0x1a0] sm:$0xff]  ;;  %v165_v10 = vld [vmem:[%s8457_s2 + $0x1d0] sm:$0xff]  ;;  %v162_v11 = vld [vmem:[%s8457_s2 + $0x1b8] sm:$0xff]  ;;  %s6722_s22 = smov 113   ;;  %s6723_s23 = smov 112   ;;  %vm850_vm14 = vcmask 64512  }
  0x39   :  { %173 = vmatprep.subr.mxu0 %v164_v3  ;;  %244 = vmatprep.subr.mxu1 %v166_v8  ;;  %v156_v12 = vld [vmem:[%s8457_s2 + $0x188] sm:$0xff]  ;;  %v161_v13 = vld [vmem:[%s8457_s2 + $0x1b0] sm:$0xff]  ;;  %v155_v14 = vld [vmem:[%s8457_s2 + $0x180] sm:$0xff]  ;;  %s6724_s27 = smov 111  }
  0x3a   :  { %174 = vmatpush1.msra.mxu0 %v163_v5  ;;  %245 = vmatpush1.msra.mxu1 %v165_v10  ;;  %v158_v15 = vld [vmem:[%s8457_s2 + $0x198] sm:$0xff]  ;;  %v152_v16 = vld [vmem:[%s8457_s2 + $0x168] sm:$0xff]  ;;  %v157_v17 = vld [vmem:[%s8457_s2 + $0x190] sm:$0xff] }
  0x3b   :  { %175 = vmatprep.subr.mxu0 %v160_v7  ;;  %246 = vmatprep.subr.mxu1 %v162_v11  ;;  %v151_v18 = vld [vmem:[%s8457_s2 + $0x160] sm:$0xff]  ;;  %v154_v19 = vld [vmem:[%s8457_s2 + $0x178] sm:$0xff]  ;;  %v148_v20 = vld [vmem:[%s8457_s2 + $0x148] sm:$0xff] }
  0x3c   :  { %176 = vmatpush1.msra.mxu0 %v159_v9  ;;  %247 = vmatpush1.msra.mxu1 %v161_v13  ;;  %v153_v21 = vld [vmem:[%s8457_s2 + $0x170] sm:$0xff]  ;;  %v147_v22 = vld [vmem:[%s8457_s2 + $0x140] sm:$0xff]  ;;  %v150_v23 = vld [vmem:[%s8457_s2 + $0x158] sm:$0xff] }
  0x3d   :  { %177 = vmatprep.subr.mxu0 %v156_v12  ;;  %248 = vmatprep.subr.mxu1 %v158_v15  ;;  %v144_v24 = vld [vmem:[%s8457_s2 + $0x128] sm:$0xff]  ;;  %v149_v25 = vld [vmem:[%s8457_s2 + $0x150] sm:$0xff]  ;;  %v143_v26 = vld [vmem:[%s8457_s2 + $0x120] sm:$0xff] }
  0x3e   :  { %178 = vmatpush1.msra.mxu0 %v155_v14  ;;  %249 = vmatpush1.msra.mxu1 %v157_v17  ;;  %v146_v27 = vld [vmem:[%s8457_s2 + $0x138] sm:$0xff]  ;;  %v140_v28 = vld [vmem:[%s8457_s2 + $0x108] sm:$0xff]  ;;  %v145_v29 = vld [vmem:[%s8457_s2 + $0x130] sm:$0xff] }
  0x3f   :  { %179 = vmatprep.subr.mxu0 %v152_v16  ;;  %250 = vmatprep.subr.mxu1 %v154_v19  ;;  %v139_v30 = vld [vmem:[%s8457_s2 + $0x100] sm:$0xff]  ;;  %v142_v31 = vld [vmem:[%s8457_s2 + $0x118] sm:$0xff]  ;;  %v136_v32 = vld [vmem:[%s8457_s2 + $0xe8] sm:$0xff] }
  0x40   :  { %180 = vmatpush1.msra.mxu0 %v151_v18  ;;  %251 = vmatpush1.msra.mxu1 %v153_v21  ;;  %v141_v33 = vld [vmem:[%s8457_s2 + $0x110] sm:$0xff]  ;;  %v135_v34 = vld [vmem:[%s8457_s2 + $0xe0] sm:$0xff]  ;;  %v138_v35 = vld [vmem:[%s8457_s2 + $0xf8] sm:$0xff] }
  0x41   :  { %181 = vmatprep.subr.mxu0 %v148_v20  ;;  %252 = vmatprep.subr.mxu1 %v150_v23  ;;  %v132_v36 = vld [vmem:[%s8457_s2 + $0xc8] sm:$0xff]  ;;  %v137_v37 = vld [vmem:[%s8457_s2 + $0xf0] sm:$0xff]  ;;  %v131_v38 = vld [vmem:[%s8457_s2 + $0xc0] sm:$0xff] }
  0x42   :  { %182 = vmatpush1.msra.mxu0 %v147_v22  ;;  %253 = vmatpush1.msra.mxu1 %v149_v25  ;;  %v134_v39 = vld [vmem:[%s8457_s2 + $0xd8] sm:$0xff]  ;;  %v128_v40 = vld [vmem:[%s8457_s2 + $0xa8] sm:$0xff]  ;;  %v133_v41 = vld [vmem:[%s8457_s2 + $0xd0] sm:$0xff] }
  0x43   :  { %183 = vmatprep.subr.mxu0 %v144_v24  ;;  %254 = vmatprep.subr.mxu1 %v146_v27  ;;  %v127_v42 = vld [vmem:[%s8457_s2 + $0xa0] sm:$0xff]  ;;  %v130_v43 = vld [vmem:[%s8457_s2 + $0xb8] sm:$0xff]  ;;  %v124_v44 = vld [vmem:[%s8457_s2 + $0x88] sm:$0xff] }
  0x44   :  { %184 = vmatpush1.msra.mxu0 %v143_v26  ;;  %255 = vmatpush1.msra.mxu1 %v145_v29  ;;  %v129_v45 = vld [vmem:[%s8457_s2 + $0xb0] sm:$0xff]  ;;  %v123_v46 = vld [vmem:[%s8457_s2 + $0x80] sm:$0xff]  ;;  %v126_v47 = vld [vmem:[%s8457_s2 + $0x98] sm:$0xff]  ;;  %v6716_v29 = vmov 1983009808  }
  0x45   :  { %185 = vmatprep.subr.mxu0 %v140_v28  ;;  %256 = vmatprep.subr.mxu1 %v142_v31  ;;  %v120_v48 = vld [vmem:[%s8457_s2 + $0x68] sm:$0xff]  ;;  %v125_v49 = vld [vmem:[%s8457_s2 + $0x90] sm:$0xff]  ;;  %v119_v50 = vld [vmem:[%s8457_s2 + $0x60] sm:$0xff]  ;;  %v384_v28 = vlaneseq }
  0x46   :  { %186 = vmatpush1.msra.mxu0 %v139_v30  ;;  %257 = vmatpush1.msra.mxu1 %v141_v33  ;;  %v122_v51 = vld [vmem:[%s8457_s2 + $0x78] sm:$0xff]  ;;  %v116_v52 = vld [vmem:[%s8457_s2 + $0x48] sm:$0xff]  ;;  %v121_v53 = vld [vmem:[%s8457_s2 + $0x70] sm:$0xff]  ;;  %v382_v30 = vunpack.c.l.s4 %v6716_v29 }
  0x47   :  { %187 = vmatprep.subr.mxu0 %v136_v32  ;;  %258 = vmatprep.subr.mxu1 %v138_v35  ;;  %v115_v54 = vld [vmem:[%s8457_s2 + $0x40] sm:$0xff]  ;;  %v118_v55 = vld [vmem:[%s8457_s2 + $0x58] sm:$0xff]  ;;  %v112_v56 = vld [vmem:[%s8457_s2 + $0x28] sm:$0xff]  ;;  %v7052_v31 = vshrl.u32 %v384_v28, 7 }
  0x48   :  { %188 = vmatpush1.msra.mxu0 %v135_v34  ;;  %259 = vmatpush1.msra.mxu1 %v137_v37  ;;  %v117_v57 = vld [vmem:[%s8457_s2 + $0x50] sm:$0xff]  ;;  %v111_v58 = vld [vmem:[%s8457_s2 + $0x20] sm:$0xff]  ;;  %v114_v59 = vld [vmem:[%s8457_s2 + $0x38] sm:$0xff]  ;;  %v383_v32 = vunpack.c.0.s8 %v382_v30 }
  0x49   :  { %189 = vmatprep.subr.mxu0 %v132_v36  ;;  %260 = vmatprep.subr.mxu1 %v134_v39  ;;  %v108_v60 = vld [vmem:[%s8457_s2 + $0x8] sm:$0xff]  ;;  %v113_v61 = vld [vmem:[%s8457_s2 + $0x30] sm:$0xff]  ;;  %v107_v62 = vld [vmem:[%s8457_s2] sm:$0xff] }
  0x4a   :  { %190 = vmatpush1.msra.mxu0 %v131_v38  ;;  %261 = vmatpush1.msra.mxu1 %v133_v41  ;;  %v110_v63 = vld [vmem:[%s8457_s2 + $0x18] sm:$0xff]  ;;  %v106_v1 = vld [vmem:[%s8510_s30] sm:$0xf]  ;;  %v109_v2 = vld [vmem:[%s8457_s2 + $0x10] sm:$0xff]  ;;  %v386_v34 = vsub.s32 %v383_v32, %v7052_v31  ;;  %s6719_s2 = smov 15  }
  0x4b   :  { %191 = vmatprep.subr.mxu0 %v128_v40  ;;  %262 = vmatprep.subr.mxu1 %v130_v43  ;;  %v313_v3 = vld [vmem:[%s8456_s1] sm:$0xff]  ;;  %v314_v4 = vld [vmem:[%s8456_s1 + $0x8] sm:$0xff]  ;;  %s6718_s1 = smov 17  }
  0x4c   :  { %192 = vmatpush1.msra.mxu0 %v127_v42  ;;  %263 = vmatpush1.msra.mxu1 %v129_v45  ;;  %v317_v8 = vcombine.high %v313_v3, %v313_v3  ;;  %v318_v10 = vcombine.high %v314_v4, %v314_v4  ;;  %v378_v27 = vld [vmem:[#allocation2] sm:$0xff] }
  0x4d   :  { %193 = vmatprep.subr.mxu0 %v124_v44  ;;  %264 = vmatprep.subr.mxu1 %v126_v47  ;;  %v380_v33 = vcombine.high %v378_v27, %v378_v27  ;;  %v387_v35 = vrot.slane %v378_v27, %v386_v34 }
  0x4e   :  { %194 = vmatpush1.msra.mxu0 %v123_v46  ;;  %265 = vmatpush1.msra.mxu1 %v125_v49 }
  0x4f   :  { %195 = vmatprep.subr.mxu0 %v120_v48  ;;  %266 = vmatprep.subr.mxu1 %v122_v51  ;;  %v394_v36 = vrot.slane %v380_v33, %v386_v34  ;;  %v395_v37 = vcombine.high %v387_v35, %v387_v35 }
  0x50   :  { %196 = vmatpush1.msra.mxu0 %v119_v50  ;;  %267 = vmatpush1.msra.mxu1 %v121_v53 }
  0x51   :  { %197 = vmatprep.subr.mxu0 %v116_v52  ;;  %268 = vmatprep.subr.mxu1 %v118_v55  ;;  %v396_v38 = vcombine.high %v394_v36, %v394_v36 }
  0x52   :  { %198 = vmatpush1.msra.mxu0 %v115_v54  ;;  %269 = vmatpush1.msra.mxu1 %v117_v57 }
  0x53   :  { %199 = vmatprep.subr.mxu0 %v112_v56  ;;  %270 = vmatprep.subr.mxu1 %v114_v59 }
  0x54   :  { %200 = vmatpush1.msra.mxu0 %v111_v58  ;;  %271 = vmatpush1.msra.mxu1 %v113_v61 }
  0x55   :  { %201 = vmatprep.subr.mxu0 %v108_v60  ;;  %272 = vmatprep.subr.mxu1 %v110_v63 }
  0x56   :  { %202 = vmatpush1.msra.mxu0 %v107_v62  ;;  %273 = vmatpush1.msra.mxu1 %v109_v2 }
  0x57   :  { %236 = vmatmul.mubr.f32.vlgmr.msra.gmra.mxu0 %v106_v1  ;;  %307 = vmatmul.mubr.f32.vlgmr.msra.gmra.mxu1 %v106_v1 }
  0x58   :  { %473 = vmatprep.mubr.f32.mxu0 %v8478_v0  ;;  %544 = vmatprep.mubr.f32.mxu1 %v8478_v0 }
  0x59   :  { %6293 = vmatprep.subr.msk.mxu0 %vm400_vm1, %v395_v37  ;;  %6296 = vmatprep.subr.msk.mxu1 %vm400_vm1, %v396_v38 }
  0x5a   :  { %6294 = vmatpush1.msk.msra.mxu0 %vm400_vm1, %v387_v35  ;;  %6297 = vmatpush1.msk.msra.mxu1 %vm400_vm1, %v394_v36 }
  0x5b   :  { %6299 = vmatprep.subr.msk.mxu0 %vm400_vm1, %v395_v37  ;;  %6302 = vmatprep.subr.msk.mxu1 %vm400_vm1, %v396_v38 }
 0x117   :  { %v237_v5 = vpop.f32.mrf.mxu0  ;;  %v308_v7 = vpop.f32.mrf.mxu1 }
 0x118   :  { %v325_v6 = vrot.slane %v237_v5, 4  ;;  %v327_v11 = vrot.slane %v308_v7, 4 }
 0x119   :  { %v239_v9 = vpop.f32.mrf.mxu0  ;;  %v310_v13 = vpop.f32.mrf.mxu1 }
 0x11a   :  { %v326_v12 = vrot.slane %v239_v9, 4  ;;  %v7031_v14 = vsel %vm333_vm0, %v313_v3, %v325_v6  ;;  %v328_v15 = vrot.slane %v310_v13, 4  ;;  %v7033_v16 = vsel %vm333_vm0, %v314_v4, %v327_v11 }
 0x11b   :  { %v338_v20 = vmul.f32 %v7031_v14, %v7031_v14  ;;  %v340_v23 = vmul.f32 %v7033_v16, %v7033_v16 }
 0x11c   :  { %v7035_v17 = vsel %vm333_vm0, %v317_v8, %v326_v12  ;;  %v7037_v18 = vsel %vm333_vm0, %v318_v10, %v328_v15  ;;  %v6717_v12 = vmov 0  }
 0x11d   :  { %v342_v19 = vadd.f32 %v7035_v17, %v7031_v14  ;;  %v339_v21 = vmul.f32 %v7035_v17, %v7035_v17  ;;  %v341_v24 = vmul.f32 %v7037_v18, %v7037_v18  ;;  %v348_v25 = vadd.f32 %v7037_v18, %v7033_v16  ;;  %6600 = vset.pattern.permute.xlu0 %v6717_v12 }
 0x11e   :  { %6601 = vset.pattern.permute.xlu1 %v6717_v12 }
 0x11f   :  { %343 = vadd.xlane.f32.xlu0 %v342_v19  ;;  %v345_v22 = vadd.f32 %v339_v21, %v338_v20  ;;  %v351_v26 = vadd.f32 %v341_v24, %v340_v23 }
 0x121   :  { %346 = vadd.xlane.f32.xlu1 %v345_v22 }
 0x123   :  { %349 = vadd.xlane.f32.xlu0 %v348_v25 }
 0x125   :  { %352 = vadd.xlane.f32.xlu1 %v351_v26 }
 0x1a8   :  { %v344_v39 = vpop.xlane.xlu0 %343 }
 0x1aa   :  { %v347_v40 = vpop.xlane.xlu1 %346 }
 0x1ac   :  { %v350_v41 = vpop.xlane.xlu0 %349 }
 0x1ad   :  { %v355_v42 = vsel %vm354_vm2, %v344_v39, %v350_v41 }
 0x1ae   :  { %v353_v43 = vpop.xlane.xlu1 %352  ;;  %v358_v44 = vsel %vm357_vm3, %v355_v42, 0.0  ;;  %v371_v45 = vmul.f32 0.00390625, %v355_v42 }
 0x1af   :  { %359 = vadd.xlane.f32.xlu0 %v358_v44  ;;  %v356_v46 = vsel %vm354_vm2, %v347_v40, %v353_v43 }
 0x1b0   :  { %v373_v47 = vmul.f32 %v371_v45, %v371_v45  ;;  %v361_v48 = vsel %vm357_vm3, %v356_v46, 0.0  ;;  %v372_v49 = vmul.f32 0.00390625, %v356_v46  ;;  %v551_v54 = vsub.f32 0.0, %v371_v45 }
 0x1b1   :  { %362 = vadd.xlane.f32.xlu1 %v361_v48  ;;  %v7182_v46 = vsub.s32 1, %v7052_v31  ;;  %v7205_v48 = vld [vmem:[%s8459_s4] sm:$0xff] }
 0x1b2   :  { %v374_v50 = vsub.f32 %v372_v49, %v373_v47  ;;  %v7191_v47 = vld [vmem:[%s8459_s4 + $0x8] sm:$0xff] }
 0x1b4   :  { %v375_v51 = vmax.f32 %v374_v50, 0.0 }
 0x1b6   :  { %v376_v52 = vadd.f32 1e-05, %v375_v51 }
 0x1b8   :  { %6605 = vrsqrt.f32 %v376_v52 }
 0x1c5   :  { %v6606_v53 = vpop.eup %6605 }
 0x1c6   :  { %6295 = vmatmul.mubr.msk.f32.vlgmr.msra.gmra.mxu0 %vm357_vm3, %v6606_v53  ;;  %6298 = vmatmul.mubr.msk.f32.vlgmr.msra.gmra.mxu1 %vm357_vm3, %v6606_v53  ;;  %v552_v55 = vmul.f32 %v6606_v53, %v551_v54  ;;  %v7215_v53 = vrot.slane %v7205_v48, %v7182_v46  ;;  %v7218_v54 = vsub.s32 0, %v7052_v31 }
 0x1c7   :  { %6300 = vmatpush1.msk.msra.mxu0 %vm400_vm1, %v387_v35  ;;  %620 = vmatprep.mubr.f32.mxu0 %v8478_v0 }
 0x1c8   :  { %6303 = vmatpush1.msk.msra.mxu1 %vm400_vm1, %v394_v36  ;;  %691 = vmatprep.mubr.f32.mxu1 %v8478_v0 }
 0x1ca   :  { %6301 = vmatmul.mubr.msk.f32.vlgmr.msra.gmra.mxu0 %vm357_vm3, %v552_v55  ;;  %6304 = vmatmul.mubr.msk.f32.vlgmr.msra.gmra.mxu1 %vm357_vm3, %v552_v55 }
 0x1cb   :  { %918 = vmatprep.mubr.f32.mxu0 %v8478_v0  ;;  %989 = vmatprep.mubr.f32.mxu1 %v8478_v0 }
 0x238   :  { %v360_v56 = vpop.xlane.xlu0 %359 }
 0x239   :  { %v364_v57 = vmul.f32 0.001953125, %v360_v56 }
 0x23a   :  { %v363_v58 = vpop.xlane.xlu1 %362 }
 0x23b   :  { %v366_v59 = vmul.f32 %v364_v57, %v364_v57  ;;  %v365_v60 = vmul.f32 0.001953125, %v363_v58  ;;  %v698_v1 = vsub.f32 %v7031_v14, %v364_v57  ;;  %v699_v2 = vsub.f32 %v7035_v17, %v364_v57 }
 0x23c   :  { %v700_v3 = vsub.f32 %v7033_v16, %v364_v57  ;;  %v701_v4 = vsub.f32 %v7037_v18, %v364_v57  ;;  %v768_v58 = vrot.slane %v7191_v47, %v7218_v54 }
 0x23d   :  { %v367_v61 = vsub.f32 %v365_v60, %v366_v59  ;;  %v7236_v59 = vld [vmem:[%s8460_s5 + $0x4] sm:$0xf] }
 0x23f   :  { %v368_v62 = vmax.f32 %v367_v61, 0.0 }
 0x241   :  { %v369_v63 = vadd.f32 1e-05, %v368_v62  ;;  %v3841_v62 = vld [vmem:[%s8462_s7] sm:$0xf] }
 0x243   :  { %6607 = vrsqrt.f32 %v369_v63 }
 0x250   :  { %v6608_v5 = vpop.eup %6607 }
 0x251   :  { %v703_v6 = vmul.f32 %v6608_v5, %v699_v2  ;;  %v702_v7 = vmul.f32 %v6608_v5, %v698_v1  ;;  %v705_v8 = vmul.f32 %v6608_v5, %v701_v4  ;;  %v7077_v9 = vmul.f32 %v6608_v5, %v700_v3 }
 0x252   :  { %v7254_v2 = vrot.slane %v7205_v48, %v7218_v54 }
 0x253   :  { %vm707_vm4 = vcmp.ge.f32.partialorder %v703_v6, 0.0  ;;  %v711_v10 = vmul.f32 0.01, %v703_v6  ;;  %vm706_vm5 = vcmp.ge.f32.partialorder %v702_v7, 0.0  ;;  %v710_v11 = vmul.f32 0.01, %v702_v7 }
 0x254   :  { %v713_v19 = vmul.f32 0.01, %v705_v8  ;;  %vm709_vm6 = vcmp.ge.f32.partialorder %v705_v8, 0.0  ;;  %v712_v40 = vmul.f32 0.01, %v7077_v9  ;;  %vm708_vm10 = vcmp.ge.f32.partialorder %v7077_v9, 0.0 }
 0x255   :  { %v7079_v13 = vsel %vm707_vm4, %v703_v6, %v711_v10  ;;  %v7081_v15 = vsel %vm706_vm5, %v702_v7, %v710_v11  ;;  %v7268_v6 = vld [vmem:[%s8460_s5] sm:$0xf] }
 0x256   :  { %801 = vrot.lane.b32.xlu1 %v7079_v13, %s6709_s25  ;;  %799 = vrot.lane.b32.xlu0 %v7081_v15, %s6709_s25  ;;  %v7087_v20 = vsel %vm709_vm6, %v705_v8, %v713_v19  ;;  %v7142_v43 = vsel %vm708_vm10, %v7077_v9, %v712_v40  ;;  %v3851_v7 = vld [vmem:[%s8463_s8] sm:$0xf]  ;;  %vm6725_vm6 = vmmov 0  }
 0x25a   :  { %805 = vrot.lane.b32.xlu1 %v7087_v20, %s6709_s25  ;;  %748 = vrot.lane.b32.xlu0 %v7079_v13, %s6718_s1 }
 0x25e   :  { %746 = vrot.lane.b32.xlu1 %v7081_v15, %s6718_s1  ;;  %1433 = vrot.lane.b32.xlu0 %v7081_v15, %s6719_s2 }
 0x262   :  { %752 = vrot.lane.b32.xlu1 %v7087_v20, %s6718_s1  ;;  %1439 = vrot.lane.b32.xlu0 %v7087_v20, %s6719_s2 }
 0x266   :  { %1435 = vrot.lane.b32.xlu1 %v7079_v13, %s6719_s2  ;;  %1784 = vrot.lane.b32.xlu0 %v7081_v15, %s6720_s10 }
 0x26a   :  { %1786 = vrot.lane.b32.xlu1 %v7079_v13, %s6720_s10  ;;  %1790 = vrot.lane.b32.xlu0 %v7087_v20, %s6720_s10 }
 0x286   :  { %v475_v21 = vpop.f32.mrf.mxu0  ;;  %v546_v22 = vpop.f32.mrf.mxu1 }
 0x287   :  { %v718_v25 = vmul.f32 %v475_v21, %v7031_v14  ;;  %v720_v41 = vmul.f32 %v546_v22, %v7033_v16  ;;  %v7179_v16 = vand.u32 127, %v384_v28  ;;  %v7196_v28 = vrot.slane %v7191_v47, %v7182_v46 }
 0x288   :  { %v477_v23 = vpop.f32.mrf.mxu0  ;;  %v548_v24 = vpop.f32.mrf.mxu1 }
 0x289   :  { %v721_v30 = vmul.f32 %v548_v24, %v7037_v18  ;;  %v719_v34 = vmul.f32 %v477_v23, %v7035_v17  ;;  %vm807_vm12 = vcmp.lt.s32.totalorder %v7179_v16, 16  ;;  %vm756_vm13 = vcmp.lt.s32.totalorder %v7179_v16, 17 }
 0x28a   :  { %v622_v26 = vpop.f32.mrf.mxu0  ;;  %v693_v27 = vpop.f32.mrf.mxu1  ;;  %vm1441_vm15 = vcmp.lt.s32.totalorder %v7179_v16, 15  ;;  %vm1792_vm0 = vcmp.lt.s32.totalorder %v7179_v16, 1  ;;  %vm2445_vm2 = vcmp.lt.s32.totalorder %v7179_v16, 127  ;;  %vm2796_vm3 = vcmp.lt.s32.totalorder %v7179_v16, 113 }
 0x28b   :  { %v722_v29 = vadd.f32 %v718_v25, %v622_v26  ;;  %v724_v42 = vadd.f32 %v720_v41, %v693_v27  ;;  %vm3147_vm4 = vcmp.lt.s32.totalorder %v7179_v16, 112  ;;  %vm3498_vm5 = vcmp.lt.s32.totalorder %v7179_v16, 111  ;;  %v7980_v16 = vld [vmem:[%s8464_s9 + $0xa8] sm:$0xff] }
 0x28c   :  { %v624_v32 = vpop.f32.mrf.mxu0  ;;  %v695_v33 = vpop.f32.mrf.mxu1 }
 0x28d   :  { %vm726_vm7 = vcmp.ge.f32.partialorder %v722_v29, 0.0  ;;  %v730_v35 = vmul.f32 0.01, %v722_v29  ;;  %v725_v36 = vadd.f32 %v721_v30, %v695_v33  ;;  %v723_v38 = vadd.f32 %v719_v34, %v624_v32  ;;  %v7338_v34 = vld [vmem:[%s8461_s6 + $0x4] sm:$0xf] }
 0x28e   :  { %v732_v44 = vmul.f32 0.01, %v724_v42  ;;  %vm728_vm11 = vcmp.ge.f32.partialorder %v724_v42, 0.0 }
 0x28f   :  { %v7112_v37 = vsel %vm726_vm7, %v722_v29, %v730_v35  ;;  %vm729_vm8 = vcmp.ge.f32.partialorder %v725_v36, 0.0  ;;  %v733_v39 = vmul.f32 0.01, %v725_v36  ;;  %v731_v14 = vmul.f32 0.01, %v723_v38 }
 0x290   :  { %781 = vrot.lane.b32.xlu1 %v7112_v37, %s6718_s1  ;;  %832 = vrot.lane.b32.xlu0 %v7112_v37, %s6709_s25  ;;  %vm727_vm9 = vcmp.ge.f32.partialorder %v723_v38, 0.0  ;;  %v7152_v45 = vsel %vm728_vm11, %v724_v42, %v732_v44  ;;  %v7341_v35 = vsub.s32 2, %v7052_v31  ;;  %vm3977_vm7 = vcmask 130048  }
 0x291   :  { %v7118_v18 = vsel %vm729_vm8, %v725_v36, %v733_v39  ;;  %v7124_v17 = vsel %vm727_vm9, %v723_v38, %v731_v14  ;;  %vm5052_vm8 = vcmask 1040384   ;;  %vm5057_vm9 = vcmask 1042432  }
 0x292   :  { %v1453_v14 = vrot.slane %v7191_v47, %v7341_v35  ;;  %v1449_v40 = vrot.slane %v7205_v48, %v7341_v35 }
 0x294   :  { %1466 = vrot.lane.b32.xlu1 %v7112_v37, %s6719_s2  ;;  %838 = vrot.lane.b32.xlu0 %v7118_v18, %s6709_s25 }
 0x298   :  { %834 = vrot.lane.b32.xlu1 %v7124_v17, %s6709_s25  ;;  %783 = vrot.lane.b32.xlu0 %v7124_v17, %s6718_s1 }
 0x29c   :  { %1817 = vrot.lane.b32.xlu1 %v7112_v37, %s6720_s10  ;;  %2439 = vrot.lane.b32.xlu0 %v7079_v13, %s6721_s21 }
 0x2a0   :  { %787 = vrot.lane.b32.xlu1 %v7118_v18, %s6718_s1  ;;  %1468 = vrot.lane.b32.xlu0 %v7124_v17, %s6719_s2 }
 0x2a4   :  { %2441 = vrot.lane.b32.xlu1 %v7142_v43, %s6721_s21  ;;  %2437 = vrot.lane.b32.xlu0 %v7081_v15, %s6721_s21 }
 0x2a8   :  { %1472 = vrot.lane.b32.xlu1 %v7118_v18, %s6719_s2  ;;  %1819 = vrot.lane.b32.xlu0 %v7124_v17, %s6720_s10 }
 0x2ac   :  { %2470 = vrot.lane.b32.xlu1 %v7112_v37, %s6721_s21  ;;  %2474 = vrot.lane.b32.xlu0 %v7152_v45, %s6721_s21 }
 0x2b0   :  { %1823 = vrot.lane.b32.xlu1 %v7118_v18, %s6720_s10  ;;  %2790 = vrot.lane.b32.xlu0 %v7079_v13, %s6722_s22 }
 0x2b4   :  { %2792 = vrot.lane.b32.xlu1 %v7142_v43, %s6722_s22  ;;  %2788 = vrot.lane.b32.xlu0 %v7081_v15, %s6722_s22 }
 0x2b8   :  { %2821 = vrot.lane.b32.xlu1 %v7112_v37, %s6722_s22  ;;  %2825 = vrot.lane.b32.xlu0 %v7152_v45, %s6722_s22 }
 0x2bc   :  { %2472 = vrot.lane.b32.xlu1 %v7124_v17, %s6721_s21  ;;  %3141 = vrot.lane.b32.xlu0 %v7079_v13, %s6723_s23 }
 0x2c0   :  { %3143 = vrot.lane.b32.xlu1 %v7142_v43, %s6723_s23  ;;  %3139 = vrot.lane.b32.xlu0 %v7081_v15, %s6723_s23 }
 0x2c4   :  { %2823 = vrot.lane.b32.xlu1 %v7124_v17, %s6722_s22  ;;  %3176 = vrot.lane.b32.xlu0 %v7152_v45, %s6723_s23 }
 0x2c8   :  { %3172 = vrot.lane.b32.xlu1 %v7112_v37, %s6723_s23  ;;  %3492 = vrot.lane.b32.xlu0 %v7079_v13, %s6724_s27  ;;  %v7207_v49 = vpop.permute.xlu1 %801  ;;  %v800_v50 = vpop.permute.xlu0 %799 }
 0x2c9   :  { %v810_v51 = vsel %vm807_vm12, %v800_v50, %v7207_v49 }
 0x2ca   :  { %v829_v52 = vmul.f32 %v7196_v28, %v810_v51 }
 0x2cc   :  { %3174 = vrot.lane.b32.xlu1 %v7124_v17, %s6723_s23  ;;  %3490 = vrot.lane.b32.xlu0 %v7081_v15, %s6724_s27  ;;  %v7224_v55 = vpop.permute.xlu1 %805  ;;  %v7242_v60 = vpop.permute.xlu0 %748 }
 0x2cd   :  { %884 = vmatprep.subr.mxu0 %v829_v52  ;;  %v811_v56 = vsel %vm807_vm12, %v7224_v55, %v800_v50 }
 0x2ce   :  { %v828_v57 = vmul.f32 %v7215_v53, %v811_v56 }
 0x2d0   :  { %3494 = vrot.lane.b32.xlu1 %v7142_v43, %s6724_s27  ;;  %3527 = vrot.lane.b32.xlu0 %v7152_v45, %s6724_s27  ;;  %v747_v61 = vpop.permute.xlu1 %746  ;;  %v1434_v8 = vpop.permute.xlu0 %1433 }
 0x2d1   :  { %885 = vmatpush1.msra.mxu0 %v828_v57  ;;  %v759_v63 = vsel %vm756_vm13, %v747_v61, %v7242_v60  ;;  %v7376_v57 = vsub.s32 3, %v7052_v31 }
 0x2d2   :  { %6306 = vmatmul.mubr.msk.f32.vlgmr.msra.gmra.mxu0 %vm850_vm14, %v7236_v59  ;;  %v778_v1 = vmul.f32 %v768_v58, %v759_v63 }
 0x2d3   :  { %1063 = vmatprep.mubr.f32.mxu0 %v8478_v0 }
 0x2d4   :  { %3525 = vrot.lane.b32.xlu1 %v7124_v17, %s6724_s27  ;;  %3844 = vperm.xlu0 %6600, %v3841_v62   ;;  %v7259_v3 = vpop.permute.xlu1 %752  ;;  %v7302_v9 = vpop.permute.xlu0 %1439 }
 0x2d5   :  { %1029 = vmatprep.subr.mxu0 %v778_v1  ;;  %v760_v4 = vsel %vm756_vm13, %v7259_v3, %v747_v61  ;;  %v7389_v1 = vld [vmem:[%s8460_s5 + $0x8] sm:$0xf] }
 0x2d6   :  { %v777_v5 = vmul.f32 %v7254_v2, %v760_v4 }
 0x2d8   :  { %3523 = vrot.lane.b32.xlu1 %v7112_v37, %s6724_s27  ;;  %750 = vrot.lane.b32.xlu0 %v7142_v43, %s6718_s1  ;;  %v7308_v10 = vpop.permute.xlu1 %1435  ;;  %v1785_v11 = vpop.permute.xlu0 %1784 }
 0x2d9   :  { %1030 = vmatpush1.msra.mxu0 %v777_v5  ;;  %v1444_v41 = vsel %vm1441_vm15, %v1434_v8, %v7308_v10  ;;  %v1800_v5 = vrot.slane %v7205_v48, %v7376_v57 }
 0x2da   :  { %6308 = vmatmul.mubr.msk.f32.vlgmr.msra.gmra.mxu0 %vm850_vm14, %v7268_v6  ;;  %v1463_v56 = vmul.f32 %v1453_v14, %v1444_v41 }
 0x2db   :  { %1210 = vmatprep.mubr.f32.mxu0 %v8478_v0 }
 0x2dc   :  { %3854 = vperm.xlu1 %6601, %v3851_v7   ;;  %785 = vrot.lane.b32.xlu0 %v7152_v45, %s6718_s1  ;;  %v7314_v12 = vpop.permute.xlu1 %1786  ;;  %v7316_v19 = vpop.permute.xlu0 %1790 }
 0x2dd   :  { %v1795_v4 = vsel %vm1792_vm0, %v1785_v11, %v7314_v12 }
 0x2e0   :  { %803 = vrot.lane.b32.xlu1 %v7142_v43, %s6709_s25  ;;  %1470 = vrot.lane.b32.xlu0 %v7152_v45, %s6719_s2 }
 0x2e4   :  { %836 = vrot.lane.b32.xlu1 %v7152_v45, %s6709_s25  ;;  %1821 = vrot.lane.b32.xlu0 %v7152_v45, %s6720_s10 }
 0x2e8   :  { %1437 = vrot.lane.b32.xlu1 %v7142_v43, %s6719_s2  ;;  %2476 = vrot.lane.b32.xlu0 %v7118_v18, %s6721_s21 }
 0x2ec   :  { %1788 = vrot.lane.b32.xlu1 %v7142_v43, %s6720_s10  ;;  %2827 = vrot.lane.b32.xlu0 %v7118_v18, %s6722_s22  ;;  %s6726_s10 = smov 96  }
 0x2f0   :  { %2443 = vrot.lane.b32.xlu1 %v7087_v20, %s6721_s21  ;;  %3178 = vrot.lane.b32.xlu0 %v7118_v18, %s6723_s23  ;;  %s6727_s21 = smov 80  }
 0x2f4   :  { %2794 = vrot.lane.b32.xlu1 %v7087_v20, %s6722_s22  ;;  %3529 = vrot.lane.b32.xlu0 %v7118_v18, %s6724_s27 }
 0x2f8   :  { %3145 = vrot.lane.b32.xlu1 %v7087_v20, %s6723_s23 }
 0x2fc   :  { %3496 = vrot.lane.b32.xlu1 %v7087_v20, %s6724_s27 }
 0x302   :  { %v782_v21 = vpop.permute.xlu1 %781  ;;  %v833_v22 = vpop.permute.xlu0 %832 }
 0x306   :  { %v1467_v23 = vpop.permute.xlu1 %1466  ;;  %v7318_v24 = vpop.permute.xlu0 %838 }
 0x307   :  { %v843_v25 = vsel %vm807_vm12, %v7318_v24, %v833_v22 }
 0x308   :  { %v844_v33 = vmul.f32 %v843_v25, %v7215_v53  ;;  %v7373_v53 = vld [vmem:[%s8461_s6] sm:$0xf] }
 0x30a   :  { %v7323_v26 = vpop.permute.xlu1 %834  ;;  %v7325_v27 = vpop.permute.xlu0 %783 }
 0x30b   :  { %v842_v29 = vsel %vm807_vm12, %v833_v22, %v7323_v26  ;;  %v791_v30 = vsel %vm756_vm13, %v782_v21, %v7325_v27 }
 0x30c   :  { %v845_v32 = vmul.f32 %v842_v29, %v7196_v28  ;;  %v794_v36 = vmul.f32 %v791_v30, %v768_v58  ;;  %v1445_v28 = vsel %vm1441_vm15, %v7302_v9, %v1434_v8  ;;  %v7417_v30 = vld [vmem:[%s8461_s6 + $0x8] sm:$0xf] }
 0x30d   :  { %v1462_v58 = vmul.f32 %v1449_v40, %v1445_v28  ;;  %v7434_v28 = vsub.s32 5, %v7052_v31 }
 0x30e   :  { %v1818_v38 = vpop.permute.xlu1 %1817  ;;  %1176 = vmatprep.subr.mxu0 %v845_v32  ;;  %v7343_v39 = vpop.permute.xlu0 %2439 }
 0x30f   :  { %1177 = vmatpush1.msra.mxu0 %v844_v33 }
 0x310   :  { %1321 = vmatprep.subr.mxu0 %v794_v36  ;;  %6311 = vmatmul.mubr.msk.f32.vlgmr.msra.gmra.mxu0 %vm850_vm14, %v7338_v34 }
 0x311   :  { %1355 = vmatprep.mubr.f32.mxu0 %v8478_v0 }
 0x312   :  { %v7356_v42 = vpop.permute.xlu1 %787  ;;  %v7358_v44 = vpop.permute.xlu0 %1468 }
 0x313   :  { %v792_v50 = vsel %vm756_vm13, %v7356_v42, %v782_v21  ;;  %v1476_v52 = vsel %vm1441_vm15, %v1467_v23, %v7358_v44  ;;  %v1796_v21 = vsel %vm1792_vm0, %v7316_v19, %v1785_v11 }
 0x314   :  { %v793_v51 = vmul.f32 %v792_v50, %v7254_v2  ;;  %v1479_v63 = vmul.f32 %v1476_v52, %v1453_v14  ;;  %v1804_v2 = vrot.slane %v7191_v47, %v7376_v57  ;;  %v1813_v32 = vmul.f32 %v1800_v5, %v1796_v21  ;;  %v7429_v14 = vld [vmem:[%s8460_s5 + $0xc] sm:$0xf] }
 0x315   :  { %v7445_v52 = vld [vmem:[%s8461_s6 + $0xc] sm:$0xf] }
 0x316   :  { %v7378_v61 = vpop.permute.xlu1 %2441  ;;  %1322 = vmatpush1.msra.mxu0 %v793_v51  ;;  %v7380_v62 = vpop.permute.xlu0 %2437  ;;  %v1814_v11 = vmul.f32 %v1804_v2, %v1795_v4  ;;  %v2453_v4 = vrot.slane %v7205_v48, %v7434_v28 }
 0x317   :  { %6313 = vmatmul.mubr.msk.f32.vlgmr.msra.gmra.mxu0 %vm850_vm14, %v7373_v53  ;;  %1517 = vmatprep.subr.mxu0 %v1463_v56 }
 0x318   :  { %1518 = vmatpush1.msra.mxu0 %v1462_v58  ;;  %1551 = vmatprep.mubr.f32.mxu0 %v8478_v0 }
 0x319   :  { %1668 = vmatprep.subr.mxu0 %v1479_v63  ;;  %v2447_v63 = vsel %vm2445_vm2, %v7343_v39, %v7378_v61 }
 0x31a   :  { %v7398_v7 = vpop.permute.xlu1 %1472  ;;  %v7400_v8 = vpop.permute.xlu0 %1819 }
 0x31b   :  { %v1477_v22 = vsel %vm1441_vm15, %v7398_v7, %v1467_v23  ;;  %6316 = vmatmul.mubr.msk.f32.vlgmr.msra.gmra.mxu0 %vm850_vm14, %v7389_v1  ;;  %v1827_v29 = vsel %vm1792_vm0, %v1818_v38, %v7400_v8 }
 0x31c   :  { %v1478_v25 = vmul.f32 %v1477_v22, %v1449_v40  ;;  %1702 = vmatprep.mubr.f32.mxu0 %v8478_v0  ;;  %v1830_v36 = vmul.f32 %v1827_v29, %v1804_v2  ;;  %v7466_v2 = vld [vmem:[%s8460_s5 + $0x10] sm:$0xf]  ;;  %v7480_v22 = vsub.s32 6, %v7052_v31 }
 0x31e   :  { %v7419_v33 = vpop.permute.xlu1 %2470  ;;  %1669 = vmatpush1.msra.mxu0 %v1478_v25  ;;  %v7421_v23 = vpop.permute.xlu0 %2474  ;;  %8514 = vst [vmem:[#allocation15_spill] sm:$0xff] %v7480_v22 }
 0x31f   :  { %6319 = vmatmul.mubr.msk.f32.vlgmr.msra.gmra.mxu0 %vm850_vm14, %v7417_v30  ;;  %1868 = vmatprep.subr.mxu0 %v1814_v11  ;;  %v2808_v11 = vrot.slane %v7191_v47, %v7480_v22 }
 0x320   :  { %1869 = vmatpush1.msra.mxu0 %v1813_v32  ;;  %1902 = vmatprep.mubr.f32.mxu0 %v8478_v0 }
 0x321   :  { %2019 = vmatprep.subr.mxu0 %v1830_v36 }
 0x322   :  { %v7431_v40 = vpop.permute.xlu1 %1823  ;;  %v2791_v41 = vpop.permute.xlu0 %2790 }
 0x323   :  { %v1828_v50 = vsel %vm1792_vm0, %v7431_v40, %v1818_v38  ;;  %6322 = vmatmul.mubr.msk.f32.vlgmr.msra.gmra.mxu0 %vm850_vm14, %v7429_v14  ;;  %v2457_v38 = vrot.slane %v7191_v47, %v7434_v28 }
 0x324   :  { %v1829_v51 = vmul.f32 %v1828_v50, %v1800_v5  ;;  %2053 = vmatprep.mubr.f32.mxu0 %v8478_v0 }
 0x325   :  { %v2467_v21 = vmul.f32 %v2457_v38, %v2447_v63  ;;  %v7509_v63 = vld [vmem:[%s8460_s5 + $0x14] sm:$0xf] }
 0x326   :  { %v7448_v56 = vpop.permute.xlu1 %2792  ;;  %2020 = vmatpush1.msra.mxu0 %v1829_v51  ;;  %v7450_v58 = vpop.permute.xlu0 %2788  ;;  %8516 = vst [vmem:[#allocation17_spill] sm:$0xff] %v7509_v63 }
 0x327   :  { %8511 = vst [vmem:[#allocation12_spill] sm:$0xff] %v7448_v56  ;;  %6325 = vmatmul.mubr.msk.f32.vlgmr.msra.gmra.mxu0 %vm850_vm14, %v7445_v52  ;;  %2170 = vmatprep.subr.mxu0 %v7079_v13  ;;  %v2798_v36 = vsel %vm2796_vm3, %v2791_v41, %v7448_v56 }
 0x328   :  { %2171 = vmatpush1.msra.mxu0 %v7081_v15  ;;  %2204 = vmatprep.mubr.f32.mxu0 %v8478_v0  ;;  %v2448_v15 = vsel %vm2445_vm2, %v7380_v62, %v7343_v39 }
 0x329   :  { %2321 = vmatprep.subr.mxu0 %v7124_v17  ;;  %v7489_v17 = vld [vmem:[%s8461_s6 + $0x10] sm:$0xf]  ;;  %v2466_v25 = vmul.f32 %v2453_v4, %v2448_v15 }
 0x32a   :  { %v7471_v13 = vpop.permute.xlu1 %2821  ;;  %v7473_v5 = vpop.permute.xlu0 %2825  ;;  %8515 = vst [vmem:[#allocation16_spill] sm:$0xff] %v7489_v17 }
 0x32b   :  { %8512 = vst [vmem:[#allocation13_spill] sm:$0xff] %v7471_v13  ;;  %8513 = vst [vmem:[#allocation14_spill] sm:$0xff] %v7473_v5  ;;  %6328 = vmatmul.mubr.msk.f32.vlgmr.msra.gmra.mxu0 %vm850_vm14, %v7466_v2 }
 0x32c   :  { %2322 = vmatpush1.msra.mxu0 %v7112_v37  ;;  %2355 = vmatprep.mubr.f32.mxu0 %v8478_v0 }
 0x32d   :  { %2521 = vmatprep.subr.mxu0 %v2467_v21  ;;  %v2804_v21 = vrot.slane %v7205_v48, %v7480_v22 }
 0x32e   :  { %v2473_v39 = vpop.permute.xlu1 %2472  ;;  %v3142_v29 = vpop.permute.xlu0 %3141 }
 0x32f   :  { %v2479_v37 = vsel %vm2445_vm2, %v2473_v39, %v7421_v23  ;;  %v2480_v32 = vsel %vm2445_vm2, %v7419_v33, %v2473_v39  ;;  %6331 = vmatmul.mubr.msk.f32.vlgmr.msra.gmra.mxu0 %vm850_vm14, %v7489_v17  ;;  %v2818_v17 = vmul.f32 %v2808_v11, %v2798_v36 }
 0x330   :  { %v2482_v50 = vmul.f32 %v2480_v32, %v2453_v4  ;;  %v2483_v51 = vmul.f32 %v2479_v37, %v2457_v38  ;;  %2522 = vmatpush1.msra.mxu0 %v2466_v25  ;;  %2555 = vmatprep.mubr.f32.mxu0 %v8478_v0  ;;  %v2799_v38 = vsel %vm2796_vm3, %v7450_v58, %v2791_v41  ;;  %v7521_v4 = vsub.s32 7, %v7052_v31  ;;  %v7529_v25 = vld [vmem:[%s8461_s6 + $0x14] sm:$0xf] }
 0x331   :  { %8519 = vst [vmem:[#allocation20_spill] sm:$0xff] %v7529_v25  ;;  %v2817_v37 = vmul.f32 %v2804_v21, %v2799_v38 }
 0x332   :  { %v7513_v15 = vpop.permute.xlu1 %3143  ;;  %2672 = vmatprep.subr.mxu0 %v2483_v51  ;;  %v7515_v39 = vpop.permute.xlu0 %3139  ;;  %v3159_v31 = vrot.slane %v7191_v47, %v7521_v4  ;;  %v7551_v47 = vld [vmem:[%s8460_s5 + $0x18] sm:$0xf] }
 0x333   :  { %8517 = vst [vmem:[#allocation18_spill] sm:$0xff] %v7513_v15  ;;  %8518 = vst [vmem:[#allocation19_spill] sm:$0xff] %v7515_v39  ;;  %6334 = vmatmul.mubr.msk.f32.vlgmr.msra.gmra.mxu0 %vm850_vm14, %v7509_v63 }
 0x334   :  { %2673 = vmatpush1.msra.mxu0 %v2482_v50  ;;  %2706 = vmatprep.mubr.f32.mxu0 %v8478_v0  ;;  %8520 = vst [vmem:[#allocation21_spill] sm:$0xff] %v7551_v47 }
 0x335   :  { %2872 = vmatprep.subr.mxu0 %v2818_v17  ;;  %v3149_v17 = vsel %vm3147_vm4, %v3142_v29, %v7513_v15 }
 0x336   :  { %v2824_v32 = vpop.permute.xlu1 %2823  ;;  %v7532_v41 = vpop.permute.xlu0 %3176 }
 0x337   :  { %v2830_v36 = vsel %vm2796_vm3, %v2824_v32, %v7473_v5  ;;  %v2831_v50 = vsel %vm2796_vm3, %v7471_v13, %v2824_v32  ;;  %6337 = vmatmul.mubr.msk.f32.vlgmr.msra.gmra.mxu0 %vm850_vm14, %v7529_v25  ;;  %v3155_v32 = vrot.slane %v7205_v48, %v7521_v4  ;;  %v3169_v13 = vmul.f32 %v3159_v31, %v3149_v17 }
 0x338   :  { %v2833_v51 = vmul.f32 %v2831_v50, %v2804_v21  ;;  %v2834_v38 = vmul.f32 %v2830_v36, %v2808_v11  ;;  %2873 = vmatpush1.msra.mxu0 %v2817_v37  ;;  %2906 = vmatprep.mubr.f32.mxu0 %v8478_v0  ;;  %v3150_v11 = vsel %vm3147_vm4, %v7515_v39, %v3142_v29  ;;  %v7566_v21 = vld [vmem:[%s8461_s6 + $0x18] sm:$0xf] }
 0x339   :  { %8521 = vst [vmem:[#allocation22_spill] sm:$0xff] %v7566_v21  ;;  %v3168_v48 = vmul.f32 %v3155_v32, %v3150_v11 }
 0x33a   :  { %v7555_v5 = vpop.permute.xlu1 %3172  ;;  %3023 = vmatprep.subr.mxu0 %v2834_v38  ;;  %v3493_v25 = vpop.permute.xlu0 %3492  ;;  %v6352_v38 = vld [vmem:[%s8459_s4 + $0x28] ss:$0 sm:$0xff] }
 0x33b   :  { %6340 = vmatmul.mubr.msk.f32.vlgmr.msra.gmra.mxu0 %vm850_vm14, %v7551_v47 }
 0x33c   :  { %3024 = vmatpush1.msra.mxu0 %v2833_v51  ;;  %3057 = vmatprep.mubr.f32.mxu0 %v8478_v0 }
 0x33d   :  { %3223 = vmatprep.subr.mxu0 %v3169_v13  ;;  %v7583_v13 = vld [vmem:[%s8460_s5 + $0x1c] sm:$0xf] }
 0x33e   :  { %v3175_v37 = vpop.permute.xlu1 %3174  ;;  %v7577_v51 = vpop.permute.xlu0 %3490  ;;  %8522 = vst [vmem:[#allocation23_spill] sm:$0xff] %v7583_v13 }
 0x33f   :  { %v3181_v36 = vsel %vm3147_vm4, %v3175_v37, %v7532_v41  ;;  %v3182_v29 = vsel %vm3147_vm4, %v7555_v5, %v3175_v37  ;;  %6343 = vmatmul.mubr.msk.f32.vlgmr.msra.gmra.mxu0 %vm850_vm14, %v7566_v21 }
 0x340   :  { %v3184_v50 = vmul.f32 %v3182_v29, %v3155_v32  ;;  %v3185_v17 = vmul.f32 %v3181_v36, %v3159_v31  ;;  %3224 = vmatpush1.msra.mxu0 %v3168_v48  ;;  %3257 = vmatprep.mubr.f32.mxu0 %v8478_v0  ;;  %v6351_v31 = vld [vmem:[%s8459_s4 + $0x20] ss:$0 sm:$0xff]  ;;  %v3501_v32 = vsel %vm3498_vm5, %v7577_v51, %v3493_v25  ;;  %v7605_v36 = vld [vmem:[%s8461_s6 + $0x1c] sm:$0xf] }
 0x341   :  { %8523 = vst [vmem:[#allocation24_spill] sm:$0xff] %v7605_v36  ;;  %v3519_v29 = vmul.f32 %v6351_v31, %v3501_v32 }
 0x342   :  { %v7588_v11 = vpop.permute.xlu1 %3494  ;;  %3374 = vmatprep.subr.mxu0 %v3185_v17  ;;  %v7607_v17 = vpop.permute.xlu0 %3527 }
 0x343   :  { %v3500_v48 = vsel %vm3498_vm5, %v3493_v25, %v7588_v11  ;;  %6346 = vmatmul.mubr.msk.f32.vlgmr.msra.gmra.mxu0 %vm850_vm14, %v7583_v13 }
 0x344   :  { %v3520_v37 = vmul.f32 %v6352_v38, %v3500_v48  ;;  %3375 = vmatpush1.msra.mxu0 %v3184_v50  ;;  %3408 = vmatprep.mubr.f32.mxu0 %v8478_v0  ;;  %v7618_v48 = vld [vmem:[%s8460_s5 + $0x20] sm:$0xf] }
 0x345   :  { %8524 = vst [vmem:[#allocation25_spill] sm:$0xff] %v7618_v48 }
 0x346   :  { %v3526_v21 = vpop.permute.xlu1 %3525  ;;  %3574 = vmatprep.subr.mxu0 %v3520_v37 }
 0x347   :  { %v3532_v25 = vsel %vm3498_vm5, %v3526_v21, %v7607_v17  ;;  %6349 = vmatmul.mubr.msk.f32.vlgmr.msra.gmra.mxu0 %vm850_vm14, %v7605_v36 }
 0x348   :  { %v3536_v50 = vmul.f32 %v6352_v38, %v3532_v25  ;;  %3575 = vmatpush1.msra.mxu0 %v3519_v29  ;;  %3608 = vmatprep.mubr.f32.mxu0 %v8478_v0  ;;  %v7631_v38 = vld [vmem:[%s8461_s6 + $0x20] sm:$0xf] }
 0x349   :  { %8525 = vst [vmem:[#allocation26_spill] sm:$0xff] %v7631_v38 }
 0x34a   :  { %v7620_v32 = vpop.permute.xlu1 %3523  ;;  %3725 = vmatprep.subr.mxu0 %v3536_v50 }
 0x34b   :  { %v3533_v37 = vsel %vm3498_vm5, %v7620_v32, %v3526_v21  ;;  %6356 = vmatmul.mubr.msk.f32.vlgmr.msra.gmra.mxu0 %vm850_vm14, %v7618_v48 }
 0x34c   :  { %v3535_v36 = vmul.f32 %v6351_v31, %v3533_v37  ;;  %3759 = vmatprep.mubr.f32.mxu0 %v8478_v0  ;;  %v7642_v31 = vld [vmem:[%s8459_s4 + $0x10] sm:$0xff]  ;;  %v7647_v37 = vld [vmem:[%s8459_s4 + $0x18] sm:$0xff] }
 0x34d   :  { %v827_v0 = vrot.slane %v7647_v37, %v7182_v46  ;;  %v772_v47 = vrot.slane %v7642_v31, %v7218_v54 }
 0x34e   :  { %3726 = vmatpush1.msra.mxu0 %v3535_v36  ;;  %v823_v36 = vrot.slane %v7642_v31, %v7182_v46 }
 0x34f   :  { %6359 = vmatmul.mubr.msk.f32.vlgmr.msra.gmra.mxu0 %vm850_vm14, %v7631_v38  ;;  %v7635_v29 = vpop.permute.xlu0 %3844 }
 0x350   :  { %8526 = vst [vmem:[#allocation27_spill] sm:$0xff] %v7635_v29 }
 0x353   :  { %v751_v25 = vpop.permute.xlu0 %750 }
 0x354   :  { %v757_v46 = vsel %vm756_vm13, %v751_v25, %v7259_v3  ;;  %v758_v63 = vsel %vm756_vm13, %v7242_v60, %v751_v25  ;;  %v1457_v25 = vrot.slane %v7642_v31, %v7341_v35 }
 0x357   :  { %v7637_v50 = vpop.permute.xlu1 %3854  ;;  %v786_v21 = vpop.permute.xlu0 %785 }
 0x358   :  { %8527 = vst [vmem:[#allocation28_spill] sm:$0xff] %v7637_v50  ;;  %v776_v50 = vrot.slane %v7647_v37, %v7218_v54  ;;  %v779_v54 = vmul.f32 %v772_v47, %v758_v63  ;;  %v789_v60 = vsel %vm756_vm13, %v786_v21, %v7356_v42  ;;  %v1461_v42 = vrot.slane %v7647_v37, %v7341_v35 }
 0x35a   :  { %v780_v22 = vmul.f32 %v776_v50, %v757_v46 }
 0x35b   :  { %v804_v29 = vpop.permute.xlu1 %803  ;;  %v1471_v38 = vpop.permute.xlu0 %1470 }
 0x35c   :  { %v808_v48 = vsel %vm807_vm12, %v804_v29, %v7224_v55  ;;  %v809_v13 = vsel %vm807_vm12, %v7207_v49, %v804_v29  ;;  %v7709_v29 = vrot.slane %v7647_v37, %v7521_v4 }
 0x35d   :  { %v830_v15 = vmul.f32 %v823_v36, %v809_v13  ;;  %v831_v39 = vmul.f32 %v827_v0, %v808_v48 }
 0x35f   :  { %955 = vmatprep.subr.mxu1 %v831_v39  ;;  %v837_v56 = vpop.permute.xlu1 %836  ;;  %v7669_v55 = vpop.permute.xlu0 %1821  ;;  %v8528_v39 = vmov 0.0  }
 0x360   :  { %v840_v49 = vsel %vm807_vm12, %v837_v56, %v7318_v24  ;;  %956 = vmatpush1.msra.mxu1 %v830_v15  ;;  %v841_v3 = vsel %vm807_vm12, %v7323_v26, %v837_v56  ;;  %v796_v26 = vmul.f32 %v789_v60, %v776_v50 }
 0x361   :  { %v847_v13 = vmul.f32 %v840_v49, %v827_v0  ;;  %6307 = vmatmul.mubr.msk.f32.vlgmr.msra.gmra.mxu1 %vm850_vm14, %v7236_v59  ;;  %1100 = vmatprep.subr.mxu1 %v780_v22  ;;  %v846_v63 = vmul.f32 %v841_v3, %v823_v36  ;;  %v790_v0 = vsel %vm756_vm13, %v7325_v27, %v786_v21 }
 0x362   :  { %1134 = vmatprep.mubr.f32.mxu1 %v8528_v39  ;;  %1101 = vmatpush1.msra.mxu1 %v779_v54  ;;  %v795_v15 = vmul.f32 %v790_v0, %v772_v47  ;;  %v1474_v47 = vsel %vm1441_vm15, %v1471_v38, %v7398_v7  ;;  %v1475_v7 = vsel %vm1441_vm15, %v7358_v44, %v1471_v38 }
 0x363   :  { %v1438_v48 = vpop.permute.xlu1 %1437  ;;  %v7683_v24 = vpop.permute.xlu0 %2476  ;;  %1247 = vmatprep.subr.mxu1 %v847_v13  ;;  %v1481_v21 = vmul.f32 %v1474_v47, %v1461_v42  ;;  %v1812_v44 = vrot.slane %v7647_v37, %v7376_v57  ;;  %v1480_v49 = vmul.f32 %v1475_v7, %v1457_v25  ;;  %v1808_v13 = vrot.slane %v7642_v31, %v7376_v57  ;;  %v7925_v7 = vld [vmem:[%s8464_s9 + $0xc0] sm:$0xff] }
 0x364   :  { %v1442_v59 = vsel %vm1441_vm15, %v1438_v48, %v7302_v9  ;;  %v1443_v27 = vsel %vm1441_vm15, %v7308_v10, %v1438_v48  ;;  %v7705_v9 = vrot.slane %v7642_v31, %v7521_v4 }
 0x365   :  { %6309 = vmatmul.mubr.msk.f32.vlgmr.msra.gmra.mxu1 %vm850_vm14, %v7268_v6  ;;  %v1465_v6 = vmul.f32 %v1461_v42, %v1442_v59  ;;  %v1464_v50 = vmul.f32 %v1457_v25, %v1443_v27  ;;  %v2481_v59 = vsel %vm2445_vm2, %v7683_v24, %v7419_v33  ;;  %v8529_v42 = vld [vmem:[#allocation16_spill] sm:$0xff] }
 0x366   :  { %1248 = vmatpush1.msra.mxu1 %v846_v63  ;;  %1281 = vmatprep.mubr.f32.mxu1 %v8528_v39  ;;  %v8531_v25 = vld [vmem:[#allocation12_spill] sm:$0xff] }
 0x367   :  { %1392 = vmatprep.subr.mxu1 %v796_v26  ;;  %v1789_v56 = vpop.permute.xlu1 %1788  ;;  %v7696_v22 = vpop.permute.xlu0 %2827  ;;  %v2461_v26 = vrot.slane %v7642_v31, %v7434_v28 }
 0x369   :  { %6312 = vmatmul.mubr.msk.f32.vlgmr.msra.gmra.mxu1 %vm850_vm14, %v7338_v34 }
 0x36a   :  { %1393 = vmatpush1.msra.mxu1 %v795_v15  ;;  %1426 = vmatprep.mubr.f32.mxu1 %v8528_v39 }
 0x36b   :  { %1588 = vmatprep.subr.mxu1 %v1465_v6  ;;  %v7717_v10 = vpop.permute.xlu1 %2443  ;;  %v3179_v34 = vpop.permute.xlu0 %3178 }
 0x36c   :  { %v3180_v4 = vsel %vm3147_vm4, %v7532_v41, %v3179_v34  ;;  %v3183_v35 = vsel %vm3147_vm4, %v3179_v34, %v7555_v5  ;;  %v1793_v41 = vsel %vm1792_vm0, %v1789_v56, %v7316_v19  ;;  %v8532_v34 = vld [vmem:[#allocation17_spill] sm:$0xff] }
 0x36d   :  { %v7729_v36 = vmul.f32 %v3180_v4, %v7705_v9  ;;  %v7732_v46 = vmul.f32 %v3183_v35, %v7709_v29  ;;  %6314 = vmatmul.mubr.msk.f32.vlgmr.msra.gmra.mxu1 %vm850_vm14, %v7373_v53  ;;  %v1794_v53 = vsel %vm1792_vm0, %v7314_v12, %v1789_v56  ;;  %v1816_v3 = vmul.f32 %v1812_v44, %v1793_v41  ;;  %v7882_v56 = vld [vmem:[%s8464_s9 + $0xd0] sm:$0xff]  ;;  %v8535_v41 = vld [vmem:[#allocation14_spill] sm:$0xff] }
 0x36e   :  { %1589 = vmatpush1.msra.mxu1 %v1464_v50  ;;  %1622 = vmatprep.mubr.f32.mxu1 %v8528_v39  ;;  %v1815_v60 = vmul.f32 %v1808_v13, %v1794_v53  ;;  %v1826_v12 = vsel %vm1792_vm0, %v7400_v8, %v7669_v55  ;;  %v7791_v8 = vld [vmem:[%s8464_s9 + $0xf8] sm:$0xff]  ;;  %v8533_v4 = vld [vmem:[#allocation13_spill] sm:$0xff]  ;;  %v8538_v53 = vld [vmem:[#allocation19_spill] sm:$0xff]  ;;  %8544 = vst [vmem:[#allocation14_spill] sm:$0xff] %v7980_v16 }
 0x36f   :  { %1739 = vmatprep.subr.mxu1 %v1481_v21  ;;  %v7742_v5 = vpop.permute.xlu1 %2794  ;;  %v3530_v38 = vpop.permute.xlu0 %3529  ;;  %6389 = vmatprep.subr.mxu0 %v7791_v8  ;;  %v2832_v35 = vsel %vm2796_vm3, %v7696_v22, %v8533_v4 }
 0x370   :  { %v7747_v54 = vsel %vm3498_vm5, %v7607_v17, %v3530_v38  ;;  %v7752_v19 = vsel %vm3498_vm5, %v3530_v38, %v7620_v32  ;;  %v1825_v17 = vsel %vm1792_vm0, %v7669_v55, %v7431_v40  ;;  %v1831_v40 = vmul.f32 %v1826_v12, %v1808_v13  ;;  %v8536_v38 = vld [vmem:[#allocation20_spill] sm:$0xff] }
 0x371   :  { %6317 = vmatmul.mubr.msk.f32.vlgmr.msra.gmra.mxu1 %vm850_vm14, %v7389_v1  ;;  %v1832_v1 = vmul.f32 %v1825_v17, %v1812_v44  ;;  %v2465_v55 = vrot.slane %v7647_v37, %v7434_v28  ;;  %v7870_v28 = vld [vmem:[%s8464_s9 + $0x58] sm:$0xff]  ;;  %v2800_v15 = vsel %vm2796_vm3, %v7742_v5, %v7450_v58  ;;  %v7901_v58 = vld [vmem:[%s8464_s9 + $0xc8] sm:$0xff]  ;;  %v2797_v47 = vsel %vm2796_vm3, %v8531_v25, %v7742_v5  ;;  %v7961_v17 = vld [vmem:[%s8464_s9 + $0xb0] sm:$0xff] }
 0x372   :  { %1740 = vmatpush1.msra.mxu1 %v1480_v49  ;;  %1773 = vmatprep.mubr.f32.mxu1 %v8528_v39  ;;  %v2829_v44 = vsel %vm2796_vm3, %v8535_v41, %v7696_v22  ;;  %v7944_v49 = vld [vmem:[%s8464_s9 + $0xb8] sm:$0xff]  ;;  %8540 = vst [vmem:[#allocation17_spill] sm:$0xff] %v7961_v17 }
 0x373   :  { %1939 = vmatprep.subr.mxu1 %v1816_v3  ;;  %v7766_v32 = vpop.permute.xlu1 %3145  ;;  %v2485_v33 = vmul.f32 %v2481_v59, %v2465_v55  ;;  %v7954_v22 = vld [vmem:[%s8464_s9 + $0x38] sm:$0xff]  ;;  %v8550_v59 = vld [vmem:[#allocation23_spill] sm:$0xff] }
 0x374   :  { %v3151_v3 = vsel %vm3147_vm4, %v7766_v32, %v8538_v53  ;;  %8539 = vst [vmem:[#allocation12_spill] sm:$0xff] %v7954_v22 }
 0x375   :  { %6320 = vmatmul.mubr.msk.f32.vlgmr.msra.gmra.mxu1 %vm850_vm14, %v7417_v30  ;;  %v7796_v30 = vld [vmem:[%s8464_s9 + $0x78] sm:$0xff] }
 0x376   :  { %1940 = vmatpush1.msra.mxu1 %v1815_v60  ;;  %1973 = vmatprep.mubr.f32.mxu1 %v8528_v39  ;;  %v8541_v60 = vld [vmem:[#allocation18_spill] sm:$0xff] }
 0x377   :  { %2090 = vmatprep.subr.mxu1 %v1832_v1  ;;  %v3497_v57 = vpop.permute.xlu1 %3496  ;;  %6390 = vmatpush3.msra.mxu0 %v7796_v30  ;;  %v3148_v12 = vsel %vm3147_vm4, %v8541_v60, %v7766_v32  ;;  %v3171_v1 = vmul.f32 %v7709_v29, %v3151_v3  ;;  %v7988_v32 = vld [vmem:[%s8464_s9 + $0x28] sm:$0xff] }
 0x378   :  { %v7778_v48 = vsel %vm3498_vm5, %v7588_v11, %v3497_v57  ;;  %v7783_v63 = vsel %vm3498_vm5, %v3497_v57, %v7577_v51  ;;  %v7809_v51 = vld [vmem:[%s8464_s9 + $0x70] sm:$0xff]  ;;  %v7823_v11 = vld [vmem:[%s8464_s9 + $0xe8] sm:$0xff]  ;;  %v3170_v29 = vmul.f32 %v7705_v9, %v3148_v12  ;;  %8545 = vst [vmem:[#allocation20_spill] sm:$0xff] %v7988_v32  ;;  %v8002_v9 = vld [vmem:[%s8464_s9 + $0x20] sm:$0xff] }
 0x379   :  { %6323 = vmatmul.mubr.msk.f32.vlgmr.msra.gmra.mxu1 %vm850_vm14, %v7429_v14  ;;  %v7804_v14 = vld [vmem:[%s8464_s9 + $0xf0] sm:$0xff]  ;;  %8548 = vst [vmem:[#allocation18_spill] sm:$0xff] %v8002_v9 }
 0x37a   :  { %2091 = vmatpush1.msra.mxu1 %v1831_v40  ;;  %2124 = vmatprep.mubr.f32.mxu1 %v8528_v39  ;;  %v8542_v57 = vld [vmem:[#allocation21_spill] sm:$0xff] }
 0x37b   :  { %2241 = vmatprep.subr.mxu1 %v7087_v20  ;;  %6391 = vmatprep.subr.mxu0 %v7804_v14  ;;  %v2449_v20 = vsel %vm2445_vm2, %v7717_v10, %v7380_v62  ;;  %v2446_v62 = vsel %vm2445_vm2, %v7378_v61, %v7717_v10  ;;  %v7863_v61 = vld [vmem:[%s8464_s9 + $0xd8] sm:$0xff]  ;;  %v7974_v40 = vld [vmem:[%s8464_s9 + $0x30] sm:$0xff] }
 0x37c   :  { %6392 = vmatpush3.msra.mxu0 %v7809_v51  ;;  %v2469_v0 = vmul.f32 %v2465_v55, %v2449_v20  ;;  %8543 = vst [vmem:[#allocation13_spill] sm:$0xff] %v7974_v40  ;;  %v8546_v20 = vld [vmem:[#allocation22_spill] sm:$0xff]  ;;  %v7996_v55 = vld [vmem:[%s8464_s9 + $0xa0] sm:$0xff] }
 0x37d   :  { %6326 = vmatmul.mubr.msk.f32.vlgmr.msra.gmra.mxu1 %vm850_vm14, %v7445_v52  ;;  %v7828_v52 = vld [vmem:[%s8464_s9 + $0x68] sm:$0xff]  ;;  %6393 = vmatprep.subr.mxu0 %v7823_v11  ;;  %8547 = vst [vmem:[#allocation19_spill] sm:$0xff] %v7996_v55 }
 0x37e   :  { %2242 = vmatpush1.msra.mxu1 %v7142_v43  ;;  %2275 = vmatprep.mubr.f32.mxu1 %v8528_v39  ;;  %v7838_v43 = vld [vmem:[%s8464_s9 + $0xe0] sm:$0xff] }
 0x37f   :  { %2392 = vmatprep.subr.mxu1 %v7118_v18  ;;  %6394 = vmatpush3.msra.mxu0 %v7828_v52  ;;  %v7850_v18 = vld [vmem:[%s8464_s9 + $0x60] sm:$0xff] }
 0x380   :  { %6395 = vmatprep.subr.mxu0 %v7838_v43 }
 0x381   :  { %6329 = vmatmul.mubr.msk.f32.vlgmr.msra.gmra.mxu1 %vm850_vm14, %v7466_v2  ;;  %v2468_v2 = vmul.f32 %v2461_v26, %v2446_v62  ;;  %6396 = vmatpush3.msra.mxu0 %v7850_v18  ;;  %v6354_v62 = vld [vmem:[%s8459_s4 + $0x38] ss:$0 sm:$0xff] }
 0x382   :  { %2393 = vmatpush1.msra.mxu1 %v7152_v45  ;;  %2426 = vmatprep.mubr.f32.mxu1 %v8528_v39  ;;  %v2478_v45 = vsel %vm2445_vm2, %v7421_v23, %v7683_v24  ;;  %v7892_v23 = vld [vmem:[%s8464_s9 + $0x50] sm:$0xff]  ;;  %v8530_v24 = vld [vmem:[#allocation15_spill] sm:$0xff] }
 0x383   :  { %2592 = vmatprep.subr.mxu1 %v2469_v0  ;;  %6397 = vmatprep.subr.mxu0 %v7863_v61  ;;  %v2816_v27 = vrot.slane %v7647_v37, %v8530_v24  ;;  %v2484_v6 = vmul.f32 %v2478_v45, %v2461_v26  ;;  %v7913_v37 = vld [vmem:[%s8464_s9 + $0x48] sm:$0xff]  ;;  %v2812_v50 = vrot.slane %v7642_v31, %v8530_v24  ;;  %v7932_v31 = vld [vmem:[%s8464_s9 + $0x40] sm:$0xff]  ;;  %v8013_v0 = vld [vmem:[%s8464_s9 + $0x98] sm:$0xff] }
 0x384   :  { %6398 = vmatpush3.msra.mxu0 %v7870_v28  ;;  %8534 = vst [vmem:[#allocation16_spill] sm:$0xff] %v7932_v31  ;;  %8537 = vst [vmem:[#allocation15_spill] sm:$0xff] %v7944_v49  ;;  %v3522_v26 = vmul.f32 %v6354_v62, %v7783_v63  ;;  %v6353_v63 = vld [vmem:[%s8459_s4 + $0x30] ss:$0 sm:$0xff]  ;;  %v8063_v24 = vld [vmem:[%s8464_s9 + $0x80] sm:$0xff] }
 0x385   :  { %6332 = vmatmul.mubr.msk.f32.vlgmr.msra.gmra.mxu1 %vm850_vm14, %v8529_v42  ;;  %6399 = vmatprep.subr.mxu0 %v7882_v56  ;;  %v2820_v10 = vmul.f32 %v2816_v27, %v2800_v15  ;;  %v2819_v21 = vmul.f32 %v2812_v50, %v2797_v47  ;;  %v2836_v5 = vmul.f32 %v2832_v35, %v2816_v27  ;;  %v8554_v42 = vld [vmem:[#allocation24_spill] sm:$0xff]  ;;  %v8558_v27 = vld [vmem:[#allocation25_spill] sm:$0xff] }
 0x386   :  { %2593 = vmatpush1.msra.mxu1 %v2468_v2  ;;  %2626 = vmatprep.mubr.f32.mxu1 %v8528_v39  ;;  %v2835_v13 = vmul.f32 %v2829_v44, %v2812_v50  ;;  %8549 = vst [vmem:[#allocation21_spill] sm:$0xff] %v8013_v0  ;;  %v8029_v2 = vld [vmem:[%s8464_s9 + $0x90] sm:$0xff]  ;;  %v3521_v45 = vmul.f32 %v6353_v63, %v7778_v48  ;;  %v8049_v15 = vld [vmem:[%s8464_s9 + $0x88] sm:$0xff]  ;;  %8557 = vst [vmem:[#allocation31_spill] sm:$0xff] %v8063_v24 }
 0x387   :  { %2743 = vmatprep.subr.mxu1 %v2485_v33  ;;  %6400 = vmatpush3.msra.mxu0 %v7892_v23  ;;  %8552 = vst [vmem:[#allocation23_spill] sm:$0xff] %v8029_v2  ;;  %v3538_v33 = vmul.f32 %v6354_v62, %v7752_v19  ;;  %8555 = vst [vmem:[#allocation24_spill] sm:$0xff] %v8049_v15  ;;  %v8055_v48 = vld [vmem:[%s8464_s9 + $0x8] sm:$0xff]  ;;  %v3537_v19 = vmul.f32 %v6353_v63, %v7747_v54  ;;  %v8560_v54 = vld [vmem:[#allocation26_spill] sm:$0xff] }
 0x388   :  { %6401 = vmatprep.subr.mxu0 %v7901_v58  ;;  %8556 = vst [vmem:[#allocation30_spill] sm:$0xff] %v8055_v48 }
 0x389   :  { %6335 = vmatmul.mubr.msk.f32.vlgmr.msra.gmra.mxu1 %vm850_vm14, %v8532_v34  ;;  %6402 = vmatpush3.msra.mxu0 %v7913_v37 }
 0x38a   :  { %2744 = vmatpush1.msra.mxu1 %v2484_v6  ;;  %2777 = vmatprep.mubr.f32.mxu1 %v8528_v39  ;;  %v8071_v6 = vld [vmem:[%s8464_s9] sm:$0xff] }
 0x38b   :  { %2943 = vmatprep.subr.mxu1 %v2820_v10  ;;  %6403 = vmatprep.subr.mxu0 %v7925_v7  ;;  %8559 = vst [vmem:[#allocation25_spill] sm:$0xff] %v8071_v6 }
 0x38c   :  { %6404 = vmatpush3.msra.mxu0 %v7932_v31 }
 0x38d   :  { %6338 = vmatmul.mubr.msk.f32.vlgmr.msra.gmra.mxu1 %vm850_vm14, %v8536_v38  ;;  %6405 = vmatprep.subr.mxu0 %v7944_v49 }
 0x38e   :  { %2944 = vmatpush1.msra.mxu1 %v2819_v21  ;;  %2977 = vmatprep.mubr.f32.mxu1 %v8528_v39 }
 0x38f   :  { %3094 = vmatprep.subr.mxu1 %v2836_v5  ;;  %6406 = vmatpush3.msra.mxu0 %v7954_v22 }
 0x390   :  { %6407 = vmatprep.subr.mxu0 %v7961_v17 }
 0x391   :  { %6341 = vmatmul.mubr.msk.f32.vlgmr.msra.gmra.mxu1 %vm850_vm14, %v8542_v57  ;;  %6408 = vmatpush3.msra.mxu0 %v7974_v40 }
 0x392   :  { %3095 = vmatpush1.msra.mxu1 %v2835_v13  ;;  %3128 = vmatprep.mubr.f32.mxu1 %v8528_v39  ;;  %v920_v25 = vpop.f32.mrf.mxu0 }
 0x393   :  { %3294 = vmatprep.subr.mxu1 %v3171_v1  ;;  %6409 = vmatprep.subr.mxu0 %v7980_v16 }
 0x394   :  { %6410 = vmatpush3.msra.mxu0 %v7988_v32  ;;  %v922_v47 = vpop.f32.mrf.mxu0 }
 0x395   :  { %6344 = vmatmul.mubr.msk.f32.vlgmr.msra.gmra.mxu1 %vm850_vm14, %v8546_v20  ;;  %6411 = vmatprep.subr.mxu0 %v7996_v55 }
 0x396   :  { %3295 = vmatpush1.msra.mxu1 %v3170_v29  ;;  %3328 = vmatprep.mubr.f32.mxu1 %v8528_v39 }
 0x397   :  { %3445 = vmatprep.subr.mxu1 %v7732_v46  ;;  %6412 = vmatpush3.msra.mxu0 %v8002_v9  ;;  %v8022_v46 = vld [vmem:[%s8464_s9 + $0x18] sm:$0xff] }
 0x398   :  { %8551 = vst [vmem:[#allocation22_spill] sm:$0xff] %v8022_v46  ;;  %6413 = vmatprep.subr.mxu0 %v8013_v0 }
 0x399   :  { %6347 = vmatmul.mubr.msk.f32.vlgmr.msra.gmra.mxu1 %vm850_vm14, %v8550_v59  ;;  %6414 = vmatpush3.msra.mxu0 %v8022_v46 }
 0x39a   :  { %3446 = vmatpush1.msra.mxu1 %v7729_v36  ;;  %3479 = vmatprep.mubr.f32.mxu1 %v8528_v39  ;;  %v8040_v36 = vld [vmem:[%s8464_s9 + $0x10] sm:$0xff]  ;;  %v1065_v10 = vpop.f32.mrf.mxu0 }
 0x39b   :  { %3645 = vmatprep.subr.mxu1 %v3522_v26  ;;  %8553 = vst [vmem:[#allocation29_spill] sm:$0xff] %v8040_v36  ;;  %6415 = vmatprep.subr.mxu0 %v8029_v2 }
 0x39c   :  { %6416 = vmatpush3.msra.mxu0 %v8040_v36  ;;  %v1067_v34 = vpop.f32.mrf.mxu0 }
 0x39d   :  { %6350 = vmatmul.mubr.msk.f32.vlgmr.msra.gmra.mxu1 %vm850_vm14, %v8554_v42  ;;  %6417 = vmatprep.subr.mxu0 %v8049_v15 }
 0x39e   :  { %3646 = vmatpush1.msra.mxu1 %v3521_v45  ;;  %3679 = vmatprep.mubr.f32.mxu1 %v8528_v39 }
 0x39f   :  { %3796 = vmatprep.subr.mxu1 %v3538_v33  ;;  %6418 = vmatpush3.msra.mxu0 %v8055_v48 }
 0x3a0   :  { %6419 = vmatprep.subr.mxu0 %v8063_v24 }
 0x3a1   :  { %6357 = vmatmul.mubr.msk.f32.vlgmr.msra.gmra.mxu1 %vm850_vm14, %v8558_v27  ;;  %6420 = vmatpush3.msra.mxu0 %v8071_v6 }
 0x3a2   :  { %3797 = vmatpush1.msra.mxu1 %v3537_v19  ;;  %3830 = vmatprep.mubr.f32.mxu1 %v8528_v39  ;;  %v1068_v19 = vadd.f32 %v1067_v34, %v922_v47 }
 0x3a3   :  { %6495 = vmatprep.subr.mxu1 %v8528_v39 }
 0x3a5   :  { %6360 = vmatmul.mubr.msk.f32.vlgmr.msra.gmra.mxu1 %vm850_vm14, %v8560_v54  ;;  %v1066_v54 = vadd.f32 %v1065_v10, %v920_v25 }
 0x3a6   :  { %6499 = vmatprep.mubr.msk.f32.mxu1 %vm6725_vm6, %v8528_v39 }
 0x3d0   :  { %v1212_v50 = vpop.f32.mrf.mxu0 }
 0x3d2   :  { %v1214_v4 = vpop.f32.mrf.mxu0 }
 0x3d7   :  { %v1357_v35 = vpop.f32.mrf.mxu0 }
 0x3d8   :  { %v1358_v27 = vadd.f32 %v1357_v35, %v1212_v50 }
 0x3d9   :  { %v1359_v21 = vpop.f32.mrf.mxu0 }
 0x3da   :  { %v1360_v24 = vadd.f32 %v1359_v21, %v1214_v4 }
 0x3db   :  { %v1553_v41 = vpop.f32.mrf.mxu0 }
 0x3dc   :  { %v1629_v36 = vadd.f32 %v1553_v41, %v1066_v54 }
 0x3dd   :  { %v1555_v44 = vpop.f32.mrf.mxu0 }
 0x3de   :  { %v1630_v48 = vadd.f32 %v1555_v44, %v1068_v19 }
 0x3df   :  { %v1704_v5 = vpop.f32.mrf.mxu0 }
 0x3e0   :  { %v1780_v15 = vadd.f32 %v1704_v5, %v1358_v27 }
 0x3e1   :  { %v1706_v38 = vpop.f32.mrf.mxu0 }
 0x3e2   :  { %v1781_v46 = vadd.f32 %v1706_v38, %v1360_v24 }
 0x3e3   :  { %v1904_v53 = vpop.f32.mrf.mxu0 }
 0x3e4   :  { %v1980_v55 = vadd.f32 %v1904_v53, %v1629_v36 }
 0x3e5   :  { %v1906_v3 = vpop.f32.mrf.mxu0 }
 0x3e6   :  { %v1981_v0 = vadd.f32 %v1906_v3, %v1630_v48 }
 0x3e7   :  { %v2055_v13 = vpop.f32.mrf.mxu0 }
 0x3e8   :  { %v2131_v9 = vadd.f32 %v2055_v13, %v1780_v15 }
 0x3e9   :  { %v2057_v60 = vpop.f32.mrf.mxu0 }
 0x3ea   :  { %v2132_v16 = vadd.f32 %v2057_v60, %v1781_v46 }
 0x3eb   :  { %v2206_v12 = vpop.f32.mrf.mxu0 }
 0x3ec   :  { %v2282_v22 = vadd.f32 %v2206_v12, %v1980_v55 }
 0x3ed   :  { %v2208_v1 = vpop.f32.mrf.mxu0 }
 0x3ee   :  { %v2283_v40 = vadd.f32 %v2208_v1, %v1981_v0 }
 0x3ef   :  { %v2357_v57 = vpop.f32.mrf.mxu0 }
 0x3f0   :  { %v2433_v17 = vadd.f32 %v2357_v57, %v2131_v9 }
 0x3f1   :  { %v2359_v29 = vpop.f32.mrf.mxu0 }
 0x3f2   :  { %v2434_v31 = vadd.f32 %v2359_v29, %v2132_v16 }
 0x3f3   :  { %v2557_v20 = vpop.f32.mrf.mxu0 }
 0x3f4   :  { %v2633_v25 = vadd.f32 %v2557_v20, %v2282_v22  ;;  %v8562_v22 = vld [vmem:[#allocation27_spill] sm:$0xff] }
 0x3f5   :  { %v2559_v62 = vpop.f32.mrf.mxu0 }
 0x3f6   :  { %v2634_v47 = vadd.f32 %v2559_v62, %v2283_v40  ;;  %v8561_v40 = vld [vmem:[#allocation28_spill] sm:$0xff] }
 0x3f7   :  { %v2708_v26 = vpop.f32.mrf.mxu0 }
 0x3f8   :  { %v2784_v34 = vadd.f32 %v2708_v26, %v2433_v17 }
 0x3f9   :  { %v2710_v59 = vpop.f32.mrf.mxu0 }
 0x3fa   :  { %v2785_v50 = vadd.f32 %v2710_v59, %v2434_v31 }
 0x3fb   :  { %v2908_v63 = vpop.f32.mrf.mxu0 }
 0x3fc   :  { %v2984_v21 = vadd.f32 %v2908_v63, %v2633_v25 }
 0x3fd   :  { %v2910_v45 = vpop.f32.mrf.mxu0 }
 0x3fe   :  { %v2985_v4 = vadd.f32 %v2910_v45, %v2634_v47 }
 0x3ff   :  { %v3059_v33 = vpop.f32.mrf.mxu0 }
 0x400   :  { %v3135_v35 = vadd.f32 %v3059_v33, %v2784_v34 }
 0x401   :  { %v3061_v42 = vpop.f32.mrf.mxu0 }
 0x402   :  { %v3136_v24 = vadd.f32 %v3061_v42, %v2785_v50 }
 0x403   :  { %v3259_v6 = vpop.f32.mrf.mxu0 }
 0x404   :  { %v3335_v36 = vadd.f32 %v3259_v6, %v2984_v21 }
 0x405   :  { %v3261_v2 = vpop.f32.mrf.mxu0 }
 0x406   :  { %v3336_v48 = vadd.f32 %v3261_v2, %v2985_v4 }
 0x407   :  { %v3410_v32 = vpop.f32.mrf.mxu0 }
 0x408   :  { %v3486_v15 = vadd.f32 %v3410_v32, %v3135_v35 }
 0x409   :  { %v3412_v49 = vpop.f32.mrf.mxu0 }
 0x40a   :  { %v3487_v46 = vadd.f32 %v3412_v49, %v3136_v24 }
 0x40b   :  { %v3610_v10 = vpop.f32.mrf.mxu0 }
 0x40c   :  { %v3686_v55 = vadd.f32 %v3610_v10, %v3335_v36 }
 0x40d   :  { %v3612_v41 = vpop.f32.mrf.mxu0 }
 0x40e   :  { %v3687_v0 = vadd.f32 %v3612_v41, %v3336_v48  ;;  %v8089_v2 = vadd.f32 %v8562_v22, %v3686_v55 }
 0x40f   :  { %v3761_v44 = vpop.f32.mrf.mxu0 }
 0x410   :  { %v3837_v9 = vadd.f32 %v3761_v44, %v3486_v15  ;;  %v8083_v31 = vadd.f32 %v8562_v22, %v3687_v0 }
 0x411   :  { %v3763_v5 = vpop.f32.mrf.mxu0 }
 0x412   :  { %v3838_v16 = vadd.f32 %v3763_v5, %v3487_v46  ;;  %v8080_v17 = vadd.f32 %v8561_v40, %v3837_v9 }
 0x414   :  { %v8086_v38 = vadd.f32 %v8561_v40, %v3838_v16  ;;  %v3861_v32 = vadd.f32 %v8080_v17, %v8089_v2 }
 0x416   :  { %v3862_v49 = vadd.f32 %v8086_v38, %v8083_v31 }
 0x418   :  { %3965 = vmatprep.mubr.f32.mxu0 %v3862_v49 }
 0x419   :  { %3966 = vmatmul.mubr.f32.vlgmr.msra.gmra.mxu0 %v3861_v32 }
 0x41a   :  { %4653 = vmatprep.mubr.f32.mxu0 %v8528_v39 }
 0x421   :  { %v991_v6 = vpop.f32.mrf.mxu1 }
 0x423   :  { %v993_v53 = vpop.f32.mrf.mxu1 }
 0x425   :  { %v1136_v3 = vpop.f32.mrf.mxu1 }
 0x426   :  { %v1137_v13 = vadd.f32 %v1136_v3, %v991_v6 }
 0x427   :  { %v1138_v60 = vpop.f32.mrf.mxu1 }
 0x428   :  { %v1139_v12 = vadd.f32 %v1138_v60, %v993_v53 }
 0x429   :  { %v1283_v1 = vpop.f32.mrf.mxu1 }
 0x42b   :  { %v1285_v57 = vpop.f32.mrf.mxu1 }
 0x42d   :  { %v1428_v29 = vpop.f32.mrf.mxu1 }
 0x42e   :  { %v1429_v20 = vadd.f32 %v1428_v29, %v1283_v1 }
 0x42f   :  { %v1430_v62 = vpop.f32.mrf.mxu1 }
 0x430   :  { %v1431_v26 = vadd.f32 %v1430_v62, %v1285_v57 }
 0x431   :  { %v1624_v59 = vpop.f32.mrf.mxu1 }
 0x432   :  { %v1631_v63 = vadd.f32 %v1624_v59, %v1137_v13 }
 0x433   :  { %v1626_v45 = vpop.f32.mrf.mxu1 }
 0x434   :  { %v1632_v33 = vadd.f32 %v1626_v45, %v1139_v12 }
 0x435   :  { %v1775_v42 = vpop.f32.mrf.mxu1 }
 0x436   :  { %v1782_v19 = vadd.f32 %v1775_v42, %v1429_v20  ;;  %v8099_v42 = vld [vmem:[%s8466_s11 + $0x18] sm:$0xff] }
 0x437   :  { %v1777_v27 = vpop.f32.mrf.mxu1  ;;  %6496 = vmatpush3.msra.mxu1 %v8099_v42 }
 0x438   :  { %v1783_v54 = vadd.f32 %v1777_v27, %v1431_v26  ;;  %6497 = vmatprep.subr.mxu1 %v8528_v39 }
 0x439   :  { %v1975_v47 = vpop.f32.mrf.mxu1 }
 0x43a   :  { %v1982_v34 = vadd.f32 %v1975_v47, %v1631_v63 }
 0x43b   :  { %v1977_v25 = vpop.f32.mrf.mxu1 }
 0x43c   :  { %v1983_v10 = vadd.f32 %v1977_v25, %v1632_v33 }
 0x43d   :  { %v2126_v50 = vpop.f32.mrf.mxu1 }
 0x43e   :  { %v2133_v4 = vadd.f32 %v2126_v50, %v1782_v19  ;;  %v8104_v19 = vld [vmem:[%s8466_s11 + $0x10] sm:$0xff] }
 0x43f   :  { %v2128_v35 = vpop.f32.mrf.mxu1  ;;  %6498 = vmatpush3.msra.mxu1 %v8104_v19 }
 0x440   :  { %v2134_v21 = vadd.f32 %v2128_v35, %v1783_v54  ;;  %6502 = vmatprep.subr.mxu1 %v8528_v39 }
 0x441   :  { %v2277_v41 = vpop.f32.mrf.mxu1 }
 0x442   :  { %v2284_v24 = vadd.f32 %v2277_v41, %v1982_v34 }
 0x443   :  { %v2279_v48 = vpop.f32.mrf.mxu1 }
 0x444   :  { %v2285_v15 = vadd.f32 %v2279_v48, %v1983_v10  ;;  %v8123_v48 = vld [vmem:[%s8466_s11 + $0x8] sm:$0xff] }
 0x445   :  { %v2428_v36 = vpop.f32.mrf.mxu1 }
 0x446   :  { %v2435_v44 = vadd.f32 %v2428_v36, %v2133_v4  ;;  %v8138_v36 = vld [vmem:[%s8466_s11 + $0x28] sm:$0xff] }
 0x447   :  { %v2430_v46 = vpop.f32.mrf.mxu1 }
 0x448   :  { %v2436_v0 = vadd.f32 %v2430_v46, %v2134_v21 }
 0x449   :  { %v2628_v9 = vpop.f32.mrf.mxu1 }
 0x44a   :  { %v2635_v55 = vadd.f32 %v2628_v9, %v2284_v24  ;;  %v8163_v9 = vld [vmem:[%s8466_s11 + $0x30] sm:$0xff] }
 0x44b   :  { %v2630_v5 = vpop.f32.mrf.mxu1 }
 0x44c   :  { %v2636_v16 = vadd.f32 %v2630_v5, %v2285_v15  ;;  %v8129_v15 = vld [vmem:[%s8466_s11] sm:$0xff]  ;;  %v8174_v5 = vld [vmem:[#allocation6 + $0x8] sm:$0xff] }
 0x44d   :  { %v2779_v49 = vpop.f32.mrf.mxu1 }
 0x44e   :  { %v2786_v32 = vadd.f32 %v2779_v49, %v2435_v44  ;;  %v8146_v44 = vld [vmem:[%s8466_s11 + $0x20] sm:$0xff] }
 0x44f   :  { %v2781_v6 = vpop.f32.mrf.mxu1 }
 0x450   :  { %v2787_v53 = vadd.f32 %v2781_v6, %v2436_v0  ;;  %v8155_v0 = vld [vmem:[%s8466_s11 + $0x38] sm:$0xff] }
 0x451   :  { %v2979_v3 = vpop.f32.mrf.mxu1 }
 0x452   :  { %v2986_v13 = vadd.f32 %v2979_v3, %v2635_v55 }
 0x453   :  { %v2981_v60 = vpop.f32.mrf.mxu1 }
 0x454   :  { %v2987_v12 = vadd.f32 %v2981_v60, %v2636_v16  ;;  %v8176_v16 = vld [vmem:[#allocation6] sm:$0xff] }
 0x455   :  { %v3130_v1 = vpop.f32.mrf.mxu1 }
 0x456   :  { %v3137_v57 = vadd.f32 %v3130_v1, %v2786_v32 }
 0x457   :  { %v3132_v29 = vpop.f32.mrf.mxu1 }
 0x458   :  { %v3138_v20 = vadd.f32 %v3132_v29, %v2787_v53 }
 0x459   :  { %v3330_v62 = vpop.f32.mrf.mxu1 }
 0x45a   :  { %v3337_v26 = vadd.f32 %v3330_v62, %v2986_v13 }
 0x45b   :  { %v3332_v59 = vpop.f32.mrf.mxu1 }
 0x45c   :  { %v3338_v63 = vadd.f32 %v3332_v59, %v2987_v12  ;;  %v8187_v59 = vld [vmem:[#allocation7] sm:$0xff] }
 0x45d   :  { %v3481_v45 = vpop.f32.mrf.mxu1 }
 0x45e   :  { %v3488_v33 = vadd.f32 %v3481_v45, %v3137_v57  ;;  %v8198_v45 = vld [vmem:[#allocation4 + $0x10] sm:$0xff] }
 0x45f   :  { %v3483_v27 = vpop.f32.mrf.mxu1 }
 0x460   :  { %v8109_v54 = vadd.f32 %v3483_v27, %v3138_v20  ;;  %v8203_v27 = vld [vmem:[#allocation4] sm:$0xff] }
 0x461   :  { %v3681_v47 = vpop.f32.mrf.mxu1 }
 0x462   :  { %v8113_v34 = vadd.f32 %v3681_v47, %v3337_v26  ;;  %v8184_v26 = vld [vmem:[#allocation7 + $0x8] sm:$0xff] }
 0x463   :  { %v3683_v25 = vpop.f32.mrf.mxu1 }
 0x464   :  { %v8116_v10 = vadd.f32 %v3683_v25, %v3338_v63  ;;  %v8196_v63 = vld [vmem:[#allocation4 + $0x18] sm:$0xff] }
 0x465   :  { %v3832_v50 = vpop.f32.mrf.mxu1  ;;  %4617 = vmatprep.subr.mxu0 %v8196_v63  ;;  %v4277_v25 = vld [vmem:[%s8468_s13] sm:$0x1] }
 0x466   :  { %v8118_v4 = vadd.f32 %v3832_v50, %v3488_v33  ;;  %v8200_v33 = vld [vmem:[#allocation4 + $0x8] sm:$0xff]  ;;  %4618 = vmatpush1.msra.mxu0 %v8198_v45 }
 0x467   :  { %v8182_v49 = vpop.f32.mrf.mxu1  ;;  %4619 = vmatprep.subr.mxu0 %v8200_v33 }
 0x468   :  { %4620 = vmatpush1.msra.mxu0 %v8203_v27 }
 0x469   :  { %4766 = vmatprep.subr.mxu0 %v8196_v63 }
 0x4d9   :  { %v6421_v35 = vpop.f32.mrf.mxu0 }
 0x4db   :  { %v6422_v21 = vpop.f32.mrf.mxu0 }
 0x4dc   :  { %v6423_v41 = vadd.f32 %v6422_v21, %v6421_v35  ;;  %v4353_v35 = vld [vmem:[%s8470_s15] sm:$0x1] }
 0x4de   :  { %v3976_v24 = vrot.slane %v6423_v41, 1  ;;  %v4124_v46 = vrot.slane %v6423_v41, 2  ;;  %v4200_v55 = vrot.slane %v6423_v41, 3 }
 0x4e0   :  { %6500 = vmatmul.mubr.msk.f32.vlgmr.msra.gmra.mxu1 %vm3977_vm7, %v3976_v24 }
 0x4e1   :  { %6503 = vmatpush3.msra.mxu1 %v8123_v48  ;;  %6506 = vmatprep.mubr.msk.f32.mxu1 %vm6725_vm6, %v8528_v39 }
 0x4e2   :  { %6504 = vmatprep.subr.mxu1 %v8528_v39 }
 0x4e3   :  { %6505 = vmatpush3.msra.mxu1 %v8129_v15 }
 0x4e4   :  { %6507 = vmatmul.mubr.msk.f32.vlgmr.msra.gmra.mxu1 %vm3977_vm7, %v6423_v41  ;;  %6509 = vmatprep.subr.mxu1 %v8528_v39 }
 0x4e5   :  { %6510 = vmatpush3.msra.mxu1 %v8138_v36  ;;  %6513 = vmatprep.mubr.msk.f32.mxu1 %vm6725_vm6, %v8528_v39 }
 0x4e6   :  { %6511 = vmatprep.subr.mxu1 %v8528_v39 }
 0x4e7   :  { %6512 = vmatpush3.msra.mxu1 %v8146_v44 }
 0x4e8   :  { %6514 = vmatmul.mubr.msk.f32.vlgmr.msra.gmra.mxu1 %vm3977_vm7, %v4124_v46  ;;  %6516 = vmatprep.subr.mxu1 %v8528_v39 }
 0x4e9   :  { %6517 = vmatpush3.msra.mxu1 %v8155_v0  ;;  %6520 = vmatprep.mubr.msk.f32.mxu1 %vm6725_vm6, %v8528_v39 }
 0x4ea   :  { %6518 = vmatprep.subr.mxu1 %v8528_v39 }
 0x4eb   :  { %6519 = vmatpush3.msra.mxu1 %v8163_v9 }
 0x4ec   :  { %6521 = vmatmul.mubr.msk.f32.vlgmr.msra.gmra.mxu1 %vm3977_vm7, %v4200_v55  ;;  %6523 = vmatprep.subr.mxu1 %v8528_v39 }
 0x4ed   :  { %6527 = vmatprep.mubr.msk.f32.mxu1 %vm6725_vm6, %v8528_v39  ;;  %6524 = vmatpush3.msra.mxu1 %v8174_v5 }
 0x4ee   :  { %6525 = vmatprep.subr.mxu1 %v8528_v39 }
 0x4ef   :  { %6526 = vmatpush3.msra.mxu1 %v8176_v16 }
 0x4f0   :  { %6530 = vmatprep.subr.mxu1 %v8528_v39 }
 0x5a0   :  { %v4046_v32 = vpop.f32.mrf.mxu1 }
 0x5a2   :  { %v6501_v6 = vpop.f32.mrf.mxu1 }
 0x5a4   :  { %v4118_v53 = vpop.f32.mrf.mxu1 }
 0x5a5   :  { %v4119_v60 = vadd.f32 %v4118_v53, %v4046_v32 }
 0x5a6   :  { %v6508_v3 = vpop.f32.mrf.mxu1 }
 0x5a8   :  { %v4193_v13 = vpop.f32.mrf.mxu1 }
 0x5a9   :  { %v4197_v1 = vadd.f32 %v4193_v13, %v4119_v60 }
 0x5aa   :  { %v6515_v12 = vpop.f32.mrf.mxu1 }
 0x5ac   :  { %v4269_v57 = vpop.f32.mrf.mxu1 }
 0x5ad   :  { %v4273_v29 = vadd.f32 %v4269_v57, %v4197_v1 }
 0x5ae   :  { %v6522_v20 = vpop.f32.mrf.mxu1 }
 0x5af   :  { %v4274_v62 = vmax.f32 %v4273_v29, 0.0 }
 0x5b1   :  { %6528 = vmatmul.mubr.msk.f32.vlgmr.msra.gmra.mxu1 %vm3977_vm7, %v4274_v62 }
 0x5b2   :  { %6531 = vmatpush3.msra.mxu1 %v8184_v26  ;;  %6534 = vmatprep.mubr.msk.f32.mxu1 %vm6725_vm6, %v8528_v39 }
 0x5b3   :  { %6532 = vmatprep.subr.mxu1 %v8528_v39 }
 0x5b4   :  { %6533 = vmatpush3.msra.mxu1 %v8187_v59 }
 0x5b5   :  { %6535 = vmatmul.mubr.msk.f32.vlgmr.msra.gmra.mxu1 %vm3977_vm7, %v4274_v62  ;;  %4467 = vmatprep.subr.mxu1 %v8196_v63  ;;  %v3840_v62 = vadd.f32 %v8182_v49, %v8109_v54  ;;  %v8252_v54 = vadd.f32 %v8562_v22, %v8116_v10  ;;  %v8576_v10 = vld [vmem:[#allocation24_spill] sm:$0xff] }
 0x5b6   :  { %4503 = vmatprep.mubr.f32.mxu1 %v8528_v39  ;;  %4468 = vmatpush1.msra.mxu1 %v8198_v45 }
 0x5b7   :  { %4469 = vmatprep.subr.mxu1 %v8200_v33 }
 0x5b8   :  { %4470 = vmatpush1.msra.mxu1 %v8203_v27 }
 0x5b9   :  { %4542 = vmatprep.subr.mxu1 %v8196_v63 }
 0x671   :  { %v4347_v47 = vpop.f32.mrf.mxu1 }
 0x672   :  { %v4348_v41 = vadd.f32 %v4347_v47, %v4277_v25 }
 0x673   :  { %v6529_v50 = vpop.f32.mrf.mxu1 }
 0x674   :  { %v8244_v50 = vadd.f32 %v8561_v40, %v3840_v62 }
 0x675   :  { %v4420_v21 = vpop.f32.mrf.mxu1 }
 0x676   :  { %v4421_v24 = vadd.f32 %v4420_v21, %v4353_v35  ;;  %v3864_v35 = vadd.f32 %v8244_v50, %v8252_v54  ;;  %v8577_v21 = vld [vmem:[#allocation30_spill] sm:$0xff] }
 0x677   :  { %v6536_v46 = vpop.f32.mrf.mxu1 }
 0x678   :  { %v4424_v55 = vmax.f32 %v4348_v41, %v4421_v24  ;;  %v8579_v46 = vld [vmem:[#allocation25_spill] sm:$0xff] }
 0x67a   :  { %v4425_v32 = vsub.f32 %v4348_v41, %v4424_v55  ;;  %v4428_v6 = vsub.f32 %v4421_v24, %v4424_v55  ;;  %v8578_v24 = vld [vmem:[#allocation31_spill] sm:$0xff] }
 0x67c   :  { %v4426_v53 = vmul.f32 1.442695, %v4425_v32  ;;  %v4429_v3 = vmul.f32 1.442695, %v4428_v6 }
 0x67e   :  { %6609 = vpow2.f32 %v4426_v53 }
 0x67f   :  { %6611 = vpow2.f32 %v4429_v3 }
 0x68b   :  { %v6610_v13 = vpop.eup %6609 }
 0x68c   :  { %v6612_v60 = vpop.eup %6611 }
 0x68d   :  { %v4431_v12 = vadd.f32 %v6612_v60, %v6610_v13 }
 0x68f   :  { %6613 = vrcp.f32 %v4431_v12 }
 0x69c   :  { %v6614_v1 = vpop.eup %6613 }
 0x69d   :  { %v4435_v57 = vmul.f32 %v6614_v1, %v6612_v60  ;;  %v4434_v29 = vmul.f32 %v6614_v1, %v6610_v13 }
 0x69f   :  { %4884 = vrot.lane.b32.xlu0 %v4435_v57, %s6726_s10  ;;  %4585 = vrot.lane.b32.xlu1 %v4434_v29, %s6726_s10 }
 0x6a0   :  { %6367 = vmatmul.mubr.msk.f32.vlgmr.msra.gmra.mxu1 %vm3977_vm7, %v4434_v29 }
 0x6a1   :  { %4543 = vmatpush1.msra.mxu1 %v8198_v45  ;;  %4578 = vmatprep.mubr.f32.mxu1 %v8528_v39 }
 0x6a2   :  { %4544 = vmatprep.subr.mxu1 %v8200_v33 }
 0x6a3   :  { %4660 = vrot.lane.b32.xlu0 %v4434_v29, %s6727_s21  ;;  %4510 = vrot.lane.b32.xlu1 %v4434_v29, %s6723_s23 }
 0x6a4   :  { %4545 = vmatpush1.msra.mxu1 %v8203_v27 }
 0x6a5   :  { %4692 = vmatprep.subr.mxu1 %v8196_v63 }
 0x6a7   :  { %4959 = vrot.lane.b32.xlu0 %v4435_v57, %s6727_s21  ;;  %4809 = vrot.lane.b32.xlu1 %v4435_v57, %s6723_s23 }
 0x711   :  { %v4586_v20 = vpop.permute.xlu1 %4585  ;;  %v4885_v47 = vpop.permute.xlu0 %4884 }
 0x712   :  { %6369 = vmatmul.mubr.msk.f32.vlgmr.msra.gmra.mxu0 %vm3977_vm7, %v4586_v20 }
 0x713   :  { %4767 = vmatpush1.msra.mxu0 %v8198_v45  ;;  %4802 = vmatprep.mubr.f32.mxu0 %v8528_v39 }
 0x714   :  { %4768 = vmatprep.subr.mxu0 %v8200_v33 }
 0x715   :  { %4769 = vmatpush1.msra.mxu0 %v8203_v27  ;;  %v4511_v25 = vpop.permute.xlu1 %4510  ;;  %v4661_v49 = vpop.permute.xlu0 %4660 }
 0x716   :  { %4916 = vmatprep.subr.mxu0 %v8196_v63  ;;  %6368 = vmatmul.mubr.msk.f32.vlgmr.msra.gmra.mxu1 %vm3977_vm7, %v4511_v25 }
 0x717   :  { %6371 = vmatmul.mubr.msk.f32.vlgmr.msra.gmra.mxu0 %vm3977_vm7, %v4435_v57  ;;  %4693 = vmatpush1.msra.mxu1 %v8198_v45 }
 0x718   :  { %4917 = vmatpush1.msra.mxu0 %v8198_v45  ;;  %4694 = vmatprep.subr.mxu1 %v8200_v33 }
 0x719   :  { %4918 = vmatprep.subr.mxu0 %v8200_v33  ;;  %4952 = vmatprep.mubr.f32.mxu0 %v8528_v39 }
 0x71a   :  { %4919 = vmatpush1.msra.mxu0 %v8203_v27  ;;  %4695 = vmatpush1.msra.mxu1 %v8203_v27 }
 0x71b   :  { %6442 = vmatprep.subr.mxu0 %v7791_v8  ;;  %4728 = vmatprep.mubr.f32.mxu1 %v8528_v39  ;;  %v4810_v8 = vpop.permute.xlu1 %4809 }
 0x71c   :  { %6370 = vmatmul.mubr.msk.f32.vlgmr.msra.gmra.mxu1 %vm3977_vm7, %v4661_v49  ;;  %4841 = vmatprep.subr.mxu1 %v8196_v63 }
 0x71d   :  { %6373 = vmatmul.mubr.msk.f32.vlgmr.msra.gmra.mxu0 %vm3977_vm7, %v4885_v47  ;;  %4842 = vmatpush1.msra.mxu1 %v8198_v45 }
 0x71e   :  { %6443 = vmatpush3.msra.mxu0 %v7796_v30  ;;  %5159 = vmatprep.mubr.f32.mxu0 %v3864_v35  ;;  %v4960_v30 = vpop.permute.xlu0 %4959 }
 0x71f   :  { %6444 = vmatprep.subr.mxu0 %v7804_v14  ;;  %4843 = vmatprep.subr.mxu1 %v8200_v33  ;;  %v8563_v14 = vld [vmem:[#allocation16_spill] sm:$0xff] }
 0x720   :  { %6445 = vmatpush3.msra.mxu0 %v7809_v51  ;;  %4844 = vmatpush1.msra.mxu1 %v8203_v27  ;;  %v8564_v51 = vld [vmem:[#allocation15_spill] sm:$0xff] }
 0x721   :  { %4877 = vmatprep.mubr.f32.mxu1 %v8528_v39  ;;  %6446 = vmatprep.subr.mxu0 %v7823_v11  ;;  %v8565_v11 = vld [vmem:[#allocation12_spill] sm:$0xff] }
 0x722   :  { %6372 = vmatmul.mubr.msk.f32.vlgmr.msra.gmra.mxu1 %vm3977_vm7, %v4810_v8  ;;  %4991 = vmatprep.subr.mxu1 %v8196_v63 }
 0x723   :  { %6447 = vmatpush3.msra.mxu0 %v7828_v52  ;;  %4992 = vmatpush1.msra.mxu1 %v8198_v45  ;;  %v8566_v52 = vld [vmem:[#allocation17_spill] sm:$0xff] }
 0x724   :  { %6448 = vmatprep.subr.mxu0 %v7838_v43  ;;  %4993 = vmatprep.subr.mxu1 %v8200_v33  ;;  %v8567_v43 = vld [vmem:[#allocation13_spill] sm:$0xff] }
 0x725   :  { %6449 = vmatpush3.msra.mxu0 %v7850_v18  ;;  %4994 = vmatpush1.msra.mxu1 %v8203_v27  ;;  %v8568_v18 = vld [vmem:[#allocation14_spill] sm:$0xff] }
 0x726   :  { %5027 = vmatprep.mubr.f32.mxu1 %v8528_v39  ;;  %6450 = vmatprep.subr.mxu0 %v7863_v61  ;;  %v8569_v61 = vld [vmem:[#allocation20_spill] sm:$0xff] }
 0x727   :  { %6374 = vmatmul.mubr.msk.f32.vlgmr.msra.gmra.mxu1 %vm3977_vm7, %v4960_v30  ;;  %6451 = vmatpush3.msra.mxu0 %v7870_v28  ;;  %v8570_v28 = vld [vmem:[#allocation19_spill] sm:$0xff] }
 0x728   :  { %6452 = vmatprep.subr.mxu0 %v7882_v56  ;;  %6537 = vmatprep.subr.mxu1 %v8528_v39  ;;  %v8571_v56 = vld [vmem:[#allocation18_spill] sm:$0xff] }
 0x729   :  { %6453 = vmatpush3.msra.mxu0 %v7892_v23  ;;  %6538 = vmatpush3.msra.mxu1 %v8099_v42  ;;  %v8572_v23 = vld [vmem:[#allocation21_spill] sm:$0xff] }
 0x72a   :  { %6454 = vmatprep.subr.mxu0 %v7901_v58  ;;  %6539 = vmatprep.subr.mxu1 %v8528_v39  ;;  %v8573_v58 = vld [vmem:[#allocation22_spill] sm:$0xff]  ;;  %v8575_v42 = vld [vmem:[#allocation29_spill] sm:$0xff] }
 0x72b   :  { %6455 = vmatpush3.msra.mxu0 %v7913_v37  ;;  %6540 = vmatpush3.msra.mxu1 %v8104_v19  ;;  %v8308_v37 = vadd.f32 %v8561_v40, %v8118_v4  ;;  %v8314_v19 = vadd.f32 %v8562_v22, %v8113_v34 }
 0x72c   :  { %6456 = vmatprep.subr.mxu0 %v7925_v7  ;;  %6541 = vmatprep.mubr.msk.f32.mxu1 %vm6725_vm6, %v8528_v39  ;;  %v8574_v7 = vld [vmem:[#allocation23_spill] sm:$0xff] }
 0x72d   :  { %6457 = vmatpush3.msra.mxu0 %v8563_v14  ;;  %6544 = vmatprep.subr.mxu1 %v8528_v39  ;;  %v3863_v41 = vadd.f32 %v8308_v37, %v8314_v19 }
 0x72e   :  { %6458 = vmatprep.subr.mxu0 %v8564_v51 }
 0x72f   :  { %6459 = vmatpush3.msra.mxu0 %v8565_v11 }
 0x730   :  { %6460 = vmatprep.subr.mxu0 %v8566_v52 }
 0x731   :  { %6461 = vmatpush3.msra.mxu0 %v8567_v43 }
 0x732   :  { %6462 = vmatprep.subr.mxu0 %v8568_v18 }
 0x733   :  { %6463 = vmatpush3.msra.mxu0 %v8569_v61 }
 0x734   :  { %6464 = vmatprep.subr.mxu0 %v8570_v28 }
 0x735   :  { %6465 = vmatpush3.msra.mxu0 %v8571_v56 }
 0x736   :  { %6466 = vmatprep.subr.mxu0 %v8572_v23 }
 0x737   :  { %6467 = vmatpush3.msra.mxu0 %v8573_v58 }
 0x738   :  { %6468 = vmatprep.subr.mxu0 %v8574_v7 }
 0x739   :  { %6469 = vmatpush3.msra.mxu0 %v8575_v42 }
 0x73a   :  { %6470 = vmatprep.subr.mxu0 %v8576_v10 }
 0x73b   :  { %6471 = vmatpush3.msra.mxu0 %v8577_v21 }
 0x73c   :  { %6472 = vmatprep.subr.mxu0 %v8578_v24 }
 0x73d   :  { %6473 = vmatpush3.msra.mxu0 %v8579_v46 }
 0x73e   :  { %5160 = vmatmul.mubr.f32.vlgmr.msra.gmra.mxu0 %v3863_v41  ;;  %5810 = vmatprep.subr.mxu0 %v8196_v63 }
 0x73f   :  { %5811 = vmatpush1.msra.mxu0 %v8198_v45  ;;  %5846 = vmatprep.mubr.f32.mxu0 %v8528_v39 }
 0x740   :  { %5812 = vmatprep.subr.mxu0 %v8200_v33 }
 0x741   :  { %5813 = vmatpush1.msra.mxu0 %v8203_v27 }
 0x742   :  { %5959 = vmatprep.subr.mxu0 %v8196_v63 }
 0x760   :  { %v4505_v40 = vpop.f32.mrf.mxu1 }
 0x762   :  { %v4507_v34 = vpop.f32.mrf.mxu1 }
 0x7d2   :  { %v4655_v22 = vpop.f32.mrf.mxu0 }
 0x7d3   :  { %v5042_v14 = vrot.slane %v4655_v22, 6 }
 0x7d4   :  { %v4657_v4 = vpop.f32.mrf.mxu0 }
 0x7d5   :  { %v5043_v51 = vrot.slane %v4657_v4, 6 }
 0x7d6   :  { %v4580_v55 = vpop.f32.mrf.mxu1 }
 0x7d7   :  { %v4804_v6 = vpop.f32.mrf.mxu0  ;;  %v5036_v60 = vrot.slane %v4580_v55, 7 }
 0x7d8   :  { %v4582_v32 = vpop.f32.mrf.mxu1 }
 0x7d9   :  { %v4806_v3 = vpop.f32.mrf.mxu0  ;;  %v5037_v12 = vrot.slane %v4582_v32, 7  ;;  %v5053_v62 = vsel %vm5052_vm8, %v4505_v40, %v5036_v60 }
 0x7da   :  { %v5055_v61 = vsel %vm400_vm1, %v5053_v62, %v5042_v14 }
 0x7db   :  { %v5054_v25 = vsel %vm5052_vm8, %v4507_v34, %v5037_v12 }
 0x7dc   :  { %v4730_v53 = vpop.f32.mrf.mxu1  ;;  %v5056_v28 = vsel %vm400_vm1, %v5054_v25, %v5043_v51 }
 0x7dd   :  { %v4954_v1 = vpop.f32.mrf.mxu0  ;;  %v5048_v49 = vrot.slane %v4730_v53, 5 }
 0x7de   :  { %v4732_v13 = vpop.f32.mrf.mxu1  ;;  %v5068_v11 = vrot.slane %v4954_v1, 6 }
 0x7df   :  { %v5049_v35 = vrot.slane %v4732_v13, 5  ;;  %v4956_v8 = vpop.f32.mrf.mxu0  ;;  %v5058_v7 = vsel %vm5057_vm9, %v5055_v61, %v5048_v49 }
 0x7e0   :  { %v5069_v56 = vrot.slane %v4956_v8, 6  ;;  %v5084_v40 = vmul.f32 %v5058_v7, %v8089_v2 }
 0x7e1   :  { %v5059_v42 = vsel %vm5057_vm9, %v5056_v28, %v5049_v35 }
 0x7e2   :  { %v4879_v57 = vpop.f32.mrf.mxu1  ;;  %v5085_v22 = vmul.f32 %v5059_v42, %v8083_v31 }
 0x7e3   :  { %v5062_v29 = vrot.slane %v4879_v57, 7  ;;  %v5546_v57 = vld [vmem:[%s8470_s15] sm:$0x1] }
 0x7e4   :  { %v4881_v20 = vpop.f32.mrf.mxu1 }
 0x7e5   :  { %v5063_v47 = vrot.slane %v4881_v20, 7  ;;  %v5078_v30 = vsel %vm5052_vm8, %v4804_v6, %v5062_v29 }
 0x7e6   :  { %v5080_v23 = vsel %vm400_vm1, %v5078_v30, %v5068_v11 }
 0x7e7   :  { %v5029_v52 = vpop.f32.mrf.mxu1  ;;  %v5079_v43 = vsel %vm5052_vm8, %v4806_v3, %v5063_v47 }
 0x7e8   :  { %v5074_v18 = vrot.slane %v5029_v52, 5  ;;  %v5081_v24 = vsel %vm400_vm1, %v5079_v43, %v5069_v56 }
 0x7e9   :  { %v5031_v58 = vpop.f32.mrf.mxu1 }
 0x7ea   :  { %v5082_v10 = vsel %vm5057_vm9, %v5080_v23, %v5074_v18  ;;  %v5075_v21 = vrot.slane %v5031_v58, 5 }
 0x7eb   :  { %v5086_v41 = vmul.f32 %v5082_v10, %v8080_v17 }
 0x7ec   :  { %v5083_v46 = vsel %vm5057_vm9, %v5081_v24, %v5075_v21 }
 0x7ed   :  { %v5087_v34 = vmul.f32 %v5083_v46, %v8086_v38  ;;  %v5088_v4 = vadd.f32 %v5086_v41, %v5084_v40 }
 0x7ef   :  { %v5089_v55 = vadd.f32 %v5087_v34, %v5085_v22 }
 0x7f1   :  { %v5092_v32 = vcombine.low %v5088_v4, %v5089_v55 }
 0x7f3   :  { %5094 = vst [vmem:[%s8471_s16] sm:$0xff] %v5092_v32 }
 0x7fe   :  { %v6474_v6 = vpop.f32.mrf.mxu0 }
 0x800   :  { %v6475_v53 = vpop.f32.mrf.mxu0 }
 0x801   :  { %v6476_v17 = vadd.f32 %v6475_v53, %v6474_v6 }
 0x803   :  { %v5170_v3 = vrot.slane %v6476_v17, 1  ;;  %v5317_v31 = vrot.slane %v6476_v17, 2  ;;  %v5393_v38 = vrot.slane %v6476_v17, 3 }
 0x805   :  { %6542 = vmatmul.mubr.msk.f32.vlgmr.msra.gmra.mxu1 %vm3977_vm7, %v5170_v3 }
 0x806   :  { %6545 = vmatpush3.msra.mxu1 %v8123_v48  ;;  %6548 = vmatprep.mubr.msk.f32.mxu1 %vm6725_vm6, %v8528_v39 }
 0x807   :  { %6546 = vmatprep.subr.mxu1 %v8528_v39 }
 0x808   :  { %6547 = vmatpush3.msra.mxu1 %v8129_v15 }
 0x809   :  { %6549 = vmatmul.mubr.msk.f32.vlgmr.msra.gmra.mxu1 %vm3977_vm7, %v6476_v17  ;;  %6551 = vmatprep.subr.mxu1 %v8528_v39 }
 0x80a   :  { %6552 = vmatpush3.msra.mxu1 %v8138_v36  ;;  %6555 = vmatprep.mubr.msk.f32.mxu1 %vm6725_vm6, %v8528_v39 }
 0x80b   :  { %6553 = vmatprep.subr.mxu1 %v8528_v39 }
 0x80c   :  { %6554 = vmatpush3.msra.mxu1 %v8146_v44 }
 0x80d   :  { %6556 = vmatmul.mubr.msk.f32.vlgmr.msra.gmra.mxu1 %vm3977_vm7, %v5317_v31  ;;  %6558 = vmatprep.subr.mxu1 %v8528_v39 }
 0x80e   :  { %6559 = vmatpush3.msra.mxu1 %v8155_v0  ;;  %6562 = vmatprep.mubr.msk.f32.mxu1 %vm6725_vm6, %v8528_v39 }
 0x80f   :  { %6560 = vmatprep.subr.mxu1 %v8528_v39 }
 0x810   :  { %6561 = vmatpush3.msra.mxu1 %v8163_v9 }
 0x811   :  { %6563 = vmatmul.mubr.msk.f32.vlgmr.msra.gmra.mxu1 %vm3977_vm7, %v5393_v38  ;;  %6565 = vmatprep.subr.mxu1 %v8528_v39 }
 0x812   :  { %6566 = vmatpush3.msra.mxu1 %v8174_v5  ;;  %6569 = vmatprep.mubr.msk.f32.mxu1 %vm6725_vm6, %v8528_v39 }
 0x813   :  { %6567 = vmatprep.subr.mxu1 %v8528_v39 }
 0x814   :  { %6568 = vmatpush3.msra.mxu1 %v8176_v16 }
 0x815   :  { %6572 = vmatprep.subr.mxu1 %v8528_v39 }
 0x8c5   :  { %v5239_v2 = vpop.f32.mrf.mxu1 }
 0x8c7   :  { %v6543_v48 = vpop.f32.mrf.mxu1 }
 0x8c9   :  { %v5311_v15 = vpop.f32.mrf.mxu1 }
 0x8ca   :  { %v5312_v0 = vadd.f32 %v5311_v15, %v5239_v2 }
 0x8cb   :  { %v6550_v36 = vpop.f32.mrf.mxu1 }
 0x8cd   :  { %v5386_v44 = vpop.f32.mrf.mxu1 }
 0x8ce   :  { %v5390_v13 = vadd.f32 %v5386_v44, %v5312_v0 }
 0x8cf   :  { %v6557_v9 = vpop.f32.mrf.mxu1 }
 0x8d1   :  { %v5462_v60 = vpop.f32.mrf.mxu1 }
 0x8d2   :  { %v5466_v12 = vadd.f32 %v5462_v60, %v5390_v13 }
 0x8d3   :  { %v6564_v5 = vpop.f32.mrf.mxu1 }
 0x8d4   :  { %v5467_v1 = vmax.f32 %v5466_v12, 0.0 }
 0x8d6   :  { %6570 = vmatmul.mubr.msk.f32.vlgmr.msra.gmra.mxu1 %vm3977_vm7, %v5467_v1 }
 0x8d7   :  { %6573 = vmatpush3.msra.mxu1 %v8184_v26  ;;  %6576 = vmatprep.mubr.msk.f32.mxu1 %vm6725_vm6, %v8528_v39  ;;  %v5470_v26 = vld [vmem:[%s8468_s13] sm:$0x1] }
 0x8d8   :  { %6574 = vmatprep.subr.mxu1 %v8528_v39 }
 0x8d9   :  { %6575 = vmatpush3.msra.mxu1 %v8187_v59 }
 0x8da   :  { %6577 = vmatmul.mubr.msk.f32.vlgmr.msra.gmra.mxu1 %vm3977_vm7, %v5467_v1  ;;  %5660 = vmatprep.subr.mxu1 %v8196_v63 }
 0x8db   :  { %5661 = vmatpush1.msra.mxu1 %v8198_v45  ;;  %5696 = vmatprep.mubr.f32.mxu1 %v8528_v39 }
 0x8dc   :  { %5662 = vmatprep.subr.mxu1 %v8200_v33 }
 0x8dd   :  { %5663 = vmatpush1.msra.mxu1 %v8203_v27 }
 0x8de   :  { %5735 = vmatprep.subr.mxu1 %v8196_v63 }
 0x996   :  { %v5540_v16 = vpop.f32.mrf.mxu1 }
 0x997   :  { %v5541_v20 = vadd.f32 %v5540_v16, %v5470_v26 }
 0x998   :  { %v6571_v59 = vpop.f32.mrf.mxu1 }
 0x99a   :  { %v5613_v29 = vpop.f32.mrf.mxu1 }
 0x99b   :  { %v5614_v62 = vadd.f32 %v5613_v29, %v5546_v57 }
 0x99c   :  { %v6578_v47 = vpop.f32.mrf.mxu1 }
 0x99d   :  { %v5617_v25 = vmax.f32 %v5541_v20, %v5614_v62 }
 0x99f   :  { %v5618_v49 = vsub.f32 %v5541_v20, %v5617_v25  ;;  %v5621_v35 = vsub.f32 %v5614_v62, %v5617_v25 }
 0x9a1   :  { %v5619_v8 = vmul.f32 1.442695, %v5618_v49  ;;  %v5622_v30 = vmul.f32 1.442695, %v5621_v35 }
 0x9a3   :  { %6615 = vpow2.f32 %v5619_v8 }
 0x9a4   :  { %6617 = vpow2.f32 %v5622_v30 }
 0x9b0   :  { %v6616_v14 = vpop.eup %6615 }
 0x9b1   :  { %v6618_v51 = vpop.eup %6617 }
 0x9b2   :  { %v5624_v11 = vadd.f32 %v6618_v51, %v6616_v14 }
 0x9b4   :  { %6619 = vrcp.f32 %v5624_v11 }
 0x9c1   :  { %v6620_v52 = vpop.eup %6619 }
 0x9c2   :  { %v5627_v43 = vmul.f32 %v6620_v52, %v6616_v14  ;;  %v5628_v18 = vmul.f32 %v6620_v52, %v6618_v51 }
 0x9c4   :  { %5778 = vrot.lane.b32.xlu0 %v5627_v43, %s6726_s10  ;;  %5703 = vrot.lane.b32.xlu1 %v5627_v43, %s6723_s23 }
 0x9c5   :  { %6381 = vmatmul.mubr.msk.f32.vlgmr.msra.gmra.mxu1 %vm3977_vm7, %v5627_v43 }
 0x9c6   :  { %5736 = vmatpush1.msra.mxu1 %v8198_v45  ;;  %5771 = vmatprep.mubr.f32.mxu1 %v8528_v39 }
 0x9c7   :  { %5737 = vmatprep.subr.mxu1 %v8200_v33 }
 0x9c8   :  { %6002 = vrot.lane.b32.xlu0 %v5628_v18, %s6723_s23  ;;  %5853 = vrot.lane.b32.xlu1 %v5627_v43, %s6727_s21 }
 0x9c9   :  { %5738 = vmatpush1.msra.mxu1 %v8203_v27 }
 0x9ca   :  { %5885 = vmatprep.subr.mxu1 %v8196_v63 }
 0x9cc   :  { %6152 = vrot.lane.b32.xlu0 %v5628_v18, %s6727_s21  ;;  %6077 = vrot.lane.b32.xlu1 %v5628_v18, %s6726_s10 }
 0xa36   :  { %v5779_v61 = vpop.permute.xlu0 %5778  ;;  %v5704_v28 = vpop.permute.xlu1 %5703 }
 0xa37   :  { %6382 = vmatmul.mubr.msk.f32.vlgmr.msra.gmra.mxu1 %vm3977_vm7, %v5704_v28  ;;  %6383 = vmatmul.mubr.msk.f32.vlgmr.msra.gmra.mxu0 %vm3977_vm7, %v5779_v61 }
 0xa38   :  { %5886 = vmatpush1.msra.mxu1 %v8198_v45  ;;  %5960 = vmatpush1.msra.mxu0 %v8198_v45 }
 0xa39   :  { %5887 = vmatprep.subr.mxu1 %v8200_v33  ;;  %5961 = vmatprep.subr.mxu0 %v8200_v33 }
 0xa3a   :  { %5962 = vmatpush1.msra.mxu0 %v8203_v27  ;;  %5995 = vmatprep.mubr.f32.mxu0 %v8528_v39  ;;  %v5854_v56 = vpop.permute.xlu1 %5853  ;;  %v6003_v58 = vpop.permute.xlu0 %6002 }
 0xa3b   :  { %5888 = vmatpush1.msra.mxu1 %v8203_v27  ;;  %5921 = vmatprep.mubr.f32.mxu1 %v8528_v39 }
 0xa3c   :  { %6384 = vmatmul.mubr.msk.f32.vlgmr.msra.gmra.mxu1 %vm3977_vm7, %v5854_v56  ;;  %6385 = vmatmul.mubr.msk.f32.vlgmr.msra.gmra.mxu0 %vm3977_vm7, %v5628_v18 }
 0xa3d   :  { %6034 = vmatprep.subr.mxu1 %v8196_v63  ;;  %6109 = vmatprep.subr.mxu0 %v8196_v63 }
 0xa3e   :  { %6035 = vmatpush1.msra.mxu1 %v8198_v45  ;;  %6110 = vmatpush1.msra.mxu0 %v8198_v45  ;;  %v6078_v23 = vpop.permute.xlu1 %6077  ;;  %v6153_v7 = vpop.permute.xlu0 %6152 }
 0xa3f   :  { %6036 = vmatprep.subr.mxu1 %v8200_v33  ;;  %6111 = vmatprep.subr.mxu0 %v8200_v33 }
 0xa40   :  { %6112 = vmatpush1.msra.mxu0 %v8203_v27  ;;  %6145 = vmatprep.mubr.f32.mxu0 %v8528_v39 }
 0xa41   :  { %6037 = vmatpush1.msra.mxu1 %v8203_v27  ;;  %6070 = vmatprep.mubr.f32.mxu1 %v8528_v39 }
 0xa42   :  { %6386 = vmatmul.mubr.msk.f32.vlgmr.msra.gmra.mxu1 %vm3977_vm7, %v6003_v58  ;;  %6387 = vmatmul.mubr.msk.f32.vlgmr.msra.gmra.mxu0 %vm3977_vm7, %v6078_v23 }
 0xa43   :  { %6184 = vmatprep.subr.mxu1 %v8196_v63  ;;  %6220 = vmatprep.mubr.f32.mxu1 %v8528_v39 }
 0xa44   :  { %6185 = vmatpush1.msra.mxu1 %v8198_v45 }
 0xa45   :  { %6186 = vmatprep.subr.mxu1 %v8200_v33 }
 0xa46   :  { %6187 = vmatpush1.msra.mxu1 %v8203_v27 }
 0xa47   :  { %6388 = vmatmul.mubr.msk.f32.vlgmr.msra.gmra.mxu1 %vm3977_vm7, %v6153_v7 }
 0xa85   :  { %v5698_v42 = vpop.f32.mrf.mxu1 }
 0xa87   :  { %v5700_v10 = vpop.f32.mrf.mxu1 }
 0xaf7   :  { %v5773_v21 = vpop.f32.mrf.mxu1  ;;  %v5848_v41 = vpop.f32.mrf.mxu0 }
 0xaf8   :  { %v6229_v39 = vrot.slane %v5773_v21, 7  ;;  %v6235_v32 = vrot.slane %v5848_v41, 6 }
 0xaf9   :  { %v5775_v24 = vpop.f32.mrf.mxu1  ;;  %v5850_v46 = vpop.f32.mrf.mxu0 }
 0xafa   :  { %v6230_v4 = vrot.slane %v5775_v24, 7  ;;  %v6245_v53 = vsel %vm5052_vm8, %v5698_v42, %v6229_v39  ;;  %v6236_v17 = vrot.slane %v5850_v46, 6 }
 0xafb   :  { %v6247_v13 = vsel %vm400_vm1, %v6245_v53, %v6235_v32 }
 0xafc   :  { %v5923_v40 = vpop.f32.mrf.mxu1  ;;  %v5997_v22 = vpop.f32.mrf.mxu0  ;;  %v6246_v38 = vsel %vm5052_vm8, %v5700_v10, %v6230_v4 }
 0xafd   :  { %v6241_v2 = vrot.slane %v5923_v40, 5  ;;  %v6248_v60 = vsel %vm400_vm1, %v6246_v38, %v6236_v17 }
 0xafe   :  { %v5925_v63 = vpop.f32.mrf.mxu1  ;;  %v5999_v34 = vpop.f32.mrf.mxu0 }
 0xaff   :  { %v6242_v48 = vrot.slane %v5925_v63, 5  ;;  %v6249_v1 = vsel %vm5057_vm9, %v6247_v13, %v6241_v2 }
 0xb00   :  { %v6275_v62 = vmul.f32 %v6249_v1, %v8314_v19 }
 0xb01   :  { %v6250_v16 = vsel %vm5057_vm9, %v6248_v60, %v6242_v48 }
 0xb02   :  { %v6072_v45 = vpop.f32.mrf.mxu1  ;;  %v6147_v55 = vpop.f32.mrf.mxu0  ;;  %v6276_v47 = vmul.f32 %v6250_v16, %v8252_v54 }
 0xb03   :  { %v6253_v33 = vrot.slane %v6072_v45, 7  ;;  %v6259_v3 = vrot.slane %v6147_v55, 6 }
 0xb04   :  { %v6074_v6 = vpop.f32.mrf.mxu1  ;;  %v6149_v27 = vpop.f32.mrf.mxu0 }
 0xb05   :  { %v6254_v31 = vrot.slane %v6074_v6, 7  ;;  %v6269_v15 = vsel %vm5052_vm8, %v5997_v22, %v6253_v33  ;;  %v6260_v36 = vrot.slane %v6149_v27, 6 }
 0xb06   :  { %v6271_v12 = vsel %vm400_vm1, %v6269_v15, %v6259_v3 }
 0xb07   :  { %v6222_v44 = vpop.f32.mrf.mxu1  ;;  %v6270_v0 = vsel %vm5052_vm8, %v5999_v34, %v6254_v31 }
 0xb08   :  { %v6265_v9 = vrot.slane %v6222_v44, 5  ;;  %v6272_v57 = vsel %vm400_vm1, %v6270_v0, %v6260_v36 }
 0xb09   :  { %v6224_v5 = vpop.f32.mrf.mxu1 }
 0xb0a   :  { %v6273_v26 = vsel %vm5057_vm9, %v6271_v12, %v6265_v9  ;;  %v6266_v59 = vrot.slane %v6224_v5, 5 }
 0xb0b   :  { %v6277_v29 = vmul.f32 %v6273_v26, %v8308_v37 }
 0xb0c   :  { %v6274_v20 = vsel %vm5057_vm9, %v6272_v57, %v6266_v59 }
 0xb0d   :  { %v6278_v25 = vmul.f32 %v6274_v20, %v8244_v50  ;;  %v6279_v49 = vadd.f32 %v6277_v29, %v6275_v62 }
 0xb0f   :  { %v6280_v35 = vadd.f32 %v6278_v25, %v6276_v47 }
 0xb11   :  { %v6283_v8 = vcombine.low %v6279_v49, %v6280_v35 }
 0xb13   :  { %6285 = vst [vmem:[%s8471_s16 + $0x8] sm:$0xff] %v6283_v8 }
 0xb14   :  { %6290 = vsyncpa [#allocation3], 1 }
 0xb15   :  { %6291 = vsyncpa [#allocation5], 1 }
 0xb16   :  { %6292 = vsyncpa [#allocation8], 1 }

</bundles_post_ra>
